<compile_context>
chip_gen: v5e
topology: v5e:2x2
jax: 0.10.0
libtpu: 0.0.40
codegen_flags: <defaults>
</compile_context>

<pallas_src>
import math

import jax
import jax.numpy as jnp
import numpy as np
from jax.experimental import pallas as pl
from jax.experimental.pallas import tpu as pltpu

# ---------------- configuration (small shapes consistent with the module) ----
B = 2
DIM = 32                       # embedding dim C
NUM_HEADS = 4
HEAD_DIM = DIM // NUM_HEADS    # 8
SEQ_LEN = 8                    # nystrom seq_len (tokens after the CLS token)
NUM_LANDMARKS = 4              # must divide SEQ_LEN
N_TOK = SEQ_LEN + 1            # 9 tokens (CLS + seq)
M_LAND = NUM_LANDMARKS + 1     # 5 landmarks (CLS row + pooled)
MLP_RATIO = 4.0
HIDDEN = int(DIM * MLP_RATIO)  # 128
KERNEL_SIZE = 33
SCALE = HEAD_DIM ** (-0.5)
LN_EPS = 1e-5
N_ITER_INV = 6

# packed-layout constants
NPAD = 16                      # padded tokens per batch (mult of 8, power of 2)
MP = 8                         # padded landmarks per (b,h) block
NBLK = B * NUM_HEADS           # 8 (b,h) blocks
BD = NBLK * MP                 # 64: packed Newton-Schulz size
BROWS = B * NPAD               # 32: fused token rows
SROWS = NUM_HEADS * BROWS      # 128: head-stacked V rows (conv operand)
NEG = -1e30


# ---------------- in-kernel helpers ------------------------------------------
def _layernorm(x, g, b):
    mu = jnp.mean(x, axis=-1, keepdims=True)
    xc = x - mu
    var = jnp.mean(xc * xc, axis=-1, keepdims=True)
    return xc * jax.lax.rsqrt(var + LN_EPS) * g + b


def _erf(z):
    # Abramowitz & Stegun 7.1.26 polynomial erf (max abs err ~1.5e-7).
    a1, a2, a3, a4, a5 = 0.254829592, -0.284496736, 1.421413741, -1.453152027, 1.061405429
    p = 0.3275911
    s = jnp.where(z >= 0.0, 1.0, -1.0)
    az = jnp.abs(z)
    t = 1.0 / (1.0 + p * az)
    poly = t * (a1 + t * (a2 + t * (a3 + t * (a4 + t * a5))))
    return s * (1.0 - poly * jnp.exp(-az * az))


def _gelu(x):
    return 0.5 * x * (1.0 + _erf(x * (1.0 / math.sqrt(2.0))))


# ---------------- the Pallas kernel -------------------------------------------
def block_kernel(x_ref, ln1g_ref, ln1b_ref, wq_ref, wk_ref, wv_ref,
                 pool_ref, hmbd_ref, hmst_ref, eye_ref, seg_ref,
                 k2add_ref, rv64_ref, s1add_ref, s1dfix_ref, s3add_ref,
                 convw_ref, ln2g_ref, ln2b_ref, w1_ref, b1_ref, w2_ref, b2_ref,
                 o_ref):
    f32 = jnp.float32

    def dot(a, b):
        return jnp.dot(a, b, preferred_element_type=f32)

    def dot_t(a, b):  # a @ b.T without materializing a transpose
        return jax.lax.dot_general(a, b, (((1,), (1,)), ((), ())),
                                   preferred_element_type=f32)

    x_pad = x_ref[...]                                             # (32, 32)

    # ---- LayerNorm1 + q/k/v projections (1/scale folded into wq/wk) ----------
    xn = _layernorm(x_pad, ln1g_ref[...], ln1b_ref[...])
    q_all = dot(xn, wq_ref[...])                                   # (32, 32)
    k_all = dot(xn, wk_ref[...])
    v_all = dot(xn, wv_ref[...])

    # ---- head-stacked, head-feature-masked landmarks (one MXU push each) -----
    hm_bd = hmbd_ref[...]                                          # (64, 32)
    qlbd = dot(pool_ref[...], q_all) * hm_bd                       # (64, 32)
    klbd = dot(pool_ref[...], k_all) * hm_bd                       # (64, 32)

    # ---- kernel_2 (block-diagonal over all (b,h)) and global alpha -----------
    s2 = dot_t(qlbd, klbd) + k2add_ref[...]                        # (64, 64)
    e2 = jnp.exp(s2 - jnp.max(s2, axis=-1, keepdims=True))
    k2 = (e2 / jnp.sum(e2, axis=-1, keepdims=True)) * rv64_ref[...]
    col_max = jnp.max(jnp.sum(k2, axis=0, keepdims=True))
    row_max = jnp.max(jnp.sum(k2, axis=1, keepdims=True))
    alpha = 1.0 / (col_max * row_max)

    # ---- work independent of the Newton-Schulz chain: kernel_3, kernel_1, conv
    s3 = dot_t(qlbd, k_all) + s3add_ref[...]                       # (64, 32)
    e3 = jnp.exp(s3 - jnp.max(s3, axis=-1, keepdims=True))
    k3 = e3 / jnp.sum(e3, axis=-1, keepdims=True)
    k3v = dot(k3, v_all) * hm_bd                                   # (64, 32)

    s1 = dot_t(q_all, klbd) + s1add_ref[...]                       # (32, 64)
    e1 = jnp.exp(s1 - jnp.max(s1, axis=-1, keepdims=True))         # 0 at masked
    d1 = dot(e1, seg_ref[...]) + s1dfix_ref[...]                   # per-block sums
    k1 = e1 / d1

    vstack = jnp.concatenate([v_all] * NUM_HEADS, axis=0) * hmst_ref[...]  # (128,32)
    conv = dot(convw_ref[...], vstack)                             # (32, 32)

    # ---- Newton-Schulz pseudo-inverse, once, on the packed 64x64 -------------
    eye64 = eye_ref[...]
    i7, i15, i13 = 7.0 * eye64, 15.0 * eye64, 13.0 * eye64
    vm = alpha * k2.T
    for _ in range(N_ITER_INV):
        kv = dot(k2, vm)
        t = i7 - kv
        t = i15 - dot(kv, t)
        t = i13 - dot(kv, t)
        vm = 0.25 * dot(vm, t)

    # ---- Nystrom attention + conv, residual 1, LN2, MLP, residual 2 ----------
    attn = dot(dot(k1, vm), k3v) + conv                            # (32, 32)
    x1 = x_pad + attn
    xn2 = _layernorm(x1, ln2g_ref[...], ln2b_ref[...])
    hid = _gelu(dot(xn2, w1_ref[...]) + b1_ref[...])
    o_ref[...] = x1 + dot(hid, w2_ref[...]) + b2_ref[...]


def _block_forward(xpad, kparams):
    vspec = pl.BlockSpec(memory_space=pltpu.MemorySpace.VMEM)
    return pl.pallas_call(
        block_kernel,
        out_shape=jax.ShapeDtypeStruct((BROWS, DIM), jnp.float32),
        in_specs=[vspec] * (1 + len(kparams)),
        out_specs=vspec,
    )(xpad, *kparams)


@jax.jit
def block_forward(x, kparams):
    # host-side pad to a sublane-aligned slab; kernel emits the padded slab.
    xpad = jnp.zeros((B, NPAD, DIM), jnp.float32).at[:, :N_TOK, :].set(x)
    out = _block_forward(xpad.reshape(BROWS, DIM), kparams)
    return out.reshape(B, NPAD, DIM)[:, :N_TOK, :]


# ---------------- deterministic parameter setup (host glue) -------------------
def init_params(key):
    ks = jax.random.split(key, 6)
    std = 0.1
    wqkv = std * jax.random.normal(ks[0], (DIM, 3 * DIM), jnp.float32)   # x @ W form
    conv_w = std * jax.random.normal(ks[1], (NUM_HEADS, KERNEL_SIZE), jnp.float32)
    w1 = std * jax.random.normal(ks[2], (DIM, HIDDEN), jnp.float32)
    b1 = std * jax.random.normal(ks[3], (1, HIDDEN), jnp.float32)
    w2 = std * jax.random.normal(ks[4], (HIDDEN, DIM), jnp.float32)
    b2 = std * jax.random.normal(ks[5], (1, DIM), jnp.float32)
    ln1g = jnp.ones((1, DIM), jnp.float32)
    ln1b = jnp.zeros((1, DIM), jnp.float32)
    ln2g = jnp.ones((1, DIM), jnp.float32)
    ln2b = jnp.zeros((1, DIM), jnp.float32)
    return (ln1g, ln1b, wqkv, ln2g, ln2b, w1, b1, w2, b2, conv_w)


def prepare_kernel_params(raw):
    (ln1g, ln1b, wqkv, ln2g, ln2b, w1, b1, w2, b2, conv_w) = raw

    # split qkv and fold 1/scale into the q and k weights (exact: no bias).
    wqkv_np = np.asarray(wqkv, np.float32)
    inv_scale = np.float32(1.0 / SCALE)
    wq = wqkv_np[:, 0:DIM] * inv_scale
    wk = wqkv_np[:, DIM:2 * DIM] * inv_scale
    wv = wqkv_np[:, 2 * DIM:3 * DIM].copy()

    # landmark pooling (CLS row + segment means), tiled once per head: (64, 32)
    seg = SEQ_LEN // NUM_LANDMARKS
    poolbd = np.zeros((B * MP, BROWS), np.float32)
    for b in range(B):
        poolbd[b * MP, b * NPAD] = 1.0
        for l in range(NUM_LANDMARKS):
            poolbd[b * MP + 1 + l,
                   b * NPAD + 1 + l * seg: b * NPAD + 1 + (l + 1) * seg] = 1.0 / seg
    poolbd4 = np.tile(poolbd, (NUM_HEADS, 1))                       # (64, 32)

    # static masks (precomputed on host per perf review)
    rbd = np.arange(BD)
    rst = np.arange(SROWS)
    rbr = np.arange(BROWS)
    d = np.arange(DIM)

    hm_bd = ((d[None, :] // HEAD_DIM) == (rbd[:, None] // (B * MP))).astype(np.float32)
    hm_st = ((d[None, :] // HEAD_DIM) == (rst[:, None] // (B * NPAD))).astype(np.float32)

    eye64 = np.eye(BD, dtype=np.float32)
    segsum = ((rbd[:, None] // MP) == (rbd[None, :] // MP)).astype(np.float32)

    blk = rbd // MP
    bat_bd = blk % B
    m_bd = rbd % MP
    k2_valid = (blk[:, None] == blk[None, :]) & (m_bd[None, :] < M_LAND)
    k2_add = np.where(k2_valid, 0.0, NEG).astype(np.float32)
    rowvalid64 = (m_bd < M_LAND).astype(np.float32).reshape(BD, 1)

    bat_br = rbr // NPAD
    tok_br = rbr % NPAD
    s3_valid = (bat_br[None, :] == bat_bd[:, None]) & (tok_br[None, :] < N_TOK)
    s3_add = np.where(s3_valid, 0.0, NEG).astype(np.float32)

    s1_valid = (bat_bd[None, :] == bat_br[:, None]) & (m_bd[None, :] < M_LAND)
    s1_add = np.where(s1_valid, 0.0, NEG).astype(np.float32)
    s1_dfix = (1.0 - s1_valid.astype(np.float32)).astype(np.float32)

    # depthwise (kernel_size,1) conv as a batch+head-stacked Toeplitz (32, 128)
    pad = KERNEL_SIZE // 2
    n_idx = np.arange(N_TOK)[:, None]
    m_idx = np.arange(N_TOK)[None, :]
    tap = m_idx - n_idx + pad
    valid = (tap >= 0) & (tap < KERNEL_SIZE)
    tap_c = np.clip(tap, 0, KERNEL_SIZE - 1)
    conv_np = np.asarray(conv_w, np.float32)
    toe = np.where(valid[None], conv_np[:, tap_c], 0.0).astype(np.float32)  # (H, N, N)
    convw = np.zeros((BROWS, SROWS), np.float32)
    for b in range(B):
        for h in range(NUM_HEADS):
            convw[b * NPAD:b * NPAD + N_TOK,
                  h * (B * NPAD) + b * NPAD: h * (B * NPAD) + b * NPAD + N_TOK] = toe[h]

    j = lambda a: jnp.asarray(a, jnp.float32)
    return (j(ln1g), j(ln1b), j(wq), j(wk), j(wv),
            j(poolbd4), j(hm_bd), j(hm_st), j(eye64), j(segsum),
            j(k2_add), j(rowvalid64), j(s1_add), j(s1_dfix), j(s3_add), j(convw),
            j(ln2g), j(ln2b), j(w1), j(b1), j(w2), j(b2))


# ---------------- float64 numpy reference (faithful to the PyTorch module) ----
def reference_block(x, raw):
    (ln1g, ln1b, wqkv, ln2g, ln2b, w1, b1, w2, b2, conv_w) = [
        np.asarray(p, np.float64) for p in raw]
    x = np.asarray(x, np.float64)

    def ln(z, g, b):
        mu = z.mean(-1, keepdims=True)
        var = ((z - mu) ** 2).mean(-1, keepdims=True)
        return (z - mu) / np.sqrt(var + LN_EPS) * g.reshape(-1) + b.reshape(-1)

    def softmax(s):
        e = np.exp(s - s.max(-1, keepdims=True))
        return e / e.sum(-1, keepdims=True)

    xn = ln(x, ln1g, ln1b)
    qkv = (xn @ wqkv).reshape(B, N_TOK, 3, NUM_HEADS, HEAD_DIM).transpose(2, 0, 3, 1, 4)
    Q, K, V = qkv[0] / SCALE, qkv[1] / SCALE, qkv[2]        # (B, H, N, d)
    seg = SEQ_LEN // NUM_LANDMARKS

    def landmarks(Z):
        rest = Z[:, :, 1:, :].reshape(B, NUM_HEADS, NUM_LANDMARKS, seg, HEAD_DIM).mean(3)
        return np.concatenate([Z[:, :, 0:1, :], rest], axis=2)

    Ql, Kl = landmarks(Q), landmarks(K)
    k1 = softmax(Q @ np.swapaxes(Kl, -1, -2))
    k2 = softmax(Ql @ np.swapaxes(Kl, -1, -2))
    k3 = softmax(Ql @ np.swapaxes(K, -1, -2))
    I = np.eye(M_LAND)
    Vm = (1.0 / (np.max(np.sum(np.abs(k2), axis=-2)) *
                 np.max(np.sum(np.abs(k2), axis=-1)))) * np.swapaxes(k2, -1, -2)
    for _ in range(N_ITER_INV):
        KV = k2 @ Vm
        Vm = 0.25 * Vm @ (13.0 * I - KV @ (15.0 * I - KV @ (7.0 * I - KV)))
    X = (k1 @ Vm) @ (k3 @ V)

    pad = KERNEL_SIZE // 2
    Vp = np.pad(V, ((0, 0), (0, 0), (pad, pad), (0, 0)))
    conv = np.zeros_like(V)
    for t in range(KERNEL_SIZE):
        conv = conv + conv_w[:, t].reshape(1, NUM_HEADS, 1, 1) * Vp[:, :, t:t + N_TOK, :]
    X = X + conv

    attn = X.transpose(0, 2, 1, 3).reshape(B, N_TOK, DIM)
    x1 = x + attn
    xn2 = ln(x1, ln2g, ln2b)
    erf_v = np.vectorize(math.erf)
    z = xn2 @ w1 + b1.reshape(-1)
    h = 0.5 * z * (1.0 + erf_v(z / math.sqrt(2.0)))         # exact GELU
    return x1 + (h @ w2 + b2.reshape(-1))


# ---------------- main ---------------------------------------------------------
if __name__ == "__main__":
    key = jax.random.PRNGKey(0)
    kx, kp = jax.random.split(key)
    x = jax.random.normal(kx, (B, N_TOK, DIM), jnp.float32)
    raw = init_params(kp)
    kparams = prepare_kernel_params(raw)

    out = jax.block_until_ready(block_forward(x, kparams))

    assert out.shape == (B, N_TOK, DIM)
    assert bool(jnp.all(jnp.isfinite(out)))

    ref = reference_block(np.asarray(x), raw)
    err = float(np.max(np.abs(np.asarray(out, np.float64) - ref)))
    assert err < 2e-2, f"mismatch vs float64 reference, max abs err = {err}"

    print("KERNEL_OK")
</pallas_src>

<mosaic_0001>
module attributes {stable_mosaic.version = 11 : i64} {
  func.func @block_kernel(%arg0: memref<32x32xf32, #tpu.memory_space<vmem>>, %arg1: memref<1x32xf32, #tpu.memory_space<vmem>>, %arg2: memref<1x32xf32, #tpu.memory_space<vmem>>, %arg3: memref<32x32xf32, #tpu.memory_space<vmem>>, %arg4: memref<32x32xf32, #tpu.memory_space<vmem>>, %arg5: memref<32x32xf32, #tpu.memory_space<vmem>>, %arg6: memref<64x32xf32, #tpu.memory_space<vmem>>, %arg7: memref<64x32xf32, #tpu.memory_space<vmem>>, %arg8: memref<128x32xf32, #tpu.memory_space<vmem>>, %arg9: memref<64x64xf32, #tpu.memory_space<vmem>>, %arg10: memref<64x64xf32, #tpu.memory_space<vmem>>, %arg11: memref<64x64xf32, #tpu.memory_space<vmem>>, %arg12: memref<64x1xf32, #tpu.memory_space<vmem>>, %arg13: memref<32x64xf32, #tpu.memory_space<vmem>>, %arg14: memref<32x64xf32, #tpu.memory_space<vmem>>, %arg15: memref<64x32xf32, #tpu.memory_space<vmem>>, %arg16: memref<32x128xf32, #tpu.memory_space<vmem>>, %arg17: memref<1x32xf32, #tpu.memory_space<vmem>>, %arg18: memref<1x32xf32, #tpu.memory_space<vmem>>, %arg19: memref<32x128xf32, #tpu.memory_space<vmem>>, %arg20: memref<1x128xf32, #tpu.memory_space<vmem>>, %arg21: memref<128x32xf32, #tpu.memory_space<vmem>>, %arg22: memref<1x32xf32, #tpu.memory_space<vmem>>, %arg23: memref<32x32xf32, #tpu.memory_space<vmem>>) attributes {dimension_semantics = [], scalar_prefetch = 0 : i64, scratch_operands = 0 : i64, tpu.core_type = #tpu.core_type<tc>} {
    %c0 = arith.constant 0 : index
    %c0_0 = arith.constant 0 : index
    %0 = vector.load %arg0[%c0, %c0_0] : memref<32x32xf32, #tpu.memory_space<vmem>>, vector<32x32xf32>
    %c0_1 = arith.constant 0 : index
    %c0_2 = arith.constant 0 : index
    %1 = vector.load %arg1[%c0_1, %c0_2] : memref<1x32xf32, #tpu.memory_space<vmem>>, vector<1x32xf32>
    %c0_3 = arith.constant 0 : index
    %c0_4 = arith.constant 0 : index
    %2 = vector.load %arg2[%c0_3, %c0_4] : memref<1x32xf32, #tpu.memory_space<vmem>>, vector<1x32xf32>
    %cst = arith.constant dense<0.000000e+00> : vector<32xf32>
    %3 = vector.multi_reduction <add>, %0, %cst [1] : vector<32x32xf32> to vector<32xf32>
    %4 = vector.shape_cast %3 : vector<32xf32> to vector<32x1xf32>
    %cst_5 = arith.constant 3.200000e+01 : f32
    %5 = vector.broadcast %cst_5 : f32 to vector<32x1xf32>
    %6 = arith.divf %4, %5 : vector<32x1xf32>
    %7 = vector.broadcast %6 : vector<32x1xf32> to vector<32x32xf32>
    %8 = arith.subf %0, %7 : vector<32x32xf32>
    %9 = arith.mulf %8, %8 : vector<32x32xf32>
    %cst_6 = arith.constant dense<0.000000e+00> : vector<32xf32>
    %10 = vector.multi_reduction <add>, %9, %cst_6 [1] : vector<32x32xf32> to vector<32xf32>
    %11 = vector.shape_cast %10 : vector<32xf32> to vector<32x1xf32>
    %cst_7 = arith.constant 3.200000e+01 : f32
    %12 = vector.broadcast %cst_7 : f32 to vector<32x1xf32>
    %13 = arith.divf %11, %12 : vector<32x1xf32>
    %cst_8 = arith.constant 9.99999974E-6 : f32
    %14 = vector.broadcast %cst_8 : f32 to vector<32x1xf32>
    %15 = arith.addf %13, %14 : vector<32x1xf32>
    %16 = math.rsqrt %15 : vector<32x1xf32>
    %17 = vector.broadcast %16 : vector<32x1xf32> to vector<32x32xf32>
    %18 = arith.mulf %8, %17 : vector<32x32xf32>
    %19 = vector.broadcast %1 : vector<1x32xf32> to vector<32x32xf32>
    %20 = arith.mulf %18, %19 : vector<32x32xf32>
    %21 = vector.broadcast %2 : vector<1x32xf32> to vector<32x32xf32>
    %22 = arith.addf %20, %21 : vector<32x32xf32>
    %c0_9 = arith.constant 0 : index
    %c0_10 = arith.constant 0 : index
    %23 = vector.load %arg3[%c0_9, %c0_10] : memref<32x32xf32, #tpu.memory_space<vmem>>, vector<32x32xf32>
    %cst_11 = arith.constant dense<0.000000e+00> : vector<32x32xf32>
    %24 = tpu.matmul %22, %23, %cst_11 {dimension_numbers = #tpu.dot_dimension_numbers<[1], [0], [0], [1], [0, 0, 1, 1], [], []>} : vector<32x32xf32>, vector<32x32xf32>, vector<32x32xf32> -> vector<32x32xf32>
    %c0_12 = arith.constant 0 : index
    %c0_13 = arith.constant 0 : index
    %25 = vector.load %arg4[%c0_12, %c0_13] : memref<32x32xf32, #tpu.memory_space<vmem>>, vector<32x32xf32>
    %cst_14 = arith.constant dense<0.000000e+00> : vector<32x32xf32>
    %26 = tpu.matmul %22, %25, %cst_14 {dimension_numbers = #tpu.dot_dimension_numbers<[1], [0], [0], [1], [0, 0, 1, 1], [], []>} : vector<32x32xf32>, vector<32x32xf32>, vector<32x32xf32> -> vector<32x32xf32>
    %c0_15 = arith.constant 0 : index
    %c0_16 = arith.constant 0 : index
    %27 = vector.load %arg5[%c0_15, %c0_16] : memref<32x32xf32, #tpu.memory_space<vmem>>, vector<32x32xf32>
    %cst_17 = arith.constant dense<0.000000e+00> : vector<32x32xf32>
    %28 = tpu.matmul %22, %27, %cst_17 {dimension_numbers = #tpu.dot_dimension_numbers<[1], [0], [0], [1], [0, 0, 1, 1], [], []>} : vector<32x32xf32>, vector<32x32xf32>, vector<32x32xf32> -> vector<32x32xf32>
    %c0_18 = arith.constant 0 : index
    %c0_19 = arith.constant 0 : index
    %29 = vector.load %arg7[%c0_18, %c0_19] : memref<64x32xf32, #tpu.memory_space<vmem>>, vector<64x32xf32>
    %c0_20 = arith.constant 0 : index
    %c0_21 = arith.constant 0 : index
    %30 = vector.load %arg6[%c0_20, %c0_21] : memref<64x32xf32, #tpu.memory_space<vmem>>, vector<64x32xf32>
    %cst_22 = arith.constant dense<0.000000e+00> : vector<64x32xf32>
    %31 = tpu.matmul %30, %24, %cst_22 {dimension_numbers = #tpu.dot_dimension_numbers<[1], [0], [0], [1], [0, 0, 1, 1], [], []>} : vector<64x32xf32>, vector<32x32xf32>, vector<64x32xf32> -> vector<64x32xf32>
    %32 = arith.mulf %31, %29 : vector<64x32xf32>
    %c0_23 = arith.constant 0 : index
    %c0_24 = arith.constant 0 : index
    %33 = vector.load %arg6[%c0_23, %c0_24] : memref<64x32xf32, #tpu.memory_space<vmem>>, vector<64x32xf32>
    %cst_25 = arith.constant dense<0.000000e+00> : vector<64x32xf32>
    %34 = tpu.matmul %33, %26, %cst_25 {dimension_numbers = #tpu.dot_dimension_numbers<[1], [0], [0], [1], [0, 0, 1, 1], [], []>} : vector<64x32xf32>, vector<32x32xf32>, vector<64x32xf32> -> vector<64x32xf32>
    %35 = arith.mulf %34, %29 : vector<64x32xf32>
    %cst_26 = arith.constant dense<0.000000e+00> : vector<64x64xf32>
    %36 = tpu.matmul %32, %35, %cst_26 {dimension_numbers = #tpu.dot_dimension_numbers<[1], [1], [0], [0], [0, 0, 1, 0], [], []>} : vector<64x32xf32>, vector<64x32xf32>, vector<64x64xf32> -> vector<64x64xf32>
    %c0_27 = arith.constant 0 : index
    %c0_28 = arith.constant 0 : index
    %37 = vector.load %arg11[%c0_27, %c0_28] : memref<64x64xf32, #tpu.memory_space<vmem>>, vector<64x64xf32>
    %38 = arith.addf %36, %37 : vector<64x64xf32>
    %cst_29 = arith.constant dense<0xFF800000> : vector<64xf32>
    %39 = vector.multi_reduction <maximumf>, %38, %cst_29 [1] : vector<64x64xf32> to vector<64xf32>
    %40 = vector.shape_cast %39 : vector<64xf32> to vector<64x1xf32>
    %41 = vector.broadcast %40 : vector<64x1xf32> to vector<64x64xf32>
    %42 = arith.subf %38, %41 : vector<64x64xf32>
    %43 = math.exp %42 : vector<64x64xf32>
    %cst_30 = arith.constant dense<0.000000e+00> : vector<64xf32>
    %44 = vector.multi_reduction <add>, %43, %cst_30 [1] : vector<64x64xf32> to vector<64xf32>
    %45 = vector.shape_cast %44 : vector<64xf32> to vector<64x1xf32>
    %46 = vector.broadcast %45 : vector<64x1xf32> to vector<64x64xf32>
    %47 = arith.divf %43, %46 : vector<64x64xf32>
    %c0_31 = arith.constant 0 : index
    %c0_32 = arith.constant 0 : index
    %48 = vector.load %arg12[%c0_31, %c0_32] : memref<64x1xf32, #tpu.memory_space<vmem>>, vector<64x1xf32>
    %49 = vector.broadcast %48 : vector<64x1xf32> to vector<64x64xf32>
    %50 = arith.mulf %47, %49 : vector<64x64xf32>
    %cst_33 = arith.constant dense<0.000000e+00> : vector<64xf32>
    %51 = vector.multi_reduction <add>, %50, %cst_33 [0] : vector<64x64xf32> to vector<64xf32>
    %52 = vector.shape_cast %51 : vector<64xf32> to vector<1x64xf32>
    %53 = vector.shape_cast %52 : vector<1x64xf32> to vector<1x1x64xf32>
    %cst_34 = arith.constant dense<0xFF800000> : vector<1xf32>
    %54 = vector.multi_reduction <maximumf>, %53, %cst_34 [1, 2] : vector<1x1x64xf32> to vector<1xf32>
    %55 = vector.shape_cast %54 : vector<1xf32> to vector<1x1x1xf32>
    %56 = vector.extract %55[0, 0, 0] : f32 from vector<1x1x1xf32>
    %cst_35 = arith.constant dense<0.000000e+00> : vector<64xf32>
    %57 = vector.multi_reduction <add>, %50, %cst_35 [1] : vector<64x64xf32> to vector<64xf32>
    %58 = vector.shape_cast %57 : vector<64xf32> to vector<64x1xf32>
    %59 = vector.shape_cast %58 : vector<64x1xf32> to vector<1x64x1xf32>
    %cst_36 = arith.constant dense<0xFF800000> : vector<1xf32>
    %60 = vector.multi_reduction <maximumf>, %59, %cst_36 [1, 2] : vector<1x64x1xf32> to vector<1xf32>
    %61 = vector.shape_cast %60 : vector<1xf32> to vector<1x1x1xf32>
    %62 = vector.extract %61[0, 0, 0] : f32 from vector<1x1x1xf32>
    %63 = arith.mulf %56, %62 : f32
    %cst_37 = arith.constant 1.000000e+00 : f32
    %64 = arith.divf %cst_37, %63 : f32
    %cst_38 = arith.constant dense<0.000000e+00> : vector<64x32xf32>
    %65 = tpu.matmul %32, %26, %cst_38 {dimension_numbers = #tpu.dot_dimension_numbers<[1], [1], [0], [0], [0, 0, 1, 0], [], []>} : vector<64x32xf32>, vector<32x32xf32>, vector<64x32xf32> -> vector<64x32xf32>
    %c0_39 = arith.constant 0 : index
    %c0_40 = arith.constant 0 : index
    %66 = vector.load %arg15[%c0_39, %c0_40] : memref<64x32xf32, #tpu.memory_space<vmem>>, vector<64x32xf32>
    %67 = arith.addf %65, %66 : vector<64x32xf32>
    %cst_41 = arith.constant dense<0xFF800000> : vector<64xf32>
    %68 = vector.multi_reduction <maximumf>, %67, %cst_41 [1] : vector<64x32xf32> to vector<64xf32>
    %69 = vector.shape_cast %68 : vector<64xf32> to vector<64x1xf32>
    %70 = vector.broadcast %69 : vector<64x1xf32> to vector<64x32xf32>
    %71 = arith.subf %67, %70 : vector<64x32xf32>
    %72 = math.exp %71 : vector<64x32xf32>
    %cst_42 = arith.constant dense<0.000000e+00> : vector<64xf32>
    %73 = vector.multi_reduction <add>, %72, %cst_42 [1] : vector<64x32xf32> to vector<64xf32>
    %74 = vector.shape_cast %73 : vector<64xf32> to vector<64x1xf32>
    %75 = vector.broadcast %74 : vector<64x1xf32> to vector<64x32xf32>
    %76 = arith.divf %72, %75 : vector<64x32xf32>
    %cst_43 = arith.constant dense<0.000000e+00> : vector<64x32xf32>
    %77 = tpu.matmul %76, %28, %cst_43 {dimension_numbers = #tpu.dot_dimension_numbers<[1], [0], [0], [1], [0, 0, 1, 1], [], []>} : vector<64x32xf32>, vector<32x32xf32>, vector<64x32xf32> -> vector<64x32xf32>
    %78 = arith.mulf %77, %29 : vector<64x32xf32>
    %cst_44 = arith.constant dense<0.000000e+00> : vector<32x64xf32>
    %79 = tpu.matmul %24, %35, %cst_44 {dimension_numbers = #tpu.dot_dimension_numbers<[1], [1], [0], [0], [0, 0, 1, 0], [], []>} : vector<32x32xf32>, vector<64x32xf32>, vector<32x64xf32> -> vector<32x64xf32>
    %c0_45 = arith.constant 0 : index
    %c0_46 = arith.constant 0 : index
    %80 = vector.load %arg13[%c0_45, %c0_46] : memref<32x64xf32, #tpu.memory_space<vmem>>, vector<32x64xf32>
    %81 = arith.addf %79, %80 : vector<32x64xf32>
    %cst_47 = arith.constant dense<0xFF800000> : vector<32xf32>
    %82 = vector.multi_reduction <maximumf>, %81, %cst_47 [1] : vector<32x64xf32> to vector<32xf32>
    %83 = vector.shape_cast %82 : vector<32xf32> to vector<32x1xf32>
    %84 = vector.broadcast %83 : vector<32x1xf32> to vector<32x64xf32>
    %85 = arith.subf %81, %84 : vector<32x64xf32>
    %86 = math.exp %85 : vector<32x64xf32>
    %c0_48 = arith.constant 0 : index
    %c0_49 = arith.constant 0 : index
    %87 = vector.load %arg10[%c0_48, %c0_49] : memref<64x64xf32, #tpu.memory_space<vmem>>, vector<64x64xf32>
    %cst_50 = arith.constant dense<0.000000e+00> : vector<32x64xf32>
    %88 = tpu.matmul %86, %87, %cst_50 {dimension_numbers = #tpu.dot_dimension_numbers<[1], [0], [0], [1], [0, 0, 1, 1], [], []>} : vector<32x64xf32>, vector<64x64xf32>, vector<32x64xf32> -> vector<32x64xf32>
    %c0_51 = arith.constant 0 : index
    %c0_52 = arith.constant 0 : index
    %89 = vector.load %arg14[%c0_51, %c0_52] : memref<32x64xf32, #tpu.memory_space<vmem>>, vector<32x64xf32>
    %90 = arith.addf %88, %89 : vector<32x64xf32>
    %91 = arith.divf %86, %90 : vector<32x64xf32>
    %92 = tpu.concatenate %28, %28, %28, %28 in 0 : vector<32x32xf32>, vector<32x32xf32>, vector<32x32xf32>, vector<32x32xf32> -> vector<128x32xf32>
    %c0_53 = arith.constant 0 : index
    %c0_54 = arith.constant 0 : index
    %93 = vector.load %arg8[%c0_53, %c0_54] : memref<128x32xf32, #tpu.memory_space<vmem>>, vector<128x32xf32>
    %94 = arith.mulf %92, %93 : vector<128x32xf32>
    %c0_55 = arith.constant 0 : index
    %c0_56 = arith.constant 0 : index
    %95 = vector.load %arg16[%c0_55, %c0_56] : memref<32x128xf32, #tpu.memory_space<vmem>>, vector<32x128xf32>
    %cst_57 = arith.constant dense<0.000000e+00> : vector<32x32xf32>
    %96 = tpu.matmul %95, %94, %cst_57 {dimension_numbers = #tpu.dot_dimension_numbers<[1], [0], [0], [1], [0, 0, 1, 1], [], []>} : vector<32x128xf32>, vector<128x32xf32>, vector<32x32xf32> -> vector<32x32xf32>
    %c0_58 = arith.constant 0 : index
    %c0_59 = arith.constant 0 : index
    %97 = vector.load %arg9[%c0_58, %c0_59] : memref<64x64xf32, #tpu.memory_space<vmem>>, vector<64x64xf32>
    %cst_60 = arith.constant 7.000000e+00 : f32
    %98 = vector.broadcast %cst_60 : f32 to vector<64x64xf32>
    %99 = arith.mulf %98, %97 : vector<64x64xf32>
    %cst_61 = arith.constant 1.500000e+01 : f32
    %100 = vector.broadcast %cst_61 : f32 to vector<64x64xf32>
    %101 = arith.mulf %100, %97 : vector<64x64xf32>
    %cst_62 = arith.constant 1.300000e+01 : f32
    %102 = vector.broadcast %cst_62 : f32 to vector<64x64xf32>
    %103 = arith.mulf %102, %97 : vector<64x64xf32>
    %104 = tpu.transpose %50, [1, 0] : vector<64x64xf32> -> vector<64x64xf32>
    %105 = vector.broadcast %64 : f32 to vector<64x64xf32>
    %106 = arith.mulf %105, %104 : vector<64x64xf32>
    %cst_63 = arith.constant dense<0.000000e+00> : vector<64x64xf32>
    %107 = tpu.matmul %50, %106, %cst_63 {dimension_numbers = #tpu.dot_dimension_numbers<[1], [0], [0], [1], [0, 0, 1, 1], [], []>} : vector<64x64xf32>, vector<64x64xf32>, vector<64x64xf32> -> vector<64x64xf32>
    %108 = arith.subf %99, %107 : vector<64x64xf32>
    %cst_64 = arith.constant dense<0.000000e+00> : vector<64x64xf32>
    %109 = tpu.matmul %107, %108, %cst_64 {dimension_numbers = #tpu.dot_dimension_numbers<[1], [0], [0], [1], [0, 0, 1, 1], [], []>} : vector<64x64xf32>, vector<64x64xf32>, vector<64x64xf32> -> vector<64x64xf32>
    %110 = arith.subf %101, %109 : vector<64x64xf32>
    %cst_65 = arith.constant dense<0.000000e+00> : vector<64x64xf32>
    %111 = tpu.matmul %107, %110, %cst_65 {dimension_numbers = #tpu.dot_dimension_numbers<[1], [0], [0], [1], [0, 0, 1, 1], [], []>} : vector<64x64xf32>, vector<64x64xf32>, vector<64x64xf32> -> vector<64x64xf32>
    %112 = arith.subf %103, %111 : vector<64x64xf32>
    %cst_66 = arith.constant dense<0.000000e+00> : vector<64x64xf32>
    %113 = tpu.matmul %106, %112, %cst_66 {dimension_numbers = #tpu.dot_dimension_numbers<[1], [0], [0], [1], [0, 0, 1, 1], [], []>} : vector<64x64xf32>, vector<64x64xf32>, vector<64x64xf32> -> vector<64x64xf32>
    %cst_67 = arith.constant 2.500000e-01 : f32
    %114 = vector.broadcast %cst_67 : f32 to vector<64x64xf32>
    %115 = arith.mulf %114, %113 : vector<64x64xf32>
    %cst_68 = arith.constant dense<0.000000e+00> : vector<64x64xf32>
    %116 = tpu.matmul %50, %115, %cst_68 {dimension_numbers = #tpu.dot_dimension_numbers<[1], [0], [0], [1], [0, 0, 1, 1], [], []>} : vector<64x64xf32>, vector<64x64xf32>, vector<64x64xf32> -> vector<64x64xf32>
    %117 = arith.subf %99, %116 : vector<64x64xf32>
    %cst_69 = arith.constant dense<0.000000e+00> : vector<64x64xf32>
    %118 = tpu.matmul %116, %117, %cst_69 {dimension_numbers = #tpu.dot_dimension_numbers<[1], [0], [0], [1], [0, 0, 1, 1], [], []>} : vector<64x64xf32>, vector<64x64xf32>, vector<64x64xf32> -> vector<64x64xf32>
    %119 = arith.subf %101, %118 : vector<64x64xf32>
    %cst_70 = arith.constant dense<0.000000e+00> : vector<64x64xf32>
    %120 = tpu.matmul %116, %119, %cst_70 {dimension_numbers = #tpu.dot_dimension_numbers<[1], [0], [0], [1], [0, 0, 1, 1], [], []>} : vector<64x64xf32>, vector<64x64xf32>, vector<64x64xf32> -> vector<64x64xf32>
    %121 = arith.subf %103, %120 : vector<64x64xf32>
    %cst_71 = arith.constant dense<0.000000e+00> : vector<64x64xf32>
    %122 = tpu.matmul %115, %121, %cst_71 {dimension_numbers = #tpu.dot_dimension_numbers<[1], [0], [0], [1], [0, 0, 1, 1], [], []>} : vector<64x64xf32>, vector<64x64xf32>, vector<64x64xf32> -> vector<64x64xf32>
    %cst_72 = arith.constant 2.500000e-01 : f32
    %123 = vector.broadcast %cst_72 : f32 to vector<64x64xf32>
    %124 = arith.mulf %123, %122 : vector<64x64xf32>
    %cst_73 = arith.constant dense<0.000000e+00> : vector<64x64xf32>
    %125 = tpu.matmul %50, %124, %cst_73 {dimension_numbers = #tpu.dot_dimension_numbers<[1], [0], [0], [1], [0, 0, 1, 1], [], []>} : vector<64x64xf32>, vector<64x64xf32>, vector<64x64xf32> -> vector<64x64xf32>
    %126 = arith.subf %99, %125 : vector<64x64xf32>
    %cst_74 = arith.constant dense<0.000000e+00> : vector<64x64xf32>
    %127 = tpu.matmul %125, %126, %cst_74 {dimension_numbers = #tpu.dot_dimension_numbers<[1], [0], [0], [1], [0, 0, 1, 1], [], []>} : vector<64x64xf32>, vector<64x64xf32>, vector<64x64xf32> -> vector<64x64xf32>
    %128 = arith.subf %101, %127 : vector<64x64xf32>
    %cst_75 = arith.constant dense<0.000000e+00> : vector<64x64xf32>
    %129 = tpu.matmul %125, %128, %cst_75 {dimension_numbers = #tpu.dot_dimension_numbers<[1], [0], [0], [1], [0, 0, 1, 1], [], []>} : vector<64x64xf32>, vector<64x64xf32>, vector<64x64xf32> -> vector<64x64xf32>
    %130 = arith.subf %103, %129 : vector<64x64xf32>
    %cst_76 = arith.constant dense<0.000000e+00> : vector<64x64xf32>
    %131 = tpu.matmul %124, %130, %cst_76 {dimension_numbers = #tpu.dot_dimension_numbers<[1], [0], [0], [1], [0, 0, 1, 1], [], []>} : vector<64x64xf32>, vector<64x64xf32>, vector<64x64xf32> -> vector<64x64xf32>
    %cst_77 = arith.constant 2.500000e-01 : f32
    %132 = vector.broadcast %cst_77 : f32 to vector<64x64xf32>
    %133 = arith.mulf %132, %131 : vector<64x64xf32>
    %cst_78 = arith.constant dense<0.000000e+00> : vector<64x64xf32>
    %134 = tpu.matmul %50, %133, %cst_78 {dimension_numbers = #tpu.dot_dimension_numbers<[1], [0], [0], [1], [0, 0, 1, 1], [], []>} : vector<64x64xf32>, vector<64x64xf32>, vector<64x64xf32> -> vector<64x64xf32>
    %135 = arith.subf %99, %134 : vector<64x64xf32>
    %cst_79 = arith.constant dense<0.000000e+00> : vector<64x64xf32>
    %136 = tpu.matmul %134, %135, %cst_79 {dimension_numbers = #tpu.dot_dimension_numbers<[1], [0], [0], [1], [0, 0, 1, 1], [], []>} : vector<64x64xf32>, vector<64x64xf32>, vector<64x64xf32> -> vector<64x64xf32>
    %137 = arith.subf %101, %136 : vector<64x64xf32>
    %cst_80 = arith.constant dense<0.000000e+00> : vector<64x64xf32>
    %138 = tpu.matmul %134, %137, %cst_80 {dimension_numbers = #tpu.dot_dimension_numbers<[1], [0], [0], [1], [0, 0, 1, 1], [], []>} : vector<64x64xf32>, vector<64x64xf32>, vector<64x64xf32> -> vector<64x64xf32>
    %139 = arith.subf %103, %138 : vector<64x64xf32>
    %cst_81 = arith.constant dense<0.000000e+00> : vector<64x64xf32>
    %140 = tpu.matmul %133, %139, %cst_81 {dimension_numbers = #tpu.dot_dimension_numbers<[1], [0], [0], [1], [0, 0, 1, 1], [], []>} : vector<64x64xf32>, vector<64x64xf32>, vector<64x64xf32> -> vector<64x64xf32>
    %cst_82 = arith.constant 2.500000e-01 : f32
    %141 = vector.broadcast %cst_82 : f32 to vector<64x64xf32>
    %142 = arith.mulf %141, %140 : vector<64x64xf32>
    %cst_83 = arith.constant dense<0.000000e+00> : vector<64x64xf32>
    %143 = tpu.matmul %50, %142, %cst_83 {dimension_numbers = #tpu.dot_dimension_numbers<[1], [0], [0], [1], [0, 0, 1, 1], [], []>} : vector<64x64xf32>, vector<64x64xf32>, vector<64x64xf32> -> vector<64x64xf32>
    %144 = arith.subf %99, %143 : vector<64x64xf32>
    %cst_84 = arith.constant dense<0.000000e+00> : vector<64x64xf32>
    %145 = tpu.matmul %143, %144, %cst_84 {dimension_numbers = #tpu.dot_dimension_numbers<[1], [0], [0], [1], [0, 0, 1, 1], [], []>} : vector<64x64xf32>, vector<64x64xf32>, vector<64x64xf32> -> vector<64x64xf32>
    %146 = arith.subf %101, %145 : vector<64x64xf32>
    %cst_85 = arith.constant dense<0.000000e+00> : vector<64x64xf32>
    %147 = tpu.matmul %143, %146, %cst_85 {dimension_numbers = #tpu.dot_dimension_numbers<[1], [0], [0], [1], [0, 0, 1, 1], [], []>} : vector<64x64xf32>, vector<64x64xf32>, vector<64x64xf32> -> vector<64x64xf32>
    %148 = arith.subf %103, %147 : vector<64x64xf32>
    %cst_86 = arith.constant dense<0.000000e+00> : vector<64x64xf32>
    %149 = tpu.matmul %142, %148, %cst_86 {dimension_numbers = #tpu.dot_dimension_numbers<[1], [0], [0], [1], [0, 0, 1, 1], [], []>} : vector<64x64xf32>, vector<64x64xf32>, vector<64x64xf32> -> vector<64x64xf32>
    %cst_87 = arith.constant 2.500000e-01 : f32
    %150 = vector.broadcast %cst_87 : f32 to vector<64x64xf32>
    %151 = arith.mulf %150, %149 : vector<64x64xf32>
    %cst_88 = arith.constant dense<0.000000e+00> : vector<64x64xf32>
    %152 = tpu.matmul %50, %151, %cst_88 {dimension_numbers = #tpu.dot_dimension_numbers<[1], [0], [0], [1], [0, 0, 1, 1], [], []>} : vector<64x64xf32>, vector<64x64xf32>, vector<64x64xf32> -> vector<64x64xf32>
    %153 = arith.subf %99, %152 : vector<64x64xf32>
    %cst_89 = arith.constant dense<0.000000e+00> : vector<64x64xf32>
    %154 = tpu.matmul %152, %153, %cst_89 {dimension_numbers = #tpu.dot_dimension_numbers<[1], [0], [0], [1], [0, 0, 1, 1], [], []>} : vector<64x64xf32>, vector<64x64xf32>, vector<64x64xf32> -> vector<64x64xf32>
    %155 = arith.subf %101, %154 : vector<64x64xf32>
    %cst_90 = arith.constant dense<0.000000e+00> : vector<64x64xf32>
    %156 = tpu.matmul %152, %155, %cst_90 {dimension_numbers = #tpu.dot_dimension_numbers<[1], [0], [0], [1], [0, 0, 1, 1], [], []>} : vector<64x64xf32>, vector<64x64xf32>, vector<64x64xf32> -> vector<64x64xf32>
    %157 = arith.subf %103, %156 : vector<64x64xf32>
    %cst_91 = arith.constant dense<0.000000e+00> : vector<64x64xf32>
    %158 = tpu.matmul %151, %157, %cst_91 {dimension_numbers = #tpu.dot_dimension_numbers<[1], [0], [0], [1], [0, 0, 1, 1], [], []>} : vector<64x64xf32>, vector<64x64xf32>, vector<64x64xf32> -> vector<64x64xf32>
    %cst_92 = arith.constant 2.500000e-01 : f32
    %159 = vector.broadcast %cst_92 : f32 to vector<64x64xf32>
    %160 = arith.mulf %159, %158 : vector<64x64xf32>
    %cst_93 = arith.constant dense<0.000000e+00> : vector<32x64xf32>
    %161 = tpu.matmul %91, %160, %cst_93 {dimension_numbers = #tpu.dot_dimension_numbers<[1], [0], [0], [1], [0, 0, 1, 1], [], []>} : vector<32x64xf32>, vector<64x64xf32>, vector<32x64xf32> -> vector<32x64xf32>
    %cst_94 = arith.constant dense<0.000000e+00> : vector<32x32xf32>
    %162 = tpu.matmul %161, %78, %cst_94 {dimension_numbers = #tpu.dot_dimension_numbers<[1], [0], [0], [1], [0, 0, 1, 1], [], []>} : vector<32x64xf32>, vector<64x32xf32>, vector<32x32xf32> -> vector<32x32xf32>
    %163 = arith.addf %162, %96 : vector<32x32xf32>
    %164 = arith.addf %0, %163 : vector<32x32xf32>
    %c0_95 = arith.constant 0 : index
    %c0_96 = arith.constant 0 : index
    %165 = vector.load %arg17[%c0_95, %c0_96] : memref<1x32xf32, #tpu.memory_space<vmem>>, vector<1x32xf32>
    %c0_97 = arith.constant 0 : index
    %c0_98 = arith.constant 0 : index
    %166 = vector.load %arg18[%c0_97, %c0_98] : memref<1x32xf32, #tpu.memory_space<vmem>>, vector<1x32xf32>
    %cst_99 = arith.constant dense<0.000000e+00> : vector<32xf32>
    %167 = vector.multi_reduction <add>, %164, %cst_99 [1] : vector<32x32xf32> to vector<32xf32>
    %168 = vector.shape_cast %167 : vector<32xf32> to vector<32x1xf32>
    %cst_100 = arith.constant 3.200000e+01 : f32
    %169 = vector.broadcast %cst_100 : f32 to vector<32x1xf32>
    %170 = arith.divf %168, %169 : vector<32x1xf32>
    %171 = vector.broadcast %170 : vector<32x1xf32> to vector<32x32xf32>
    %172 = arith.subf %164, %171 : vector<32x32xf32>
    %173 = arith.mulf %172, %172 : vector<32x32xf32>
    %cst_101 = arith.constant dense<0.000000e+00> : vector<32xf32>
    %174 = vector.multi_reduction <add>, %173, %cst_101 [1] : vector<32x32xf32> to vector<32xf32>
    %175 = vector.shape_cast %174 : vector<32xf32> to vector<32x1xf32>
    %cst_102 = arith.constant 3.200000e+01 : f32
    %176 = vector.broadcast %cst_102 : f32 to vector<32x1xf32>
    %177 = arith.divf %175, %176 : vector<32x1xf32>
    %cst_103 = arith.constant 9.99999974E-6 : f32
    %178 = vector.broadcast %cst_103 : f32 to vector<32x1xf32>
    %179 = arith.addf %177, %178 : vector<32x1xf32>
    %180 = math.rsqrt %179 : vector<32x1xf32>
    %181 = vector.broadcast %180 : vector<32x1xf32> to vector<32x32xf32>
    %182 = arith.mulf %172, %181 : vector<32x32xf32>
    %183 = vector.broadcast %165 : vector<1x32xf32> to vector<32x32xf32>
    %184 = arith.mulf %182, %183 : vector<32x32xf32>
    %185 = vector.broadcast %166 : vector<1x32xf32> to vector<32x32xf32>
    %186 = arith.addf %184, %185 : vector<32x32xf32>
    %c0_104 = arith.constant 0 : index
    %c0_105 = arith.constant 0 : index
    %187 = vector.load %arg19[%c0_104, %c0_105] : memref<32x128xf32, #tpu.memory_space<vmem>>, vector<32x128xf32>
    %cst_106 = arith.constant dense<0.000000e+00> : vector<32x128xf32>
    %188 = tpu.matmul %186, %187, %cst_106 {dimension_numbers = #tpu.dot_dimension_numbers<[1], [0], [0], [1], [0, 0, 1, 1], [], []>} : vector<32x32xf32>, vector<32x128xf32>, vector<32x128xf32> -> vector<32x128xf32>
    %c0_107 = arith.constant 0 : index
    %c0_108 = arith.constant 0 : index
    %189 = vector.load %arg20[%c0_107, %c0_108] : memref<1x128xf32, #tpu.memory_space<vmem>>, vector<1x128xf32>
    %190 = vector.broadcast %189 : vector<1x128xf32> to vector<32x128xf32>
    %191 = arith.addf %188, %190 : vector<32x128xf32>
    %cst_109 = arith.constant 5.000000e-01 : f32
    %192 = vector.broadcast %cst_109 : f32 to vector<32x128xf32>
    %193 = arith.mulf %192, %191 : vector<32x128xf32>
    %cst_110 = arith.constant 0.707106769 : f32
    %194 = vector.broadcast %cst_110 : f32 to vector<32x128xf32>
    %195 = arith.mulf %191, %194 : vector<32x128xf32>
    %cst_111 = arith.constant 0.000000e+00 : f32
    %196 = vector.broadcast %cst_111 : f32 to vector<32x128xf32>
    %197 = arith.cmpf oge, %195, %196 : vector<32x128xf32>
    %cst_112 = arith.constant 1.000000e+00 : f32
    %cst_113 = arith.constant -1.000000e+00 : f32
    %198 = vector.broadcast %cst_112 : f32 to vector<32x128xf32>
    %199 = vector.broadcast %cst_113 : f32 to vector<32x128xf32>
    %200 = arith.select %197, %198, %199 : vector<32x128xi1>, vector<32x128xf32>
    %201 = math.absf %195 : vector<32x128xf32>
    %cst_114 = arith.constant 0.327591091 : f32
    %202 = vector.broadcast %cst_114 : f32 to vector<32x128xf32>
    %203 = arith.mulf %202, %201 : vector<32x128xf32>
    %cst_115 = arith.constant 1.000000e+00 : f32
    %204 = vector.broadcast %cst_115 : f32 to vector<32x128xf32>
    %205 = arith.addf %204, %203 : vector<32x128xf32>
    %cst_116 = arith.constant 1.000000e+00 : f32
    %206 = vector.broadcast %cst_116 : f32 to vector<32x128xf32>
    %207 = arith.divf %206, %205 : vector<32x128xf32>
    %cst_117 = arith.constant 1.06140542 : f32
    %208 = vector.broadcast %cst_117 : f32 to vector<32x128xf32>
    %209 = arith.mulf %207, %208 : vector<32x128xf32>
    %cst_118 = arith.constant -1.45315206 : f32
    %210 = vector.broadcast %cst_118 : f32 to vector<32x128xf32>
    %211 = arith.addf %210, %209 : vector<32x128xf32>
    %212 = arith.mulf %207, %211 : vector<32x128xf32>
    %cst_119 = arith.constant 1.42141378 : f32
    %213 = vector.broadcast %cst_119 : f32 to vector<32x128xf32>
    %214 = arith.addf %213, %212 : vector<32x128xf32>
    %215 = arith.mulf %207, %214 : vector<32x128xf32>
    %cst_120 = arith.constant -0.284496725 : f32
    %216 = vector.broadcast %cst_120 : f32 to vector<32x128xf32>
    %217 = arith.addf %216, %215 : vector<32x128xf32>
    %218 = arith.mulf %207, %217 : vector<32x128xf32>
    %cst_121 = arith.constant 0.254829586 : f32
    %219 = vector.broadcast %cst_121 : f32 to vector<32x128xf32>
    %220 = arith.addf %219, %218 : vector<32x128xf32>
    %221 = arith.mulf %207, %220 : vector<32x128xf32>
    %cst_122 = arith.constant 0.000000e+00 : f32
    %222 = vector.broadcast %cst_122 : f32 to vector<32x128xf32>
    %223 = arith.subf %222, %201 : vector<32x128xf32>
    %224 = arith.mulf %223, %201 : vector<32x128xf32>
    %225 = math.exp %224 : vector<32x128xf32>
    %226 = arith.mulf %221, %225 : vector<32x128xf32>
    %cst_123 = arith.constant 1.000000e+00 : f32
    %227 = vector.broadcast %cst_123 : f32 to vector<32x128xf32>
    %228 = arith.subf %227, %226 : vector<32x128xf32>
    %229 = arith.mulf %200, %228 : vector<32x128xf32>
    %cst_124 = arith.constant 1.000000e+00 : f32
    %230 = vector.broadcast %cst_124 : f32 to vector<32x128xf32>
    %231 = arith.addf %230, %229 : vector<32x128xf32>
    %232 = arith.mulf %193, %231 : vector<32x128xf32>
    %c0_125 = arith.constant 0 : index
    %c0_126 = arith.constant 0 : index
    %233 = vector.load %arg21[%c0_125, %c0_126] : memref<128x32xf32, #tpu.memory_space<vmem>>, vector<128x32xf32>
    %cst_127 = arith.constant dense<0.000000e+00> : vector<32x32xf32>
    %234 = tpu.matmul %232, %233, %cst_127 {dimension_numbers = #tpu.dot_dimension_numbers<[1], [0], [0], [1], [0, 0, 1, 1], [], []>} : vector<32x128xf32>, vector<128x32xf32>, vector<32x32xf32> -> vector<32x32xf32>
    %235 = arith.addf %164, %234 : vector<32x32xf32>
    %c0_128 = arith.constant 0 : index
    %c0_129 = arith.constant 0 : index
    %236 = vector.load %arg22[%c0_128, %c0_129] : memref<1x32xf32, #tpu.memory_space<vmem>>, vector<1x32xf32>
    %237 = vector.broadcast %236 : vector<1x32xf32> to vector<32x32xf32>
    %238 = arith.addf %235, %237 : vector<32x32xf32>
    %c0_130 = arith.constant 0 : index
    %c0_131 = arith.constant 0 : index
    %239 = vector.load %arg23[%c0_130, %c0_131] : memref<32x32xf32, #tpu.memory_space<vmem>>, vector<32x32xf32>
    tpu.vector_store %arg23[%c0_130, %c0_131], %238 {strides = array<i32>} : memref<32x32xf32, #tpu.memory_space<vmem>>, vector<32x32xf32>,
    return
  }
}

</mosaic_0001>

<bundles_post_ra>
// kernel: block_forward.1
= control target key start
LH: loop header
LB: loop body
LE: loop exit
PB: predicated region body
PF: predicated region fallthrough
CT: control target
= control target key end

     0   :  { %vm80_vm0 = vcmask 261120   ;;  %v3886_v8 = vmov 32.0   ;;  %vm536_vm14 = vcmask 523264   ;;  %s5831_s0 = inlined_call_operand.vmem [shape: f32[32,32], index: 0, kind: input, shape index: {}]   ;;  %s5832_s1 = inlined_call_operand.vmem [shape: f32[1,32], index: 1, kind: input, shape index: {}]   ;;  %s5833_s2 = inlined_call_operand.vmem [shape: f32[1,32], index: 2, kind: input, shape index: {}]   ;;  %s5834_s3 = inlined_call_operand.vmem [shape: f32[32,32], index: 3, kind: input, shape index: {}]   ;;  %s5835_s4 = inlined_call_operand.vmem [shape: f32[32,32], index: 4, kind: input, shape index: {}]   ;;  %s5836_s5 = inlined_call_operand.vmem [shape: f32[32,32], index: 5, kind: input, shape index: {}]   ;;  %s5837_s6 = inlined_call_operand.vmem [shape: f32[64,32], index: 6, kind: input, shape index: {}]   ;;  %s5838_s8 = inlined_call_operand.vmem [shape: f32[128,32], index: 8, kind: input, shape index: {}]   ;;  %s5839_s7 = inlined_call_operand.vmem [shape: f32[64,32], index: 7, kind: input, shape index: {}]   ;;  %s5840_s11 = inlined_call_operand.vmem [shape: f32[64,64], index: 11, kind: input, shape index: {}]   ;;  %s5841_s12 = inlined_call_operand.vmem [shape: f32[64,1], index: 12, kind: input, shape index: {}]   ;;  %s5842_s13 = inlined_call_operand.vmem [shape: f32[32,64], index: 13, kind: input, shape index: {}]   ;;  %s5843_s15 = inlined_call_operand.vmem [shape: f32[64,32], index: 15, kind: input, shape index: {}]   ;;  %s5844_s10 = inlined_call_operand.vmem [shape: f32[64,64], index: 10, kind: input, shape index: {}]   ;;  %s5845_s9 = inlined_call_operand.vmem [shape: f32[64,64], index: 9, kind: input, shape index: {}]   ;;  %s5846_s16 = inlined_call_operand.vmem [shape: f32[32,128], index: 16, kind: input, shape index: {}]   ;;  %s5847_s14 = inlined_call_operand.vmem [shape: f32[32,64], index: 14, kind: input, shape index: {}]   ;;  %s5848_s17 = inlined_call_operand.vmem [shape: f32[1,32], index: 17, kind: input, shape index: {}]   ;;  %s5849_s18 = inlined_call_operand.vmem [shape: f32[1,32], index: 18, kind: input, shape index: {}]   ;;  %s5850_s20 = inlined_call_operand.vmem [shape: f32[1,128], index: 20, kind: input, shape index: {}]   ;;  %s5851_s19 = inlined_call_operand.vmem [shape: f32[32,128], index: 19, kind: input, shape index: {}]   ;;  %s5852_s22 = inlined_call_operand.vmem [shape: f32[1,32], index: 22, kind: input, shape index: {}]   ;;  %s5853_s21 = inlined_call_operand.vmem [shape: f32[128,32], index: 21, kind: input, shape index: {}]   ;;  %s5854_s23 = inlined_call_operand.vmem [shape: f32[32,32], index: 23, kind: output, shape index: {}]  }
   0x1   :  { %5867 = sst [smem:[#allocation22_spill]] %s5831_s0  ;;  %3758 = vrcp.f32 %v3886_v8 }
   0x2   :  { %5868 = sst [smem:[#allocation23_spill]] %s5832_s1 }
   0x3   :  { %5869 = sst [smem:[#allocation24_spill]] %s5833_s2 }
   0x4   :  { %5870 = sst [smem:[#allocation25_spill]] %s5834_s3 }
   0x5   :  { %5871 = sst [smem:[#allocation26_spill]] %s5835_s4 }
   0x6   :  { %5872 = sst [smem:[#allocation27_spill]] %s5836_s5 }
   0x7   :  { %5873 = sst [smem:[#allocation28_spill]] %s5837_s6  ;;  %v3759_v9 = vpop.eup %3758 }
   0x8   :  { %5874 = sst [smem:[#allocation29_spill]] %s5838_s8  ;;  %v94_v10 = vmul.f32 32.0, %v3759_v9  ;;  %vm98_vm1 = vweird.f32 %v3759_v9 }
   0x9   :  { %s5875_s24 = sld [smem:[#allocation22_spill]] }
   0xa   :  { %v95_v11 = vsub.f32 1.0, %v94_v10  ;;  %s5877_s28 = sld [smem:[#allocation25_spill]] }
   0xb   :  { %s5878_s0 = sld [smem:[#allocation26_spill]] }
   0xc   :  { %v96_v12 = vmul.f32 %v3759_v9, %v95_v11  ;;  %s5879_s25 = sld [smem:[#allocation27_spill]] }
   0xd   :  { %s5881_s4 = sld [smem:[#allocation24_spill]] }
   0xe   :  { %v97_v13 = vadd.f32 %v3759_v9, %v96_v12  ;;  %s5884_s1 = sld [smem:[#allocation28_spill]] }
   0xf   :  { %v76_v0 = vld [vmem:[%s5875_s24 + $0x10] sm:$0xff]  ;;  %v74_v1 = vld [vmem:[%s5875_s24] sm:$0xff]  ;;  %v77_v4 = vld [vmem:[%s5875_s24 + $0x18] sm:$0xff]  ;;  %s5885_s6 = sld [smem:[#allocation29_spill]] }
  0x10   :  { %v87_v2 = vsel %vm80_vm0, %v76_v0, 0.0  ;;  %v81_v3 = vsel %vm80_vm0, %v74_v1, 0.0  ;;  %v75_v5 = vld [vmem:[%s5875_s24 + $0x8] sm:$0xff]  ;;  %v90_v6 = vsel %vm80_vm0, %v77_v4, 0.0  ;;  %v4025_v14 = vsel %vm98_vm1, %v3759_v9, %v97_v13  ;;  %v193_v35 = vld [vmem:[%s5877_s28 + $0x18] sm:$0xff]  ;;  %v192_v38 = vld [vmem:[%s5877_s28 + $0x10] sm:$0xff] }
  0x11   :  { %88 = vadd.xlane.f32.xlu1 %v87_v2  ;;  %82 = vadd.xlane.f32.xlu0 %v81_v3  ;;  %v84_v7 = vsel %vm80_vm0, %v75_v5, 0.0  ;;  %5876 = vst [vmem:[#allocation2_spill] sm:$0xff] %v4025_v14  ;;  %v238_v36 = vld [vmem:[%s5878_s0 + $0x18] sm:$0xff]  ;;  %v237_v39 = vld [vmem:[%s5878_s0 + $0x10] sm:$0xff]  ;;  %v191_v41 = vld [vmem:[%s5877_s28 + $0x8] sm:$0xff] }
  0x12   :  { %v271_v37 = vld [vmem:[%s5879_s25 + $0x18] sm:$0xff]  ;;  %218 = vmatpush.msra.mxu0 %v193_v35  ;;  %251 = vmatpush.msra.mxu1 %v238_v36  ;;  %v270_v40 = vld [vmem:[%s5879_s25 + $0x10] sm:$0xff]  ;;  %v236_v42 = vld [vmem:[%s5878_s0 + $0x8] sm:$0xff] }
  0x13   :  { %284 = vmatpush.msra.mxu2 %v271_v37  ;;  %v269_v43 = vld [vmem:[%s5879_s25 + $0x8] sm:$0xff]  ;;  %v190_v44 = vld [vmem:[%s5877_s28] sm:$0xff] }
  0x14   :  { %219 = vmatpush.msra.mxu0 %v192_v38  ;;  %252 = vmatpush.msra.mxu1 %v237_v39  ;;  %v235_v45 = vld [vmem:[%s5878_s0] sm:$0xff] }
  0x15   :  { %285 = vmatpush.msra.mxu2 %v270_v40  ;;  %v268_v46 = vld [vmem:[%s5879_s25] sm:$0xff]  ;;  %s5880_s25 = sld [smem:[#allocation23_spill]] }
  0x16   :  { %220 = vmatpush.msra.mxu0 %v191_v41  ;;  %253 = vmatpush.msra.mxu1 %v236_v42  ;;  %v3753_v13 = vld [vmem:[%s5881_s4] ss:$0 sm:$0xff] }
  0x17   :  { %286 = vmatpush.msra.mxu2 %v269_v43 }
  0x18   :  { %221 = vmatpush.msra.mxu0 %v190_v44  ;;  %254 = vmatpush.msra.mxu1 %v235_v45 }
  0x19   :  { %91 = vadd.xlane.f32.xlu1 %v90_v6  ;;  %85 = vadd.xlane.f32.xlu0 %v84_v7 }
  0x1a   :  { %287 = vmatpush.msra.mxu2 %v268_v46 }
  0x1b   :  { %v3752_v9 = vld [vmem:[%s5880_s25] ss:$0 sm:$0xff] }
  0x84   :  { %v89_v15 = vpop.xlane.xlu1 %88  ;;  %v83_v16 = vpop.xlane.xlu0 %82 }
  0x85   :  { %v102_v17 = vmul.f32 %v4025_v14, %v89_v15  ;;  %v100_v18 = vmul.f32 %v4025_v14, %v83_v16 }
  0x87   :  { %v4029_v19 = vsub.f32 %v76_v0, %v102_v17  ;;  %v4031_v20 = vsub.f32 %v74_v1, %v100_v18 }
  0x89   :  { %v110_v21 = vmul.f32 %v4029_v19, %v4029_v19  ;;  %v108_v22 = vmul.f32 %v4031_v20, %v4031_v20 }
  0x8b   :  { %v118_v23 = vsel %vm80_vm0, %v110_v21, 0.0  ;;  %v112_v24 = vsel %vm80_vm0, %v108_v22, 0.0 }
  0x8c   :  { %v92_v25 = vpop.xlane.xlu1 %91  ;;  %119 = vadd.xlane.f32.xlu0 %v118_v23  ;;  %113 = vadd.xlane.f32.xlu2 %v112_v24  ;;  %v86_v26 = vpop.xlane.xlu0 %85  ;;  %v1365_v24 = vld [vmem:[%s5885_s6] sm:$0xff] }
  0x8d   :  { %v103_v27 = vmul.f32 %v4025_v14, %v92_v25  ;;  %v101_v28 = vmul.f32 %v4025_v14, %v86_v26 }
  0x8f   :  { %v4041_v29 = vsub.f32 %v77_v4, %v103_v27  ;;  %v4043_v30 = vsub.f32 %v75_v5, %v101_v28 }
  0x91   :  { %v111_v31 = vmul.f32 %v4041_v29, %v4041_v29  ;;  %v109_v32 = vmul.f32 %v4043_v30, %v4043_v30 }
  0x93   :  { %v121_v33 = vsel %vm80_vm0, %v111_v31, 0.0  ;;  %v115_v34 = vsel %vm80_vm0, %v109_v32, 0.0 }
  0x94   :  { %122 = vadd.xlane.f32.xlu1 %v121_v33  ;;  %116 = vadd.xlane.f32.xlu2 %v115_v34 }
  0xff   :  { %v114_v47 = vpop.xlane.xlu2 %113  ;;  %v120_v48 = vpop.xlane.xlu0 %119 }
 0x100   :  { %v124_v49 = vmul.f32 %v114_v47, %v4025_v14  ;;  %v126_v50 = vmul.f32 %v120_v48, %v4025_v14 }
 0x102   :  { %v128_v51 = vadd.f32 1e-05, %v124_v49  ;;  %v130_v52 = vadd.f32 1e-05, %v126_v50  ;;  %v309_v50 = vld [vmem:[%s5884_s1] sm:$0xff] }
 0x104   :  { %3760 = vrsqrt.f32 %v128_v51  ;;  %vm138_vm3 = vweird.f32 %v128_v51  ;;  %vm158_vm5 = vweird.f32 %v130_v52 }
 0x105   :  { %3762 = vrsqrt.f32 %v130_v52 }
 0x107   :  { %v123_v53 = vpop.xlane.xlu1 %122  ;;  %v117_v54 = vpop.xlane.xlu2 %116 }
 0x108   :  { %v127_v55 = vmul.f32 %v123_v53, %v4025_v14  ;;  %v125_v56 = vmul.f32 %v117_v54, %v4025_v14  ;;  %v1379_v53 = vld [vmem:[%s5885_s6 + $0x70] sm:$0xff] }
 0x10a   :  { %v3761_v57 = vpop.eup %3760  ;;  %v131_v58 = vadd.f32 1e-05, %v127_v55  ;;  %v129_v59 = vadd.f32 1e-05, %v125_v56  ;;  %v310_v55 = vld [vmem:[%s5884_s1 + $0x8] sm:$0xff] }
 0x10b   :  { %v3763_v60 = vpop.eup %3762  ;;  %v133_v61 = vmul.f32 %v3761_v57, %v128_v51  ;;  %vm139_vm2 = vweird.f32 %v3761_v57  ;;  %v1378_v56 = vld [vmem:[%s5885_s6 + $0x68] sm:$0xff] }
 0x10c   :  { %v153_v62 = vmul.f32 %v3763_v60, %v130_v52  ;;  %3764 = vrsqrt.f32 %v131_v58  ;;  %vm140_vm4 = vmor %vm138_vm3, %vm139_vm2  ;;  %vm159_vm6 = vweird.f32 %v3763_v60  ;;  %vm148_vm9 = vweird.f32 %v129_v59  ;;  %v1380_v52 = vld [vmem:[%s5885_s6 + $0x78] sm:$0xff] }
 0x10d   :  { %v134_v63 = vmul.f32 %v3761_v57, %v133_v61  ;;  %3766 = vrsqrt.f32 %v129_v59  ;;  %vm4098_vm8 = vmor %vm158_vm5, %vm159_vm6  ;;  %vm168_vm11 = vweird.f32 %v131_v58 }
 0x10e   :  { %v154_v1 = vmul.f32 %v3763_v60, %v153_v62  ;;  %v1375_v62 = vld [vmem:[%s5885_s6 + $0x50] sm:$0xff] }
 0x10f   :  { %v135_v0 = vmul.f32 0.5, %v134_v63 }
 0x110   :  { %v155_v6 = vmul.f32 0.5, %v154_v1  ;;  %v1374_v1 = vld [vmem:[%s5885_s6 + $0x48] sm:$0xff] }
 0x111   :  { %v136_v2 = vsub.f32 1.5, %v135_v0  ;;  %v311_v0 = vld [vmem:[%s5884_s1 + $0x10] sm:$0xff] }
 0x112   :  { %v3765_v3 = vpop.eup %3764  ;;  %v156_v15 = vsub.f32 1.5, %v155_v6 }
 0x113   :  { %v3767_v4 = vpop.eup %3766  ;;  %v137_v5 = vmul.f32 %v3761_v57, %v136_v2  ;;  %v163_v7 = vmul.f32 %v3765_v3, %v131_v58  ;;  %vm169_vm12 = vweird.f32 %v3765_v3  ;;  %v1377_v58 = vld [vmem:[%s5885_s6 + $0x60] sm:$0xff] }
 0x114   :  { %v143_v8 = vmul.f32 %v3767_v4, %v129_v59  ;;  %vm149_vm7 = vweird.f32 %v3767_v4  ;;  %v157_v23 = vmul.f32 %v3763_v60, %v156_v15  ;;  %vm170_vm13 = vmor %vm168_vm11, %vm169_vm12  ;;  %v1368_v15 = vld [vmem:[%s5885_s6 + $0x18] sm:$0xff] }
 0x115   :  { %v141_v10 = vsel %vm140_vm4, %v3761_v57, %v137_v5  ;;  %v164_v16 = vmul.f32 %v3765_v3, %v163_v7  ;;  %vm150_vm10 = vmor %vm148_vm9, %vm149_vm7  ;;  %v1372_v5 = vld [vmem:[%s5885_s6 + $0x38] sm:$0xff]  ;;  %v1371_v7 = vld [vmem:[%s5885_s6 + $0x30] sm:$0xff] }
 0x116   :  { %v144_v11 = vmul.f32 %v3767_v4, %v143_v8  ;;  %v172_v12 = vmul.f32 %v141_v10, %v4031_v20  ;;  %v161_v28 = vsel %vm4098_vm8, %v3763_v60, %v157_v23  ;;  %v1376_v60 = vld [vmem:[%s5885_s6 + $0x58] sm:$0xff]  ;;  %v1370_v10 = vld [vmem:[%s5885_s6 + $0x28] sm:$0xff] }
 0x117   :  { %v165_v25 = vmul.f32 0.5, %v164_v16  ;;  %v174_v34 = vmul.f32 %v161_v28, %v4029_v19  ;;  %v316_v28 = vld [vmem:[%s5884_s1 + $0x38] sm:$0xff] }
 0x118   :  { %v145_v17 = vmul.f32 0.5, %v144_v11  ;;  %v179_v18 = vmul.f32 %v3752_v9, %v172_v12  ;;  %v1369_v12 = vld [vmem:[%s5885_s6 + $0x20] sm:$0xff] }
 0x119   :  { %v166_v31 = vsub.f32 1.5, %v165_v25  ;;  %v181_v36 = vmul.f32 %v3752_v9, %v174_v34 }
 0x11a   :  { %v146_v21 = vsub.f32 1.5, %v145_v17  ;;  %v186_v22 = vadd.f32 %v3753_v13, %v179_v18  ;;  %v1367_v17 = vld [vmem:[%s5885_s6 + $0x10] sm:$0xff] }
 0x11b   :  { %v167_v35 = vmul.f32 %v3765_v3, %v166_v31  ;;  %v188_v37 = vadd.f32 %v3753_v13, %v181_v36 }
 0x11c   :  { %v147_v20 = vmul.f32 %v3767_v4, %v146_v21  ;;  %3455 = vmatmul.msk.f32.vlgmr.msra.gmra.mxu0 %vm80_vm0, %v186_v22  ;;  %3459 = vmatmul.msk.f32.vlgmr.msra.gmra.mxu1 %vm80_vm0, %v186_v22  ;;  %v313_v21 = vld [vmem:[%s5884_s1 + $0x20] sm:$0xff] }
 0x11d   :  { %3463 = vmatmul.msk.f32.vlgmr.msra.gmra.mxu2 %vm80_vm0, %v186_v22  ;;  %v1366_v22 = vld [vmem:[%s5885_s6 + $0x8] sm:$0xff] }
 0x11e   :  { %v151_v26 = vsel %vm150_vm10, %v3767_v4, %v147_v20 }
 0x11f   :  { %v173_v27 = vmul.f32 %v151_v26, %v4043_v30  ;;  %v171_v30 = vsel %vm170_vm13, %v3765_v3, %v167_v35  ;;  %v1373_v3 = vld [vmem:[%s5885_s6 + $0x40] sm:$0xff]  ;;  %v314_v26 = vld [vmem:[%s5884_s1 + $0x28] sm:$0xff] }
 0x120   :  { %v175_v38 = vmul.f32 %v171_v30, %v4041_v29 }
 0x121   :  { %v180_v32 = vmul.f32 %v3752_v9, %v173_v27  ;;  %v315_v27 = vld [vmem:[%s5884_s1 + $0x30] sm:$0xff] }
 0x122   :  { %v182_v19 = vmul.f32 %v3752_v9, %v175_v38  ;;  %v312_v9 = vld [vmem:[%s5884_s1 + $0x18] sm:$0xff] }
 0x123   :  { %v187_v33 = vadd.f32 %v3753_v13, %v180_v32 }
 0x124   :  { %v189_v39 = vadd.f32 %v3753_v13, %v182_v19 }
 0x125   :  { %3456 = vmatmul.msk.f32.gmra.mxu0 %vm80_vm0, %v187_v33  ;;  %3460 = vmatmul.msk.f32.gmra.mxu1 %vm80_vm0, %v187_v33 }
 0x126   :  { %3464 = vmatmul.msk.f32.gmra.mxu2 %vm80_vm0, %v187_v33 }
 0x12d   :  { %3457 = vmatmul.msk.f32.gmra.mxu0 %vm80_vm0, %v188_v37  ;;  %3461 = vmatmul.msk.f32.gmra.mxu1 %vm80_vm0, %v188_v37 }
 0x12e   :  { %3465 = vmatmul.msk.f32.gmra.mxu2 %vm80_vm0, %v188_v37  ;;  %v301_v37 = vld [vmem:[%s5839_s7] sm:$0xff] }
 0x135   :  { %3458 = vmatmul.msk.f32.gmra.mxu0 %vm80_vm0, %v189_v39  ;;  %3462 = vmatmul.msk.f32.gmra.mxu1 %vm80_vm0, %v189_v39 }
 0x136   :  { %3466 = vmatmul.msk.f32.gmra.mxu2 %vm80_vm0, %v189_v39  ;;  %v308_v39 = vld [vmem:[%s5839_s7 + $0x38] sm:$0xff] }
 0x199   :  { %v4119_v40 = vpop.f32.mrf.mxu0  ;;  %v256_v41 = vpop.f32.mrf.mxu1 }
 0x1a0   :  { %v4121_v42 = vpop.f32.mrf.mxu2 }
 0x1a1   :  { %v1393_v61 = vmul.f32 %v1377_v58, %v4121_v42  ;;  %v1389_v6 = vmul.f32 %v1373_v3, %v4121_v42  ;;  %v1385_v16 = vmul.f32 %v1369_v12, %v4121_v42  ;;  %v1381_v20 = vmul.f32 %v1365_v24, %v4121_v42  ;;  %v441_v12 = vld [vmem:[%s5840_s11 + $0x10] sm:$0xff]  ;;  %v443_v24 = vld [vmem:[%s5840_s11 + $0x20] sm:$0xff] }
 0x1a2   :  { %v4123_v29 = vpop.f32.mrf.mxu0  ;;  %v259_v43 = vpop.f32.mrf.mxu1 }
 0x1a9   :  { %v4125_v44 = vpop.f32.mrf.mxu2 }
 0x1aa   :  { %v4127_v45 = vpop.f32.mrf.mxu0  ;;  %v262_v46 = vpop.f32.mrf.mxu1  ;;  %v1394_v59 = vmul.f32 %v1378_v56, %v4125_v44  ;;  %v1390_v4 = vmul.f32 %v1374_v1, %v4125_v44  ;;  %v1386_v13 = vmul.f32 %v1370_v10, %v4125_v44  ;;  %v1382_v25 = vmul.f32 %v1366_v22, %v4125_v44 }
 0x1b1   :  { %v4129_v47 = vpop.f32.mrf.mxu2 }
 0x1b2   :  { %v4131_v48 = vpop.f32.mrf.mxu0  ;;  %v265_v49 = vpop.f32.mrf.mxu1  ;;  %v1395_v57 = vmul.f32 %v1379_v53, %v4129_v47  ;;  %v1391_v2 = vmul.f32 %v1375_v62, %v4129_v47  ;;  %v1387_v11 = vmul.f32 %v1371_v7, %v4129_v47  ;;  %v1383_v23 = vmul.f32 %v1367_v17, %v4129_v47  ;;  %v303_v53 = vld [vmem:[%s5839_s7 + $0x10] sm:$0xff]  ;;  %v442_v17 = vld [vmem:[%s5840_s11 + $0x18] sm:$0xff] }
 0x1b3   :  { %353 = vmatpush.msra.mxu3 %v4131_v48  ;;  %402 = vmatpush.msrb.mxu0 %v265_v49 }
 0x1b4   :  { %3499 = vmatpush.xpose.msk.msrb.mxu2 %vm80_vm0, %v265_v49 }
 0x1b5   :  { %354 = vmatpush.msra.mxu3 %v4127_v45  ;;  %403 = vmatpush.msrb.mxu0 %v262_v46 }
 0x1b7   :  { %355 = vmatpush.msra.mxu3 %v4123_v29  ;;  %404 = vmatpush.msrb.mxu0 %v259_v43 }
 0x1b8   :  { %3500 = vmatpush.xpose.msk.msrb.mxu2 %vm80_vm0, %v262_v46 }
 0x1b9   :  { %v298_v51 = vpop.f32.mrf.mxu2  ;;  %356 = vmatpush.msra.mxu3 %v4119_v40  ;;  %405 = vmatpush.msrb.mxu0 %v256_v41 }
 0x1ba   :  { %3475 = vmatmul.msk.f32.vlgmr.msrb.gmra.mxu0 %vm80_vm0, %v309_v50  ;;  %3467 = vmatmul.msk.f32.vlgmr.msra.gmra.mxu3 %vm80_vm0, %v309_v50  ;;  %v1396_v54 = vmul.f32 %v1380_v52, %v298_v51  ;;  %v1392_v63 = vmul.f32 %v1376_v60, %v298_v51  ;;  %v1388_v8 = vmul.f32 %v1372_v5, %v298_v51  ;;  %v306_v50 = vld [vmem:[%s5839_s7 + $0x28] sm:$0xff]  ;;  %v305_v52 = vld [vmem:[%s5839_s7 + $0x20] sm:$0xff] }
 0x1bb   :  { %1146 = vmatpush.msrb.mxu3 %v298_v51  ;;  %v1384_v18 = vmul.f32 %v1368_v15, %v298_v51 }
 0x1bc   :  { %3501 = vmatpush.xpose.msk.msrb.mxu2 %vm80_vm0, %v259_v43  ;;  %v307_v43 = vld [vmem:[%s5839_s7 + $0x30] sm:$0xff] }
 0x1bd   :  { %1147 = vmatpush.msrb.mxu3 %v4129_v47 }
 0x1bf   :  { %1148 = vmatpush.msrb.mxu3 %v4125_v44  ;;  %v302_v44 = vld [vmem:[%s5839_s7 + $0x8] sm:$0xff] }
 0x1c0   :  { %3502 = vmatpush.xpose.msk.msrb.mxu2 %vm80_vm0, %v256_v41 }
 0x1c1   :  { %1149 = vmatpush.msrb.mxu3 %v4121_v42 }
 0x1c2   :  { %3476 = vmatmul.msk.f32.gmra.mxu0 %vm80_vm0, %v310_v55  ;;  %3468 = vmatmul.msk.f32.gmra.mxu3 %vm80_vm0, %v310_v55 }
 0x1c4   :  { %1401 = vmatpush.msra.mxu2 %v1396_v54 }
 0x1c6   :  { %1402 = vmatpush.msra.mxu2 %v1395_v57  ;;  %v304_v57 = vld [vmem:[%s5839_s7 + $0x18] sm:$0xff] }
 0x1c8   :  { %1403 = vmatpush.msra.mxu2 %v1394_v59 }
 0x1ca   :  { %1404 = vmatpush.msra.mxu2 %v1393_v61  ;;  %3477 = vmatmul.msk.f32.gmra.mxu0 %vm80_vm0, %v311_v0 }
 0x1cb   :  { %3469 = vmatmul.msk.f32.gmra.mxu3 %vm80_vm0, %v311_v0 }
 0x1cc   :  { %1405 = vmatpush.msra.mxu2 %v1392_v63 }
 0x1ce   :  { %1406 = vmatpush.msra.mxu2 %v1391_v2 }
 0x1d0   :  { %1407 = vmatpush.msra.mxu2 %v1390_v4 }
 0x1d2   :  { %1408 = vmatpush.msra.mxu2 %v1389_v6  ;;  %3478 = vmatmul.msk.f32.gmra.mxu0 %vm80_vm0, %v312_v9 }
 0x1d3   :  { %3470 = vmatmul.msk.f32.gmra.mxu3 %vm80_vm0, %v312_v9 }
 0x1d4   :  { %1409 = vmatpush.msra.mxu2 %v1388_v8 }
 0x1d6   :  { %1410 = vmatpush.msra.mxu2 %v1387_v11 }
 0x1d8   :  { %1411 = vmatpush.msra.mxu2 %v1386_v13 }
 0x1da   :  { %1412 = vmatpush.msra.mxu2 %v1385_v16  ;;  %3479 = vmatmul.msk.f32.gmra.mxu0 %vm80_vm0, %v313_v21 }
 0x1db   :  { %3471 = vmatmul.msk.f32.gmra.mxu3 %vm80_vm0, %v313_v21 }
 0x1dc   :  { %1413 = vmatpush.msra.mxu2 %v1384_v18 }
 0x1de   :  { %1414 = vmatpush.msra.mxu2 %v1383_v23  ;;  %v3887_v23 = vmov 0  }
 0x1df   :  { %3750 = vset.pattern.permute.xlu1 %v3887_v23  ;;  %3751 = vset.pattern.permute.xlu2 %v3887_v23 }
 0x1e0   :  { %1415 = vmatpush.msra.mxu2 %v1382_v25  ;;  %3749 = vset.pattern.permute.xlu0 %v3887_v23  ;;  %v735_v23 = vld [vmem:[%s5841_s12 + $0x30] sm:$0xff] }
 0x1e2   :  { %1416 = vmatpush.msra.mxu2 %v1381_v20  ;;  %3480 = vmatmul.msk.f32.gmra.mxu0 %vm80_vm0, %v314_v26 }
 0x1e3   :  { %3472 = vmatmul.msk.f32.gmra.mxu3 %vm80_vm0, %v314_v26 }
 0x1ea   :  { %3481 = vmatmul.msk.f32.gmra.mxu0 %vm80_vm0, %v315_v27 }
 0x1eb   :  { %3473 = vmatmul.msk.f32.gmra.mxu3 %vm80_vm0, %v315_v27  ;;  %v444_v27 = vld [vmem:[%s5840_s11 + $0x28] sm:$0xff] }
 0x1f2   :  { %3482 = vmatmul.msk.f32.gmra.mxu0 %vm80_vm0, %v316_v28 }
 0x1f3   :  { %3474 = vmatmul.msk.f32.gmra.mxu3 %vm80_vm0, %v316_v28 }
 0x237   :  { %v407_v31 = vpop.f32.mrf.mxu0 }
 0x238   :  { %v431_v1 = vmul.f32 %v407_v31, %v301_v37 }
 0x23d   :  { %v358_v38 = vpop.f32.mrf.mxu3 }
 0x23e   :  { %v382_v19 = vmul.f32 %v358_v38, %v301_v37 }
 0x23f   :  { %v410_v32 = vpop.f32.mrf.mxu0 }
 0x240   :  { %3503 = vmatmul.msk.f32.vlgmr.msrb.gmra.mxu2 %vm80_vm0, %v382_v19  ;;  %v432_v62 = vmul.f32 %v410_v32, %v302_v44 }
 0x245   :  { %v361_v46 = vpop.f32.mrf.mxu3 }
 0x246   :  { %v383_v47 = vmul.f32 %v361_v46, %v302_v44  ;;  %v732_v44 = vld [vmem:[%s5841_s12 + $0x18] sm:$0xff] }
 0x247   :  { %v413_v33 = vpop.f32.mrf.mxu0 }
 0x248   :  { %3504 = vmatmul.msk.f32.gmra.mxu2 %vm80_vm0, %v383_v47  ;;  %v433_v61 = vmul.f32 %v413_v33, %v303_v53  ;;  %v445_v33 = vld [vmem:[%s5840_s11 + $0x30] sm:$0xff] }
 0x24e   :  { %v364_v54 = vpop.f32.mrf.mxu3 }
 0x24f   :  { %v416_v34 = vpop.f32.mrf.mxu0  ;;  %v384_v55 = vmul.f32 %v364_v54, %v303_v53 }
 0x250   :  { %v434_v58 = vmul.f32 %v416_v34, %v304_v57 }
 0x251   :  { %3505 = vmatmul.msk.f32.gmra.mxu2 %vm80_vm0, %v384_v55 }
 0x256   :  { %v367_v59 = vpop.f32.mrf.mxu3 }
 0x257   :  { %v419_v35 = vpop.f32.mrf.mxu0  ;;  %v385_v60 = vmul.f32 %v367_v59, %v304_v57 }
 0x258   :  { %v435_v56 = vmul.f32 %v419_v35, %v305_v52 }
 0x259   :  { %3506 = vmatmul.msk.f32.gmra.mxu2 %vm80_vm0, %v385_v60 }
 0x25e   :  { %v370_v63 = vpop.f32.mrf.mxu3 }
 0x25f   :  { %v422_v36 = vpop.f32.mrf.mxu0  ;;  %v386_v0 = vmul.f32 %v370_v63, %v305_v52 }
 0x260   :  { %v436_v51 = vmul.f32 %v422_v36, %v306_v50 }
 0x261   :  { %3507 = vmatmul.msk.f32.gmra.mxu2 %vm80_vm0, %v386_v0 }
 0x266   :  { %v373_v2 = vpop.f32.mrf.mxu3 }
 0x267   :  { %v425_v30 = vpop.f32.mrf.mxu0  ;;  %v387_v3 = vmul.f32 %v373_v2, %v306_v50 }
 0x268   :  { %v437_v49 = vmul.f32 %v425_v30, %v307_v43  ;;  %v446_v30 = vld [vmem:[%s5840_s11 + $0x38] sm:$0xff] }
 0x269   :  { %3508 = vmatmul.msk.f32.gmra.mxu2 %vm80_vm0, %v387_v3 }
 0x26e   :  { %v376_v4 = vpop.f32.mrf.mxu3 }
 0x26f   :  { %v428_v41 = vpop.f32.mrf.mxu0  ;;  %v388_v5 = vmul.f32 %v376_v4, %v307_v43  ;;  %v729_v43 = vld [vmem:[%s5841_s12] sm:$0xff] }
 0x270   :  { %v438_v42 = vmul.f32 %v428_v41, %v308_v39  ;;  %v731_v41 = vld [vmem:[%s5841_s12 + $0x10] sm:$0xff] }
 0x271   :  { %3509 = vmatmul.msk.f32.gmra.mxu2 %vm80_vm0, %v388_v5 }
 0x272   :  { %3483 = vmatpush.xpose.msk.msrb.mxu1 %vm80_vm0, %v438_v42  ;;  %3519 = vmatpush.xpose.msk.msra.mxu0 %vm80_vm0, %v438_v42  ;;  %v733_v42 = vld [vmem:[%s5841_s12 + $0x20] sm:$0xff] }
 0x276   :  { %3484 = vmatpush.xpose.msk.msrb.mxu1 %vm80_vm0, %v437_v49  ;;  %3520 = vmatpush.xpose.msk.msra.mxu0 %vm80_vm0, %v437_v49  ;;  %v379_v6 = vpop.f32.mrf.mxu3 }
 0x27a   :  { %3485 = vmatpush.xpose.msk.msrb.mxu1 %vm80_vm0, %v436_v51  ;;  %3521 = vmatpush.xpose.msk.msra.mxu0 %vm80_vm0, %v436_v51 }
 0x27e   :  { %3486 = vmatpush.xpose.msk.msrb.mxu1 %vm80_vm0, %v435_v56  ;;  %3522 = vmatpush.xpose.msk.msra.mxu0 %vm80_vm0, %v435_v56 }
 0x282   :  { %3487 = vmatpush.xpose.msk.msrb.mxu1 %vm80_vm0, %v434_v58  ;;  %3523 = vmatpush.xpose.msk.msra.mxu0 %vm80_vm0, %v434_v58 }
 0x286   :  { %3488 = vmatpush.xpose.msk.msrb.mxu1 %vm80_vm0, %v433_v61  ;;  %3524 = vmatpush.xpose.msk.msra.mxu0 %vm80_vm0, %v433_v61 }
 0x28a   :  { %3489 = vmatpush.xpose.msk.msrb.mxu1 %vm80_vm0, %v432_v62  ;;  %3525 = vmatpush.xpose.msk.msra.mxu0 %vm80_vm0, %v432_v62 }
 0x28e   :  { %3490 = vmatpush.xpose.msk.msrb.mxu1 %vm80_vm0, %v431_v1  ;;  %3526 = vmatpush.xpose.msk.msra.mxu0 %vm80_vm0, %v431_v1 }
 0x291   :  { %3491 = vmatmul.msk.f32.vlgmr.msrb.gmra.mxu1 %vm80_vm0, %v382_v19  ;;  %3527 = vmatmul.msk.f32.vlgmr.msra.gmra.mxu0 %vm80_vm0, %v4119_v40  ;;  %v389_v40 = vmul.f32 %v379_v6, %v308_v39  ;;  %v730_v39 = vld [vmem:[%s5841_s12 + $0x8] sm:$0xff] }
 0x293   :  { %3510 = vmatmul.msk.f32.gmra.mxu2 %vm80_vm0, %v389_v40 }
 0x299   :  { %3492 = vmatmul.msk.f32.gmra.mxu1 %vm80_vm0, %v383_v47  ;;  %3528 = vmatmul.msk.f32.gmra.mxu0 %vm80_vm0, %v4123_v29  ;;  %v439_v29 = vld [vmem:[%s5840_s11] sm:$0xff] }
 0x2a1   :  { %3493 = vmatmul.msk.f32.gmra.mxu1 %vm80_vm0, %v384_v55  ;;  %3529 = vmatmul.msk.f32.gmra.mxu0 %vm80_vm0, %v4127_v45 }
 0x2a9   :  { %3494 = vmatmul.msk.f32.gmra.mxu1 %vm80_vm0, %v385_v60  ;;  %3530 = vmatmul.msk.f32.gmra.mxu0 %vm80_vm0, %v4131_v48  ;;  %v440_v48 = vld [vmem:[%s5840_s11 + $0x8] sm:$0xff] }
 0x2b1   :  { %3495 = vmatmul.msk.f32.gmra.mxu1 %vm80_vm0, %v386_v0 }
 0x2b9   :  { %3496 = vmatmul.msk.f32.gmra.mxu1 %vm80_vm0, %v387_v3 }
 0x2c1   :  { %3497 = vmatmul.msk.f32.gmra.mxu1 %vm80_vm0, %v388_v5 }
 0x2c9   :  { %3498 = vmatmul.msk.f32.gmra.mxu1 %vm80_vm0, %v389_v40 }
 0x30e   :  { %v512_v45 = vpop.f32.mrf.mxu1 }
 0x30f   :  { %v513_v7 = vadd.f32 %v512_v45, %v439_v29 }
 0x311   :  { %v537_v8 = vsel %vm536_vm14, %v513_v7, -inf }
 0x312   :  { %538 = vmax.xlane.f32.xlu2 %v537_v8 }
 0x316   :  { %v515_v9 = vpop.f32.mrf.mxu1 }
 0x317   :  { %v516_v10 = vadd.f32 %v515_v9, %v440_v48 }
 0x319   :  { %v540_v11 = vsel %vm536_vm14, %v516_v10, -inf }
 0x31a   :  { %541 = vmax.xlane.f32.xlu0 %v540_v11 }
 0x31e   :  { %v518_v13 = vpop.f32.mrf.mxu1 }
 0x31f   :  { %v519_v15 = vadd.f32 %v518_v13, %v441_v12 }
 0x321   :  { %v543_v16 = vsel %vm536_vm14, %v519_v15, -inf }
 0x322   :  { %544 = vmax.xlane.f32.xlu1 %v543_v16 }
 0x326   :  { %v521_v18 = vpop.f32.mrf.mxu1 }
 0x327   :  { %v522_v21 = vadd.f32 %v521_v18, %v442_v17 }
 0x329   :  { %v546_v22 = vsel %vm536_vm14, %v522_v21, -inf }
 0x32a   :  { %547 = vmax.xlane.f32.xlu2 %v546_v22  ;;  %v736_v22 = vld [vmem:[%s5841_s12 + $0x38] sm:$0xff] }
 0x32e   :  { %v524_v25 = vpop.f32.mrf.mxu1 }
 0x32f   :  { %v525_v20 = vadd.f32 %v524_v25, %v443_v24  ;;  %v734_v24 = vld [vmem:[%s5841_s12 + $0x28] sm:$0xff] }
 0x331   :  { %v549_v26 = vsel %vm536_vm14, %v525_v20, -inf }
 0x332   :  { %550 = vmax.xlane.f32.xlu0 %v549_v26 }
 0x336   :  { %v527_v28 = vpop.f32.mrf.mxu1 }
 0x337   :  { %v528_v31 = vadd.f32 %v527_v28, %v444_v27 }
 0x339   :  { %v552_v32 = vsel %vm536_vm14, %v528_v31, -inf }
 0x33a   :  { %553 = vmax.xlane.f32.xlu1 %v552_v32 }
 0x33e   :  { %v530_v34 = vpop.f32.mrf.mxu1 }
 0x33f   :  { %v531_v35 = vadd.f32 %v530_v34, %v445_v33 }
 0x341   :  { %v555_v36 = vsel %vm536_vm14, %v531_v35, -inf }
 0x342   :  { %556 = vmax.xlane.f32.xlu2 %v555_v36 }
 0x346   :  { %v533_v37 = vpop.f32.mrf.mxu1 }
 0x347   :  { %v4339_v38 = vadd.f32 %v533_v37, %v446_v30 }
 0x349   :  { %v558_v19 = vsel %vm536_vm14, %v4339_v38, -inf }
 0x34a   :  { %559 = vmax.xlane.f32.xlu0 %v558_v19 }
 0x353   :  { %744 = vperm.xlu1 %3750, %v730_v39  }
 0x35a   :  { %749 = vperm.xlu2 %3751, %v731_v41  }
 0x35b   :  { %759 = vperm.xlu1 %3750, %v733_v42  }
 0x35e   :  { %739 = vperm.xlu0 %3749, %v729_v43  }
 0x362   :  { %754 = vperm.xlu2 %3751, %v732_v44  }
 0x385   :  { %v539_v46 = vpop.xlane.xlu2 %538 }
 0x386   :  { %v561_v47 = vsub.f32 %v513_v7, %v539_v46 }
 0x388   :  { %v569_v49 = vmul.f32 1.442695, %v561_v47 }
 0x38a   :  { %3768 = vpow2.f32 %v569_v49 }
 0x38d   :  { %v542_v50 = vpop.xlane.xlu0 %541 }
 0x38e   :  { %v562_v51 = vsub.f32 %v516_v10, %v542_v50 }
 0x390   :  { %v4358_v52 = vpop.eup %3768  ;;  %v571_v53 = vmul.f32 1.442695, %v562_v51 }
 0x391   :  { %v585_v54 = vsel %vm536_vm14, %v4358_v52, 0.0 }
 0x392   :  { %3770 = vpow2.f32 %v571_v53  ;;  %586 = vadd.xlane.f32.xlu1 %v585_v54 }
 0x395   :  { %v545_v55 = vpop.xlane.xlu1 %544 }
 0x396   :  { %v563_v56 = vsub.f32 %v519_v15, %v545_v55 }
 0x398   :  { %v4362_v57 = vpop.eup %3770  ;;  %v573_v58 = vmul.f32 1.442695, %v563_v56 }
 0x399   :  { %v588_v59 = vsel %vm536_vm14, %v4362_v57, 0.0 }
 0x39a   :  { %3772 = vpow2.f32 %v573_v58  ;;  %589 = vadd.xlane.f32.xlu2 %v588_v59 }
 0x39d   :  { %v548_v60 = vpop.xlane.xlu2 %547 }
 0x39e   :  { %v564_v61 = vsub.f32 %v522_v21, %v548_v60 }
 0x3a0   :  { %v4366_v62 = vpop.eup %3772  ;;  %v575_v63 = vmul.f32 1.442695, %v564_v61 }
 0x3a1   :  { %v591_v0 = vsel %vm536_vm14, %v4366_v62, 0.0 }
 0x3a2   :  { %3774 = vpow2.f32 %v575_v63  ;;  %592 = vadd.xlane.f32.xlu0 %v591_v0 }
 0x3a5   :  { %v551_v1 = vpop.xlane.xlu0 %550 }
 0x3a6   :  { %v565_v2 = vsub.f32 %v525_v20, %v551_v1 }
 0x3a8   :  { %v4370_v3 = vpop.eup %3774  ;;  %v577_v4 = vmul.f32 1.442695, %v565_v2 }
 0x3a9   :  { %v594_v5 = vsel %vm536_vm14, %v4370_v3, 0.0 }
 0x3aa   :  { %3776 = vpow2.f32 %v577_v4  ;;  %595 = vadd.xlane.f32.xlu1 %v594_v5 }
 0x3ad   :  { %v554_v6 = vpop.xlane.xlu1 %553 }
 0x3ae   :  { %v566_v40 = vsub.f32 %v528_v31, %v554_v6 }
 0x3b0   :  { %v4374_v29 = vpop.eup %3776  ;;  %v579_v45 = vmul.f32 1.442695, %v566_v40 }
 0x3b1   :  { %v597_v7 = vsel %vm536_vm14, %v4374_v29, 0.0 }
 0x3b2   :  { %3778 = vpow2.f32 %v579_v45  ;;  %598 = vadd.xlane.f32.xlu2 %v597_v7 }
 0x3b5   :  { %v557_v8 = vpop.xlane.xlu2 %556 }
 0x3b6   :  { %v567_v48 = vsub.f32 %v531_v35, %v557_v8 }
 0x3b8   :  { %v4378_v9 = vpop.eup %3778  ;;  %v581_v10 = vmul.f32 1.442695, %v567_v48 }
 0x3b9   :  { %v600_v11 = vsel %vm536_vm14, %v4378_v9, 0.0 }
 0x3ba   :  { %3780 = vpow2.f32 %v581_v10  ;;  %601 = vadd.xlane.f32.xlu0 %v600_v11 }
 0x3bd   :  { %v560_v12 = vpop.xlane.xlu0 %559  ;;  %v4400_v20 = vpop.permute.xlu2 %749 }
 0x3be   :  { %v568_v13 = vsub.f32 %v4339_v38, %v560_v12 }
 0x3c0   :  { %v4383_v15 = vpop.eup %3780  ;;  %v583_v16 = vmul.f32 1.442695, %v568_v13 }
 0x3c1   :  { %v603_v17 = vsel %vm536_vm14, %v4383_v15, 0.0 }
 0x3c2   :  { %3782 = vpow2.f32 %v583_v16  ;;  %604 = vadd.xlane.f32.xlu1 %v603_v17 }
 0x3c5   :  { %v745_v25 = vpop.permute.xlu1 %744  ;;  %v4404_v27 = vpop.permute.xlu2 %754 }
 0x3c8   :  { %v4387_v18 = vpop.eup %3782 }
 0x3c9   :  { %v606_v21 = vsel %vm536_vm14, %v4387_v18, 0.0 }
 0x3ca   :  { %607 = vadd.xlane.f32.xlu2 %v606_v21 }
 0x3cd   :  { %v4402_v26 = vpop.permute.xlu1 %759 }
 0x3ce   :  { %774 = vperm.xlu0 %3749, %v736_v22  }
 0x3d0   :  { %v740_v33 = vpop.permute.xlu0 %739 }
 0x3db   :  { %769 = vperm.xlu1 %3750, %v735_v23  }
 0x3e2   :  { %764 = vperm.xlu2 %3751, %v734_v24  }
 0x405   :  { %v587_v28 = vpop.xlane.xlu1 %586 }
 0x406   :  { %3784 = vrcp.f32 %v587_v28  ;;  %v620_v36 = vand.u32 2147483648, %v587_v28  ;;  %v618_v37 = vand.u32 2147483647, %v587_v28  ;;  %vm614_vm1 = vweird.f32 %v587_v28 }
 0x408   :  { %v621_v39 = vor.u32 1.1754944e-38, %v620_v36  ;;  %vm619_vm3 = vcmp.eq.f32.partialorder %v618_v37, 8.507059e+37 }
 0x40c   :  { %v3785_v31 = vpop.eup %3784 }
 0x40d   :  { %v610_v32 = vmul.f32 %v3785_v31, %v587_v28  ;;  %v590_v34 = vpop.xlane.xlu2 %589  ;;  %vm615_vm15 = vweird.f32 %v3785_v31 }
 0x40e   :  { %3786 = vrcp.f32 %v590_v34  ;;  %vm616_vm2 = vmor %vm614_vm1, %vm615_vm15  ;;  %v635_v49 = vand.u32 2147483648, %v590_v34  ;;  %v633_v53 = vand.u32 2147483647, %v590_v34  ;;  %vm629_vm5 = vweird.f32 %v590_v34 }
 0x40f   :  { %v611_v35 = vsub.f32 1.0, %v610_v32 }
 0x410   :  { %v636_v58 = vor.u32 1.1754944e-38, %v635_v49  ;;  %vm634_vm7 = vcmp.eq.f32.partialorder %v633_v53, 8.507059e+37 }
 0x411   :  { %v612_v30 = vmul.f32 %v3785_v31, %v611_v35 }
 0x413   :  { %v613_v38 = vadd.f32 %v3785_v31, %v612_v30 }
 0x414   :  { %v3787_v19 = vpop.eup %3786 }
 0x415   :  { %v617_v41 = vsel %vm616_vm2, %v3785_v31, %v613_v38  ;;  %v625_v42 = vmul.f32 %v3787_v19, %v590_v34  ;;  %v593_v43 = vpop.xlane.xlu0 %592  ;;  %vm630_vm4 = vweird.f32 %v3787_v19 }
 0x416   :  { %v622_v44 = vsel %vm619_vm3, %v621_v39, %v617_v41  ;;  %3788 = vrcp.f32 %v593_v43  ;;  %vm631_vm6 = vmor %vm629_vm5, %vm630_vm4  ;;  %v650_v1 = vand.u32 2147483648, %v593_v43  ;;  %v648_v5 = vand.u32 2147483647, %v593_v43 }
 0x417   :  { %v623_v46 = vmul.f32 %v4358_v52, %v622_v44  ;;  %v626_v47 = vsub.f32 1.0, %v625_v42  ;;  %vm644_vm9 = vweird.f32 %v593_v43 }
 0x418   :  { %v651_v7 = vor.u32 1.1754944e-38, %v650_v1  ;;  %vm649_vm11 = vcmp.eq.f32.partialorder %v648_v5, 8.507059e+37 }
 0x419   :  { %v4407_v50 = vmul.f32 %v740_v33, %v623_v46  ;;  %v627_v51 = vmul.f32 %v3787_v19, %v626_v47 }
 0x41b   :  { %v628_v54 = vadd.f32 %v3787_v19, %v627_v51  ;;  %v4411_v55 = vsel %vm536_vm14, %v4407_v50, 0.0 }
 0x41c   :  { %v3789_v56 = vpop.eup %3788  ;;  %810 = vadd.xlane.f32.xlu2 %v4411_v55 }
 0x41d   :  { %v632_v59 = vsel %vm631_vm6, %v3787_v19, %v628_v54  ;;  %v640_v52 = vmul.f32 %v3789_v56, %v593_v43  ;;  %v596_v60 = vpop.xlane.xlu1 %595  ;;  %vm645_vm8 = vweird.f32 %v3789_v56 }
 0x41e   :  { %v637_v61 = vsel %vm634_vm7, %v636_v58, %v632_v59  ;;  %3790 = vrcp.f32 %v596_v60  ;;  %vm646_vm10 = vmor %vm644_vm9, %vm645_vm8  ;;  %v665_v13 = vand.u32 2147483648, %v596_v60  ;;  %v663_v21 = vand.u32 2147483647, %v596_v60 }
 0x41f   :  { %v638_v63 = vmul.f32 %v4362_v57, %v637_v61  ;;  %v641_v0 = vsub.f32 1.0, %v640_v52  ;;  %vm659_vm13 = vweird.f32 %v596_v60 }
 0x420   :  { %vm664_vm1 = vcmp.eq.f32.partialorder %v663_v21, 8.507059e+37 }
 0x421   :  { %v4415_v2 = vmul.f32 %v745_v25, %v638_v63  ;;  %v642_v4 = vmul.f32 %v3789_v56, %v641_v0  ;;  %v666_v25 = vor.u32 1.1754944e-38, %v665_v13  ;;  %v1216_v13 = vpop.f32.mrf.mxu0 }
 0x423   :  { %v643_v6 = vadd.f32 %v3789_v56, %v642_v4  ;;  %v4419_v40 = vsel %vm536_vm14, %v4415_v2, 0.0 }
 0x424   :  { %v3791_v45 = vpop.eup %3790  ;;  %812 = vadd.xlane.f32.xlu1 %v4419_v40 }
 0x425   :  { %v647_v8 = vsel %vm646_vm10, %v3789_v56, %v643_v6  ;;  %v655_v57 = vmul.f32 %v3791_v45, %v596_v60  ;;  %v599_v48 = vpop.xlane.xlu2 %598  ;;  %vm660_vm12 = vweird.f32 %v3791_v45 }
 0x426   :  { %v652_v10 = vsel %vm649_vm11, %v651_v7, %v647_v8  ;;  %3792 = vrcp.f32 %v599_v48  ;;  %vm661_vm15 = vmor %vm659_vm13, %vm660_vm12  ;;  %v680_v34 = vand.u32 2147483648, %v599_v48  ;;  %v678_v30 = vand.u32 2147483647, %v599_v48  ;;  %v859_v8 = vld [vmem:[%s5843_s15 + $0x10] sm:$0xff] }
 0x427   :  { %v653_v11 = vmul.f32 %v4366_v62, %v652_v10  ;;  %v656_v12 = vsub.f32 1.0, %v655_v57  ;;  %vm674_vm3 = vweird.f32 %v599_v48  ;;  %v787_v57 = vadd.f32 %v4419_v40, %v4411_v55 }
 0x428   :  { %v681_v39 = vor.u32 1.1754944e-38, %v680_v34  ;;  %vm679_vm5 = vcmp.eq.f32.partialorder %v678_v30, 8.507059e+37 }
 0x429   :  { %v4424_v16 = vmul.f32 %v4400_v20, %v653_v11  ;;  %v657_v17 = vmul.f32 %v3791_v45, %v656_v12 }
 0x42b   :  { %v658_v22 = vadd.f32 %v3791_v45, %v657_v17  ;;  %v4428_v23 = vsel %vm536_vm14, %v4424_v16, 0.0 }
 0x42c   :  { %v3793_v24 = vpop.eup %3792  ;;  %814 = vadd.xlane.f32.xlu0 %v4428_v23 }
 0x42d   :  { %v662_v62 = vsel %vm661_vm15, %v3791_v45, %v658_v22  ;;  %v670_v28 = vmul.f32 %v3793_v24, %v599_v48  ;;  %v602_v31 = vpop.xlane.xlu0 %601  ;;  %vm675_vm2 = vweird.f32 %v3793_v24 }
 0x42e   :  { %v667_v20 = vsel %vm664_vm1, %v666_v25, %v662_v62  ;;  %3794 = vrcp.f32 %v602_v31  ;;  %vm676_vm4 = vmor %vm674_vm3, %vm675_vm2  ;;  %v695_v53 = vand.u32 2147483648, %v602_v31  ;;  %vm689_vm7 = vweird.f32 %v602_v31 }
 0x42f   :  { %v668_v32 = vmul.f32 %v4370_v3, %v667_v20  ;;  %v671_v33 = vsub.f32 1.0, %v670_v28  ;;  %v693_v56 = vand.u32 2147483647, %v602_v31 }
 0x430   :  { %v696_v60 = vor.u32 1.1754944e-38, %v695_v53 }
 0x431   :  { %v4433_v35 = vmul.f32 %v4404_v27, %v668_v32  ;;  %v672_v36 = vmul.f32 %v3793_v24, %v671_v33  ;;  %vm694_vm9 = vcmp.eq.f32.partialorder %v693_v56, 8.507059e+37 }
 0x433   :  { %v673_v37 = vadd.f32 %v3793_v24, %v672_v36  ;;  %v790_v38 = vsel %vm536_vm14, %v4433_v35, 0.0 }
 0x434   :  { %v3795_v19 = vpop.eup %3794  ;;  %816 = vadd.xlane.f32.xlu2 %v790_v38 }
 0x435   :  { %v677_v41 = vsel %vm676_vm4, %v3793_v24, %v673_v37  ;;  %v685_v3 = vmul.f32 %v3795_v19, %v602_v31  ;;  %v605_v42 = vpop.xlane.xlu1 %604  ;;  %vm690_vm6 = vweird.f32 %v3795_v19 }
 0x436   :  { %v682_v43 = vsel %vm679_vm5, %v681_v39, %v677_v41  ;;  %3796 = vrcp.f32 %v605_v42  ;;  %vm691_vm8 = vmor %vm689_vm7, %vm690_vm6  ;;  %v710_v1 = vand.u32 2147483648, %v605_v42  ;;  %vm704_vm11 = vweird.f32 %v605_v42  ;;  %v1219_v41 = vpop.f32.mrf.mxu0 }
 0x437   :  { %v683_v27 = vmul.f32 %v4374_v29, %v682_v43  ;;  %v686_v44 = vsub.f32 1.0, %v685_v3  ;;  %v708_v6 = vand.u32 2147483647, %v605_v42  ;;  %v1183_v3 = vld [vmem:[%s5842_s13] sm:$0xff] }
 0x438   :  { %v711_v12 = vor.u32 1.1754944e-38, %v710_v1 }
 0x439   :  { %v4439_v46 = vmul.f32 %v4402_v26, %v683_v27  ;;  %v687_v47 = vmul.f32 %v3795_v19, %v686_v44  ;;  %v4443_v26 = vpop.f32.mrf.mxu2  ;;  %vm709_vm13 = vcmp.eq.f32.partialorder %v708_v6, 8.507059e+37  ;;  %v4474_v27 = vadd.f32 %v1216_v13, %v1183_v3  ;;  %v1186_v6 = vld [vmem:[%s5842_s13 + $0x18] sm:$0xff] }
 0x43b   :  { %v792_v49 = vsel %vm536_vm14, %v4439_v46, 0.0  ;;  %v688_v51 = vadd.f32 %v3795_v19, %v687_v47 }
 0x43c   :  { %v3797_v54 = vpop.eup %3796  ;;  %818 = vadd.xlane.f32.xlu1 %v792_v49 }
 0x43d   :  { %v700_v58 = vmul.f32 %v3797_v54, %v605_v42  ;;  %v608_v59 = vpop.xlane.xlu2 %607  ;;  %v692_v29 = vsel %vm691_vm8, %v3795_v19, %v688_v51  ;;  %vm705_vm10 = vweird.f32 %v3797_v54  ;;  %v1185_v51 = vld [vmem:[%s5842_s13 + $0x10] sm:$0xff] }
 0x43e   :  { %3798 = vrcp.f32 %v608_v59  ;;  %v697_v63 = vsel %vm694_vm9, %v696_v60, %v692_v29  ;;  %vm4446_vm12 = vmor %vm704_vm11, %vm705_vm10  ;;  %v725_v17 = vand.u32 2147483648, %v608_v59  ;;  %v723_v24 = vand.u32 2147483647, %v608_v59  ;;  %v1222_v53 = vpop.f32.mrf.mxu0  ;;  %v1184_v60 = vld [vmem:[%s5842_s13 + $0x8] sm:$0xff] }
 0x43f   :  { %v701_v52 = vsub.f32 1.0, %v700_v58  ;;  %v698_v5 = vmul.f32 %v4378_v9, %v697_v63  ;;  %v789_v9 = vadd.f32 %v4428_v23, %v787_v57  ;;  %vm719_vm1 = vweird.f32 %v608_v59  ;;  %v857_v63 = vld [vmem:[%s5843_s15] sm:$0xff] }
 0x440   :  { %v726_v28 = vor.u32 1.1754944e-38, %v725_v17  ;;  %vm724_vm3 = vcmp.eq.f32.partialorder %v723_v24, 8.507059e+37  ;;  %v775_v37 = vpop.permute.xlu0 %774  ;;  %v4495_v1 = vadd.f32 %v4443_v26, %v857_v63  ;;  %v860_v24 = vld [vmem:[%s5843_s15 + $0x18] sm:$0xff] }
 0x441   :  { %v702_v61 = vmul.f32 %v3797_v54, %v701_v52  ;;  %v4459_v40 = vpop.f32.mrf.mxu2  ;;  %v791_v25 = vadd.f32 %v790_v38, %v789_v9  ;;  %v861_v9 = vld [vmem:[%s5843_s15 + $0x20] sm:$0xff] }
 0x443   :  { %v703_v0 = vadd.f32 %v3797_v54, %v702_v61  ;;  %v793_v23 = vadd.f32 %v792_v49, %v791_v25  ;;  %v1228_v49 = vsel %vm536_vm14, %v4474_v27, -inf }
 0x444   :  { %v3799_v4 = vpop.eup %3798 }
 0x445   :  { %v715_v45 = vmul.f32 %v3799_v4, %v608_v59  ;;  %v765_v7 = vpop.permute.xlu2 %764  ;;  %v707_v10 = vsel %vm4446_vm12, %v3797_v54, %v703_v0  ;;  %vm720_vm15 = vweird.f32 %v3799_v4  ;;  %v4481_v59 = vadd.f32 %v1222_v53, %v1185_v51  ;;  %v1252_v51 = vld [vmem:[%s5844_s10] sm:$0xff] }
 0x446   :  { %v4452_v48 = vmul.f32 %v765_v7, %v698_v5  ;;  %v712_v55 = vsel %vm709_vm13, %v711_v12, %v707_v10  ;;  %vm721_vm2 = vmor %vm719_vm1, %vm720_vm15  ;;  %v4492_v0 = vadd.f32 %v1219_v41, %v1184_v60  ;;  %v918_v7 = vsel %vm80_vm0, %v4495_v1, -inf  ;;  %v858_v12 = vld [vmem:[%s5843_s15 + $0x8] sm:$0xff]  ;;  %v1258_v41 = vld [vmem:[%s5844_s10 + $0x30] sm:$0xff] }
 0x447   :  { %v716_v11 = vsub.f32 1.0, %v715_v45  ;;  %v713_v31 = vmul.f32 %v4383_v15, %v712_v55  ;;  %v1234_v61 = vsel %vm536_vm14, %v4481_v59, -inf  ;;  %v1225_v45 = vpop.f32.mrf.mxu0  ;;  %v4522_v17 = vadd.f32 %v4459_v40, %v858_v12  ;;  %v863_v40 = vld [vmem:[%s5843_s15 + $0x30] sm:$0xff] }
 0x448   :  { %v794_v21 = vsel %vm536_vm14, %v4452_v48, 0.0  ;;  %v1231_v5 = vsel %vm536_vm14, %v4492_v0, -inf  ;;  %v4507_v26 = vadd.f32 %v1225_v45, %v1186_v6 }
 0x449   :  { %v717_v22 = vmul.f32 %v3799_v4, %v716_v11  ;;  %820 = vadd.xlane.f32.xlu2 %v794_v21  ;;  %v795_v30 = vadd.f32 %v794_v21, %v793_v23  ;;  %v900_v42 = vpop.f32.mrf.mxu2  ;;  %v862_v23 = vld [vmem:[%s5843_s15 + $0x28] sm:$0xff] }
 0x44a   :  { %v4509_v57 = vadd.f32 %v900_v42, %v859_v8  ;;  %v1237_v11 = vsel %vm536_vm14, %v4507_v26, -inf  ;;  %v1256_v42 = vld [vmem:[%s5844_s10 + $0x20] sm:$0xff] }
 0x44b   :  { %v718_v62 = vadd.f32 %v3799_v4, %v717_v22  ;;  %v921_v22 = vsel %vm80_vm0, %v4522_v17, -inf }
 0x44c   :  { %v924_v13 = vsel %vm80_vm0, %v4509_v57, -inf }
 0x44d   :  { %v722_v20 = vsel %vm721_vm2, %v3799_v4, %v718_v62  ;;  %v770_v32 = vpop.permute.xlu1 %769 }
 0x44e   :  { %v727_v33 = vsel %vm724_vm3, %v726_v28, %v722_v20  ;;  %v4462_v34 = vmul.f32 %v770_v32, %v713_v31  ;;  %v864_v32 = vld [vmem:[%s5843_s15 + $0x38] sm:$0xff] }
 0x44f   :  { %v728_v36 = vmul.f32 %v4387_v18, %v727_v33 }
 0x450   :  { %v796_v38 = vsel %vm536_vm14, %v4462_v34, 0.0 }
 0x451   :  { %v4467_v19 = vmul.f32 %v775_v37, %v728_v36  ;;  %822 = vadd.xlane.f32.xlu0 %v796_v38  ;;  %v797_v39 = vadd.f32 %v796_v38, %v795_v30  ;;  %v903_v56 = vpop.f32.mrf.mxu2 }
 0x452   :  { %v4537_v62 = vadd.f32 %v903_v56, %v860_v24 }
 0x453   :  { %v798_v15 = vsel %vm536_vm14, %v4467_v19, 0.0 }
 0x454   :  { %824 = vadd.xlane.f32.xlu1 %v798_v15  ;;  %v799_v18 = vadd.f32 %v798_v15, %v797_v39  ;;  %v927_v31 = vsel %vm80_vm0, %v4537_v62, -inf  ;;  %v1259_v39 = vld [vmem:[%s5844_s10 + $0x38] sm:$0xff]  ;;  %v1257_v15 = vld [vmem:[%s5844_s10 + $0x28] sm:$0xff] }
 0x455   :  { %1284 = vmatpush.msra.mxu1 %v1259_v39 }
 0x456   :  { %v800_v43 = vrot.slane %v799_v18, 4 }
 0x457   :  { %1285 = vmatpush.msra.mxu1 %v1258_v41 }
 0x458   :  { %v801_v44 = vadd.f32 %v800_v43, %v799_v18  ;;  %v1255_v18 = vld [vmem:[%s5844_s10 + $0x18] sm:$0xff]  ;;  %v1254_v43 = vld [vmem:[%s5844_s10 + $0x10] sm:$0xff] }
 0x459   :  { %v906_v4 = vpop.f32.mrf.mxu2  ;;  %1286 = vmatpush.msra.mxu1 %v1257_v15 }
 0x45a   :  { %v802_v47 = vrot.slane %v801_v44, 2  ;;  %v4524_v21 = vadd.f32 %v906_v4, %v861_v9 }
 0x45b   :  { %1287 = vmatpush.msra.mxu1 %v1256_v42 }
 0x45c   :  { %1229 = vmax.xlane.f32.xlu1 %v1228_v49  ;;  %v803_v54 = vadd.f32 %v802_v47, %v801_v44  ;;  %v930_v55 = vsel %vm80_vm0, %v4524_v21, -inf  ;;  %v1253_v47 = vld [vmem:[%s5844_s10 + $0x8] sm:$0xff] }
 0x45d   :  { %1288 = vmatpush.msra.mxu1 %v1255_v18 }
 0x45e   :  { %v804_v58 = vrot.slane %v803_v54, 1 }
 0x45f   :  { %1289 = vmatpush.msra.mxu1 %v1254_v43 }
 0x460   :  { %v805_v29 = vadd.f32 %v804_v58, %v803_v54 }
 0x461   :  { %v909_v10 = vpop.f32.mrf.mxu2  ;;  %1290 = vmatpush.msra.mxu1 %v1253_v47 }
 0x462   :  { %v806_v52 = vsel %vm536_vm14, %v805_v29, -inf  ;;  %v4552_v36 = vadd.f32 %v909_v10, %v862_v23 }
 0x463   :  { %807 = vmax.xlane.f32.xlu2 %v806_v52  ;;  %1291 = vmatpush.msra.mxu1 %v1252_v51 }
 0x464   :  { %1235 = vmax.xlane.f32.xlu1 %v1234_v61  ;;  %v933_v37 = vsel %vm80_vm0, %v4552_v36, -inf }
 0x469   :  { %v912_v25 = vpop.f32.mrf.mxu2 }
 0x46a   :  { %v4539_v28 = vadd.f32 %v912_v25, %v863_v40 }
 0x46b   :  { %1232 = vmax.xlane.f32.xlu2 %v1231_v5 }
 0x46c   :  { %919 = vmax.xlane.f32.xlu1 %v918_v7  ;;  %v936_v20 = vsel %vm80_vm0, %v4539_v28, -inf }
 0x471   :  { %v915_v33 = vpop.f32.mrf.mxu2 }
 0x472   :  { %v4554_v30 = vadd.f32 %v915_v33, %v864_v32 }
 0x473   :  { %1238 = vmax.xlane.f32.xlu2 %v1237_v11 }
 0x474   :  { %925 = vmax.xlane.f32.xlu1 %v924_v13  ;;  %v939_v38 = vsel %vm80_vm0, %v4554_v30, -inf }
 0x47a   :  { %1462 = vxpose.xlu0.b32.start [1/8] (short) (narrow) %v4407_v50, 64 }
 0x47b   :  { %922 = vmax.xlane.f32.xlu2 %v921_v22 }
 0x47c   :  { %931 = vmax.xlane.f32.xlu1 %v930_v55 }
 0x482   :  { %1463 = vxpose.xlu0.b32.cont [2/8] (short) (narrow) %v4415_v2, 64 }
 0x483   :  { %928 = vmax.xlane.f32.xlu2 %v927_v31 }
 0x484   :  { %937 = vmax.xlane.f32.xlu1 %v936_v20 }
 0x48a   :  { %1464 = vxpose.xlu0.b32.cont [3/8] (short) (narrow) %v4424_v16, 64 }
 0x48b   :  { %934 = vmax.xlane.f32.xlu2 %v933_v37 }
 0x48c   :  { %940 = vmax.xlane.f32.xlu1 %v939_v38 }
 0x48f   :  { %v811_v3 = vpop.xlane.xlu2 %810 }
 0x492   :  { %1465 = vxpose.xlu0.b32.cont [4/8] (short) (narrow) %v4433_v35, 64 }
 0x497   :  { %v813_v44 = vpop.xlane.xlu1 %812 }
 0x49a   :  { %1466 = vxpose.xlu0.b32.cont [5/8] (short) (narrow) %v4439_v46, 64 }
 0x49f   :  { %v815_v53 = vpop.xlane.xlu0 %814 }
 0x4a2   :  { %1467 = vxpose.xlu0.b32.cont [6/8] (short) (narrow) %v4452_v48, 64 }
 0x4a7   :  { %v817_v49 = vpop.xlane.xlu2 %816 }
 0x4aa   :  { %1468 = vxpose.xlu0.b32.cont [7/8] (short) (narrow) %v4462_v34, 64 }
 0x4af   :  { %v819_v54 = vpop.xlane.xlu1 %818 }
 0x4b0   :  { %v826_v60 = vmax.f32 %v811_v3, %v819_v54 }
 0x4b2   :  { %1469 = vxpose.xlu0.b32.end [8/8] (short) (narrow) %v4467_v19, 64 }
 0x4bc   :  { %v821_v56 = vpop.xlane.xlu2 %820 }
 0x4bd   :  { %v827_v29 = vmax.f32 %v813_v44, %v821_v56 }
 0x4bf   :  { %v830_v4 = vmax.f32 %v826_v60, %v827_v29 }
 0x4c4   :  { %v823_v58 = vpop.xlane.xlu0 %822 }
 0x4c5   :  { %v828_v61 = vmax.f32 %v815_v53, %v823_v58 }
 0x4c7   :  { %v825_v52 = vpop.xlane.xlu1 %824 }
 0x4c8   :  { %v829_v63 = vmax.f32 %v817_v49, %v825_v52 }
 0x4ca   :  { %v831_v5 = vmax.f32 %v828_v61, %v829_v63 }
 0x4cc   :  { %v832_v6 = vmax.f32 %v830_v4, %v831_v5 }
 0x4ce   :  { %v833_v45 = vrot.slane %v832_v6, 4 }
 0x4cf   :  { %v1230_v7 = vpop.xlane.xlu1 %1229 }
 0x4d0   :  { %v1240_v8 = vsub.f32 %v4474_v27, %v1230_v7  ;;  %v834_v10 = vmax.f32 %v832_v6, %v833_v45 }
 0x4d2   :  { %v1244_v11 = vmul.f32 1.442695, %v1240_v8  ;;  %v835_v12 = vrot.slane %v834_v10, 2 }
 0x4d4   :  { %3800 = vpow2.f32 %v1244_v11  ;;  %v836_v13 = vmax.f32 %v834_v10, %v835_v12 }
 0x4d6   :  { %v808_v9 = vpop.xlane.xlu2 %807  ;;  %v837_v22 = vrot.slane %v836_v13, 1 }
 0x4d7   :  { %v1236_v24 = vpop.xlane.xlu1 %1235  ;;  %3739 = vpush %v808_v9 }
 0x4d8   :  { %v838_v55 = vmax.f32 %v836_v13, %v837_v22  ;;  %v1242_v33 = vsub.f32 %v4481_v59, %v1236_v24 }
 0x4da   :  { %v4591_v40 = vpop.eup %3800  ;;  %3741 = vpush %v838_v55  ;;  %v1248_v38 = vmul.f32 1.442695, %v1242_v33 }
 0x4db   :  { %5888 = vst [vmem:[#allocation3_spill] sm:$0xff] %v4591_v40  ;;  %3531 = vmatmul.msk.f32.vlgmr.msra.gmra.mxu1 %vm536_vm14, %v4591_v40 }
 0x4de   :  { %v1233_v25 = vpop.xlane.xlu2 %1232 }
 0x4df   :  { %v1241_v31 = vsub.f32 %v4492_v0, %v1233_v25  ;;  %v920_v27 = vpop.xlane.xlu1 %919 }
 0x4e0   :  { %v942_v23 = vsub.f32 %v4495_v1, %v920_v27 }
 0x4e1   :  { %v1246_v20 = vmul.f32 1.442695, %v1241_v31 }
 0x4e2   :  { %v950_v32 = vmul.f32 1.442695, %v942_v23 }
 0x4e3   :  { %3802 = vpow2.f32 %v1246_v20 }
 0x4e4   :  { %3804 = vpow2.f32 %v950_v32 }
 0x4e5   :  { %3806 = vpow2.f32 %v1248_v38 }
 0x4e6   :  { %v1239_v37 = vpop.xlane.xlu2 %1238 }
 0x4e7   :  { %v926_v39 = vpop.xlane.xlu1 %925  ;;  %v1243_v0 = vsub.f32 %v4507_v26, %v1239_v37 }
 0x4e8   :  { %v944_v41 = vsub.f32 %v4509_v57, %v926_v39 }
 0x4e9   :  { %v4599_v15 = vpop.eup %3802  ;;  %v1250_v1 = vmul.f32 1.442695, %v1243_v0 }
 0x4ea   :  { %5889 = vst [vmem:[#allocation4_spill] sm:$0xff] %v4599_v15  ;;  %v4601_v3 = vpop.eup %3804  ;;  %v954_v42 = vmul.f32 1.442695, %v944_v41  ;;  %3532 = vmatmul.msk.f32.gmra.mxu1 %vm536_vm14, %v4599_v15 }
 0x4eb   :  { %v966_v59 = vsel %vm80_vm0, %v4601_v3, 0.0  ;;  %v4610_v47 = vpop.eup %3806 }
 0x4ec   :  { %3808 = vpow2.f32 %v954_v42  ;;  %967 = vadd.xlane.f32.xlu2 %v966_v59  ;;  %5890 = vst [vmem:[#allocation5_spill] sm:$0xff] %v4610_v47 }
 0x4ed   :  { %3810 = vpow2.f32 %v1250_v1 }
 0x4ee   :  { %v923_v18 = vpop.xlane.xlu2 %922 }
 0x4ef   :  { %v943_v57 = vsub.f32 %v4522_v17, %v923_v18  ;;  %v932_v43 = vpop.xlane.xlu1 %931 }
 0x4f0   :  { %v946_v44 = vsub.f32 %v4524_v21, %v932_v43 }
 0x4f1   :  { %v952_v26 = vmul.f32 1.442695, %v943_v57 }
 0x4f2   :  { %v4612_v49 = vpop.eup %3808  ;;  %v958_v51 = vmul.f32 1.442695, %v946_v44  ;;  %3533 = vmatmul.msk.f32.gmra.mxu1 %vm536_vm14, %v4610_v47 }
 0x4f3   :  { %3812 = vpow2.f32 %v952_v26  ;;  %v972_v53 = vsel %vm80_vm0, %v4612_v49, 0.0  ;;  %v4619_v56 = vpop.eup %3810 }
 0x4f4   :  { %3814 = vpow2.f32 %v958_v51  ;;  %973 = vadd.xlane.f32.xlu1 %v972_v53  ;;  %5891 = vst [vmem:[#allocation6_spill] sm:$0xff] %v4619_v56 }
 0x4f6   :  { %v929_v17 = vpop.xlane.xlu2 %928 }
 0x4f7   :  { %v945_v54 = vsub.f32 %v4537_v62, %v929_v17  ;;  %v938_v21 = vpop.xlane.xlu1 %937 }
 0x4f8   :  { %v948_v58 = vsub.f32 %v4539_v28, %v938_v21 }
 0x4f9   :  { %v4622_v29 = vpop.eup %3812  ;;  %v956_v52 = vmul.f32 1.442695, %v945_v54 }
 0x4fa   :  { %v4624_v60 = vpop.eup %3814  ;;  %v962_v61 = vmul.f32 1.442695, %v948_v58  ;;  %3534 = vmatmul.msk.f32.gmra.mxu1 %vm536_vm14, %v4619_v56  ;;  %v969_v63 = vsel %vm80_vm0, %v4622_v29, 0.0 }
 0x4fb   :  { %3816 = vpow2.f32 %v956_v52  ;;  %970 = vadd.xlane.f32.xlu2 %v969_v63  ;;  %v978_v62 = vsel %vm80_vm0, %v4624_v60, 0.0 }
 0x4fc   :  { %3818 = vpow2.f32 %v962_v61  ;;  %979 = vadd.xlane.f32.xlu1 %v978_v62 }
 0x4fe   :  { %v935_v28 = vpop.xlane.xlu2 %934 }
 0x4ff   :  { %v947_v4 = vsub.f32 %v4552_v36, %v935_v28  ;;  %v941_v5 = vpop.xlane.xlu1 %940 }
 0x500   :  { %v949_v7 = vsub.f32 %v4554_v30, %v941_v5 }
 0x501   :  { %v4633_v6 = vpop.eup %3816  ;;  %v960_v45 = vmul.f32 1.442695, %v947_v4 }
 0x502   :  { %v4636_v8 = vpop.eup %3818  ;;  %v975_v10 = vsel %vm80_vm0, %v4633_v6, 0.0  ;;  %v964_v12 = vmul.f32 1.442695, %v949_v7 }
 0x503   :  { %3820 = vpow2.f32 %v960_v45  ;;  %976 = vadd.xlane.f32.xlu2 %v975_v10  ;;  %v984_v11 = vsel %vm80_vm0, %v4636_v8, 0.0 }
 0x504   :  { %985 = vadd.xlane.f32.xlu1 %v984_v11  ;;  %3822 = vpow2.f32 %v964_v12 }
 0x508   :  { %s3740_s10 = spop %3739 }
 0x509   :  { %v4642_v13 = vpop.eup %3820 }
 0x50a   :  { %v981_v36 = vsel %vm80_vm0, %v4642_v13, 0.0  ;;  %v4646_v9 = vpop.eup %3822 }
 0x50b   :  { %982 = vadd.xlane.f32.xlu2 %v981_v36  ;;  %s3742_s0 = spop %3741  ;;  %v987_v22 = vsel %vm80_vm0, %v4646_v9, 0.0 }
 0x50c   :  { %s840_s11 = smul.f32 %s3742_s0, %s3740_s10 }
 0x50e   :  { %v841_v30 = vstv %s840_s11 }
 0x50f   :  { %3824 = vrcp.f32 %v841_v30  ;;  %v853_v31 = vand.u32 2147483648, %v841_v30  ;;  %v851_v23 = vand.u32 2147483647, %v841_v30  ;;  %vm847_vm5 = vweird.f32 %v841_v30 }
 0x511   :  { %v854_v32 = vor.u32 1.1754944e-38, %v853_v31  ;;  %vm852_vm7 = vcmp.eq.f32.partialorder %v851_v23, 8.507059e+37 }
 0x513   :  { %988 = vadd.xlane.f32.xlu2 %v987_v22 }
 0x515   :  { %v3825_v24 = vpop.eup %3824 }
 0x516   :  { %v843_v55 = vmul.f32 %v3825_v24, %v841_v30  ;;  %vm848_vm4 = vweird.f32 %v3825_v24 }
 0x517   :  { %vm849_vm6 = vmor %vm847_vm5, %vm848_vm4 }
 0x518   :  { %v844_v25 = vsub.f32 1.0, %v843_v55 }
 0x51a   :  { %v845_v27 = vmul.f32 %v3825_v24, %v844_v25 }
 0x51c   :  { %v846_v20 = vadd.f32 %v3825_v24, %v845_v27 }
 0x51e   :  { %v1478_v33 = vpop.trf.xlu0  ;;  %v850_v37 = vsel %vm849_vm6, %v3825_v24, %v846_v20 }
 0x51f   :  { %v855_v38 = vsel %vm852_vm7, %v854_v32, %v850_v37 }
 0x520   :  { %3743 = vpush %v855_v38 }
 0x526   :  { %v1479_v39 = vpop.trf.xlu0 }
 0x52e   :  { %v1480_v41 = vpop.trf.xlu0 }
 0x536   :  { %v1481_v0 = vpop.trf.xlu0 }
 0x53e   :  { %v1482_v42 = vpop.trf.xlu0 }
 0x546   :  { %v1483_v59 = vpop.trf.xlu0 }
 0x54e   :  { %v1484_v1 = vpop.trf.xlu0 }
 0x551   :  { %s3744_s15 = spop %3743 }
 0x552   :  { %v1494_v18 = vstv %s3744_s15 }
 0x553   :  { %v4653_v44 = vmul.f32 %v1494_v18, %v1484_v1  ;;  %v4656_v26 = vmul.f32 %v1494_v18, %v1483_v59  ;;  %v4659_v51 = vmul.f32 %v1494_v18, %v1482_v42  ;;  %v4662_v17 = vmul.f32 %v1494_v18, %v1481_v0 }
 0x554   :  { %v4665_v54 = vmul.f32 %v1494_v18, %v1480_v41  ;;  %v4668_v21 = vmul.f32 %v1494_v18, %v1479_v39  ;;  %v4671_v58 = vmul.f32 %v1494_v18, %v1478_v33 }
 0x556   :  { %v1485_v57 = vpop.trf.xlu0 }
 0x557   :  { %v4650_v43 = vmul.f32 %v1494_v18, %v1485_v57 }
 0x559   :  { %1535 = vmatpush.msrb.mxu0 %v4650_v43 }
 0x55b   :  { %1536 = vmatpush.msrb.mxu0 %v4653_v44 }
 0x55d   :  { %1537 = vmatpush.msrb.mxu0 %v4656_v26 }
 0x55f   :  { %v968_v53 = vpop.xlane.xlu2 %967  ;;  %1538 = vmatpush.msrb.mxu0 %v4659_v51 }
 0x560   :  { %3826 = vrcp.f32 %v968_v53  ;;  %v1001_v4 = vand.u32 2147483648, %v968_v53  ;;  %v999_v45 = vand.u32 2147483647, %v968_v53  ;;  %vm995_vm9 = vweird.f32 %v968_v53 }
 0x561   :  { %1539 = vmatpush.msrb.mxu0 %v4662_v17 }
 0x562   :  { %v1002_v11 = vor.u32 1.1754944e-38, %v1001_v4  ;;  %vm1000_vm11 = vcmp.eq.f32.partialorder %v999_v45, 8.507059e+37 }
 0x563   :  { %1540 = vmatpush.msrb.mxu0 %v4665_v54 }
 0x565   :  { %1541 = vmatpush.msrb.mxu0 %v4668_v21 }
 0x566   :  { %v3827_v52 = vpop.eup %3826 }
 0x567   :  { %v991_v61 = vmul.f32 %v3827_v52, %v968_v53  ;;  %v4673_v63 = vpop.xlane.xlu1 %973  ;;  %1542 = vmatpush.msrb.mxu0 %v4671_v58  ;;  %vm996_vm8 = vweird.f32 %v3827_v52 }
 0x568   :  { %3535 = vmatmul.msk.f32.vlgmr.msrb.gmra.mxu0 %vm536_vm14, %v4407_v50  ;;  %3828 = vrcp.f32 %v4673_v63  ;;  %vm997_vm10 = vmor %vm995_vm9, %vm996_vm8  ;;  %v1031_v18 = vand.u32 2147483648, %v4673_v63  ;;  %vm1025_vm3 = vweird.f32 %v4673_v63 }
 0x569   :  { %v992_v62 = vsub.f32 1.0, %v991_v61  ;;  %v1029_v61 = vand.u32 2147483647, %v4673_v63 }
 0x56b   :  { %v993_v28 = vmul.f32 %v3827_v52, %v992_v62  ;;  %vm1030_vm5 = vcmp.eq.f32.partialorder %v1029_v61, 8.507059e+37 }
 0x56d   :  { %v994_v5 = vadd.f32 %v3827_v52, %v993_v28 }
 0x56e   :  { %v971_v7 = vpop.xlane.xlu2 %970  ;;  %v3829_v10 = vpop.eup %3828 }
 0x56f   :  { %3830 = vrcp.f32 %v971_v7  ;;  %v998_v12 = vsel %vm997_vm10, %v3827_v52, %v994_v5  ;;  %v1021_v30 = vmul.f32 %v3829_v10, %v4673_v63  ;;  %v4684_v27 = vpop.xlane.xlu1 %979  ;;  %v1016_v32 = vand.u32 2147483648, %v971_v7 }
 0x570   :  { %3536 = vmatmul.msk.f32.gmra.mxu0 %vm536_vm14, %v4415_v2  ;;  %v1003_v36 = vsel %vm1000_vm11, %v1002_v11, %v998_v12  ;;  %vm1010_vm13 = vweird.f32 %v971_v7  ;;  %vm1026_vm2 = vweird.f32 %v3829_v10  ;;  %v1032_v5 = vor.u32 1.1754944e-38, %v1031_v18 }
 0x571   :  { %v1004_v22 = vmul.f32 %v4601_v3, %v1003_v36  ;;  %v1022_v31 = vsub.f32 1.0, %v1021_v30  ;;  %v1014_v3 = vand.u32 2147483647, %v971_v7  ;;  %v1017_v39 = vor.u32 1.1754944e-38, %v1016_v32  ;;  %vm1027_vm4 = vmor %vm1025_vm3, %vm1026_vm2 }
 0x572   :  { %vm1055_vm11 = vweird.f32 %v4684_v27 }
 0x573   :  { %3511 = vmatmul.msk.f32.vlgmr.msrb.gmra.mxu3 %vm80_vm0, %v1004_v22  ;;  %v1023_v33 = vmul.f32 %v3829_v10, %v1022_v31  ;;  %vm1015_vm1 = vcmp.eq.f32.partialorder %v1014_v3, 8.507059e+37  ;;  %v1059_v3 = vand.u32 2147483647, %v4684_v27 }
 0x575   :  { %v3831_v24 = vpop.eup %3830  ;;  %v1024_v59 = vadd.f32 %v3829_v10, %v1023_v33 }
 0x576   :  { %v1006_v55 = vmul.f32 %v3831_v24, %v971_v7  ;;  %v977_v25 = vpop.xlane.xlu2 %976  ;;  %vm1011_vm12 = vweird.f32 %v3831_v24 }
 0x577   :  { %3832 = vrcp.f32 %v977_v25  ;;  %vm1012_vm15 = vmor %vm1010_vm13, %vm1011_vm12  ;;  %v1028_v4 = vsel %vm1027_vm4, %v3829_v10, %v1024_v59  ;;  %v4700_v11 = vpop.xlane.xlu1 %985  ;;  %v1046_v36 = vand.u32 2147483648, %v977_v25  ;;  %vm1040_vm7 = vweird.f32 %v977_v25 }
 0x578   :  { %v1007_v23 = vsub.f32 1.0, %v1006_v55  ;;  %3537 = vmatmul.msk.f32.gmra.mxu0 %vm536_vm14, %v4424_v16  ;;  %3834 = vrcp.f32 %v4684_v27  ;;  %v1033_v45 = vsel %vm1030_vm5, %v1032_v5, %v1028_v4  ;;  %v1044_v30 = vand.u32 2147483647, %v977_v25 }
 0x579   :  { %v1034_v63 = vmul.f32 %v4612_v49, %v1033_v45  ;;  %v1047_v55 = vor.u32 1.1754944e-38, %v1046_v36  ;;  %v1061_v49 = vand.u32 2147483648, %v4684_v27  ;;  %vm1060_vm13 = vcmp.eq.f32.partialorder %v1059_v3, 8.507059e+37 }
 0x57a   :  { %v1008_v20 = vmul.f32 %v3831_v24, %v1007_v23  ;;  %vm1045_vm9 = vcmp.eq.f32.partialorder %v1044_v30, 8.507059e+37  ;;  %v1091_v45 = vand.u32 2147483648, %v4700_v11  ;;  %vm1085_vm5 = vweird.f32 %v4700_v11 }
 0x57c   :  { %v1009_v37 = vadd.f32 %v3831_v24, %v1008_v20 }
 0x57d   :  { %v3833_v38 = vpop.eup %3832 }
 0x57e   :  { %v1036_v41 = vmul.f32 %v3833_v38, %v977_v25  ;;  %v1013_v0 = vsel %vm1012_vm15, %v3831_v24, %v1009_v37  ;;  %v4689_v42 = vpop.xlane.xlu2 %982  ;;  %v3835_v1 = vpop.eup %3834  ;;  %vm1041_vm6 = vweird.f32 %v3833_v38 }
 0x57f   :  { %v1018_v53 = vsel %vm1015_vm1, %v1017_v39, %v1013_v0  ;;  %3836 = vrcp.f32 %v4689_v42  ;;  %v1051_v62 = vmul.f32 %v3835_v1, %v4684_v27  ;;  %vm1042_vm8 = vmor %vm1040_vm7, %vm1041_vm6  ;;  %vm1056_vm10 = vweird.f32 %v3835_v1 }
 0x580   :  { %v1037_v57 = vsub.f32 1.0, %v1036_v41  ;;  %3538 = vmatmul.msk.f32.gmra.mxu0 %vm536_vm14, %v4433_v35  ;;  %v1019_v52 = vmul.f32 %v4622_v29, %v1018_v53  ;;  %3838 = vrcp.f32 %v4700_v11  ;;  %vm1057_vm12 = vmor %vm1055_vm11, %vm1056_vm10  ;;  %v1062_v41 = vor.u32 1.1754944e-38, %v1061_v49 }
 0x581   :  { %v1052_v7 = vsub.f32 1.0, %v1051_v62  ;;  %v1076_v53 = vand.u32 2147483648, %v4689_v42  ;;  %vm1070_vm1 = vweird.f32 %v4689_v42  ;;  %v1074_v27 = vand.u32 2147483647, %v4689_v42 }
 0x582   :  { %v1038_v28 = vmul.f32 %v3833_v38, %v1037_v57  ;;  %3512 = vmatmul.msk.f32.gmra.mxu3 %vm80_vm0, %v1019_v52 }
 0x583   :  { %v1053_v10 = vmul.f32 %v3835_v1, %v1052_v7  ;;  %v1077_v62 = vor.u32 1.1754944e-38, %v1076_v53  ;;  %vm1075_vm3 = vcmp.eq.f32.partialorder %v1074_v27, 8.507059e+37 }
 0x584   :  { %v1039_v12 = vadd.f32 %v3833_v38, %v1038_v28 }
 0x585   :  { %v3837_v29 = vpop.eup %3836  ;;  %v1054_v32 = vadd.f32 %v3835_v1, %v1053_v10 }
 0x586   :  { %v1066_v22 = vmul.f32 %v3837_v29, %v4689_v42  ;;  %v1043_v24 = vsel %vm1042_vm8, %v3833_v38, %v1039_v12  ;;  %v989_v20 = vpop.xlane.xlu2 %988  ;;  %v3839_v33 = vpop.eup %3838  ;;  %vm1071_vm15 = vweird.f32 %v3837_v29  ;;  %v1089_v42 = vand.u32 2147483647, %v4700_v11 }
 0x587   :  { %v1048_v31 = vsel %vm1045_vm9, %v1047_v55, %v1043_v24  ;;  %3840 = vrcp.f32 %v989_v20  ;;  %v1081_v37 = vmul.f32 %v3839_v33, %v4700_v11  ;;  %v1058_v39 = vsel %vm1057_vm12, %v3835_v1, %v1054_v32  ;;  %vm1072_vm2 = vmor %vm1070_vm1, %vm1071_vm15 }
 0x588   :  { %3539 = vmatmul.msk.f32.gmra.mxu0 %vm536_vm14, %v4439_v46  ;;  %v1067_v23 = vsub.f32 1.0, %v1066_v22  ;;  %v1049_v25 = vmul.f32 %v4633_v6, %v1048_v31  ;;  %v1063_v0 = vsel %vm1060_vm13, %v1062_v41, %v1058_v39  ;;  %vm1086_vm4 = vweird.f32 %v3839_v33  ;;  %v4774_v41 = vld [vmem:[%s5845_s9 + $0x20] sm:$0xff] }
 0x589   :  { %v1082_v59 = vsub.f32 1.0, %v1081_v37  ;;  %v1064_v6 = vmul.f32 %v4624_v60, %v1063_v0  ;;  %vm1087_vm6 = vmor %vm1085_vm5, %vm1086_vm4  ;;  %vm1090_vm7 = vcmp.eq.f32.partialorder %v1089_v42, 8.507059e+37  ;;  %v1106_v30 = vand.u32 2147483648, %v989_v20  ;;  %v4764_v37 = vld [vmem:[%s5845_s9 + $0x28] sm:$0xff] }
 0x58a   :  { %3513 = vmatmul.msk.f32.gmra.mxu3 %vm80_vm0, %v1034_v63  ;;  %v1068_v38 = vmul.f32 %v3837_v29, %v1067_v23  ;;  %vm1100_vm9 = vweird.f32 %v989_v20  ;;  %v1104_v22 = vand.u32 2147483647, %v989_v20  ;;  %v4789_v53 = vmul.f32 7.0, %v4774_v41 }
 0x58b   :  { %v1083_v1 = vmul.f32 %v3839_v33, %v1082_v59  ;;  %v1107_v11 = vor.u32 1.1754944e-38, %v1106_v30  ;;  %v4779_v59 = vmul.f32 7.0, %v4764_v37 }
 0x58c   :  { %v1069_v18 = vadd.f32 %v3837_v29, %v1068_v38  ;;  %vm1105_vm11 = vcmp.eq.f32.partialorder %v1104_v22, 8.507059e+37  ;;  %v1397_v22 = vld [vmem:[%s5846_s16] sm:$0xff] }
 0x58d   :  { %v3841_v57 = vpop.eup %3840  ;;  %v1084_v5 = vadd.f32 %v3839_v33, %v1083_v1  ;;  %1417 = vmatmul.f32.vlgmr.msra.gmra.mxu2 %v1397_v22 }
 0x58e   :  { %v1096_v52 = vmul.f32 %v3841_v57, %v989_v20  ;;  %v1073_v61 = vsel %vm1072_vm2, %v3837_v29, %v1069_v18  ;;  %v1092_v29 = vor.u32 1.1754944e-38, %v1091_v45  ;;  %vm1101_vm8 = vweird.f32 %v3841_v57  ;;  %v4784_v18 = vld [vmem:[%s5845_s9 + $0x18] sm:$0xff] }
 0x58f   :  { %v1078_v28 = vsel %vm1075_vm3, %v1077_v62, %v1073_v61  ;;  %v1088_v12 = vsel %vm1087_vm6, %v3839_v33, %v1084_v5  ;;  %vm1102_vm10 = vmor %vm1100_vm9, %vm1101_vm8  ;;  %v4799_v1 = vmul.f32 7.0, %v4784_v18 }
 0x590   :  { %3540 = vmatmul.msk.f32.gmra.mxu0 %vm536_vm14, %v4452_v48  ;;  %v1097_v4 = vsub.f32 1.0, %v1096_v52  ;;  %v1079_v60 = vmul.f32 %v4642_v13, %v1078_v28  ;;  %v1093_v36 = vsel %vm1090_vm7, %v1092_v29, %v1088_v12  ;;  %v4804_v52 = vld [vmem:[%s5845_s9 + $0x8] sm:$0xff]  ;;  %v4814_v28 = vld [vmem:[%s5845_s9] sm:$0xff]  ;;  %v4846_v12 = vpop.f32.mrf.mxu1 }
 0x591   :  { %v1094_v10 = vmul.f32 %v4636_v8, %v1093_v36  ;;  %v4819_v5 = vmul.f32 7.0, %v4804_v52  ;;  %5892 = vst [vmem:[#allocation7_spill] sm:$0xff] %v4846_v12 }
 0x592   :  { %3514 = vmatmul.msk.f32.gmra.mxu3 %vm80_vm0, %v1049_v25  ;;  %v1098_v7 = vmul.f32 %v3841_v57, %v1097_v4  ;;  %v4756_v25 = vld [vmem:[%s5845_s9 + $0x30] sm:$0xff] }
 0x593   :  { %v4767_v38 = vmul.f32 7.0, %v4756_v25 }
 0x594   :  { %v1099_v63 = vadd.f32 %v3841_v57, %v1098_v7 }
 0x596   :  { %v1103_v13 = vsel %vm1102_vm10, %v3841_v57, %v1099_v63 }
 0x597   :  { %v1108_v24 = vsel %vm1105_vm11, %v1107_v11, %v1103_v13  ;;  %v1398_v11 = vld [vmem:[%s5846_s16 + $0x8] sm:$0xff] }
 0x598   :  { %3541 = vmatmul.msk.f32.gmra.mxu0 %vm536_vm14, %v4462_v34  ;;  %v1109_v55 = vmul.f32 %v4646_v9, %v1108_v24  ;;  %v4751_v9 = vld [vmem:[%s5845_s9 + $0x38] sm:$0xff]  ;;  %v4848_v29 = vpop.f32.mrf.mxu1  ;;  %1420 = vmatmul.f32.gmra.mxu2 %v1398_v11  ;;  %v4877_v11 = vmul.f32 15.0, %v4774_v41 }
 0x599   :  { %v4759_v3 = vmul.f32 7.0, %v4751_v9  ;;  %5893 = vst [vmem:[#allocation8_spill] sm:$0xff] %v4848_v29 }
 0x59a   :  { %3515 = vmatmul.msk.f32.gmra.mxu3 %vm80_vm0, %v1064_v6  ;;  %v4794_v6 = vld [vmem:[%s5845_s9 + $0x10] sm:$0xff] }
 0x59b   :  { %v4809_v62 = vmul.f32 7.0, %v4794_v6  ;;  %v4885_v56 = vmul.f32 15.0, %v4794_v6 }
 0x5a0   :  { %3542 = vmatmul.msk.f32.gmra.mxu0 %vm536_vm14, %v4467_v19  ;;  %v4850_v36 = vpop.f32.mrf.mxu1 }
 0x5a1   :  { %5894 = vst [vmem:[#allocation9_spill] sm:$0xff] %v4850_v36 }
 0x5a2   :  { %3516 = vmatmul.msk.f32.gmra.mxu3 %vm80_vm0, %v1079_v60  ;;  %v4824_v60 = vmul.f32 7.0, %v4814_v28 }
 0x5a8   :  { %v4852_v63 = vpop.f32.mrf.mxu1 }
 0x5a9   :  { %5895 = vst [vmem:[#allocation10_spill] sm:$0xff] %v4852_v63 }
 0x5aa   :  { %3517 = vmatmul.msk.f32.gmra.mxu3 %vm80_vm0, %v1094_v10 }
 0x5b2   :  { %3518 = vmatmul.msk.f32.gmra.mxu3 %vm80_vm0, %v1109_v55  ;;  %v1399_v55 = vld [vmem:[%s5846_s16 + $0x10] sm:$0xff] }
 0x5b3   :  { %1423 = vmatmul.f32.gmra.mxu2 %v1399_v55 }
 0x5e5   :  { %v4734_v31 = vpop.f32.mrf.mxu0 }
 0x5e6   :  { %v1568_v7 = vsub.f32 %v4824_v60, %v4734_v31 }
 0x5ed   :  { %v4736_v23 = vpop.f32.mrf.mxu0 }
 0x5ee   :  { %v1569_v42 = vsub.f32 %v4819_v5, %v4736_v23 }
 0x5f5   :  { %v4738_v32 = vpop.f32.mrf.mxu0 }
 0x5f6   :  { %v1570_v45 = vsub.f32 %v4809_v62, %v4738_v32 }
 0x5fd   :  { %v4740_v33 = vpop.f32.mrf.mxu0 }
 0x5fe   :  { %v1571_v4 = vsub.f32 %v4799_v1, %v4740_v33 }
 0x605   :  { %v4742_v8 = vpop.f32.mrf.mxu0 }
 0x606   :  { %v1572_v61 = vsub.f32 %v4789_v53, %v4742_v8 }
 0x60d   :  { %v4744_v20 = vpop.f32.mrf.mxu0 }
 0x60e   :  { %v1573_v27 = vsub.f32 %v4779_v59, %v4744_v20 }
 0x615   :  { %v4746_v49 = vpop.f32.mrf.mxu0 }
 0x616   :  { %v1574_v57 = vsub.f32 %v4767_v38, %v4746_v49 }
 0x61d   :  { %v4769_v39 = vpop.f32.mrf.mxu0 }
 0x61e   :  { %v1575_v0 = vsub.f32 %v4759_v3, %v4769_v39 }
 0x620   :  { %1608 = vmatpush.msrb.mxu1 %v1575_v0 }
 0x622   :  { %1609 = vmatpush.msrb.mxu1 %v1574_v57  ;;  %v1400_v57 = vld [vmem:[%s5846_s16 + $0x18] sm:$0xff] }
 0x623   :  { %1426 = vmatmul.f32.gmra.mxu2 %v1400_v57  ;;  %v4881_v57 = vmul.f32 15.0, %v4784_v18 }
 0x624   :  { %1610 = vmatpush.msrb.mxu1 %v1573_v27 }
 0x626   :  { %1611 = vmatpush.msrb.mxu1 %v1572_v61 }
 0x628   :  { %1612 = vmatpush.msrb.mxu1 %v1571_v4  ;;  %v4867_v4 = vmul.f32 15.0, %v4751_v9 }
 0x62a   :  { %1613 = vmatpush.msrb.mxu1 %v1570_v45  ;;  %v4870_v45 = vmul.f32 15.0, %v4756_v25 }
 0x62c   :  { %1614 = vmatpush.msrb.mxu1 %v1569_v42 }
 0x62e   :  { %1615 = vmatpush.msrb.mxu1 %v1568_v7  ;;  %v4873_v7 = vmul.f32 15.0, %v4764_v37 }
 0x62f   :  { %3543 = vmatmul.msk.f32.vlgmr.msrb.gmra.mxu1 %vm536_vm14, %v4734_v31 }
 0x637   :  { %3544 = vmatmul.msk.f32.gmra.mxu1 %vm536_vm14, %v4736_v23 }
 0x63f   :  { %3545 = vmatmul.msk.f32.gmra.mxu1 %vm536_vm14, %v4738_v32 }
 0x647   :  { %3546 = vmatmul.msk.f32.gmra.mxu1 %vm536_vm14, %v4740_v33 }
 0x64f   :  { %3547 = vmatmul.msk.f32.gmra.mxu1 %vm536_vm14, %v4742_v8 }
 0x657   :  { %3548 = vmatmul.msk.f32.gmra.mxu1 %vm536_vm14, %v4744_v20 }
 0x65f   :  { %3549 = vmatmul.msk.f32.gmra.mxu1 %vm536_vm14, %v4746_v49 }
 0x667   :  { %3550 = vmatmul.msk.f32.gmra.mxu1 %vm536_vm14, %v4769_v39 }
 0x6ac   :  { %v1617_v30 = vpop.f32.mrf.mxu1 }
 0x6b4   :  { %v1620_v10 = vpop.f32.mrf.mxu1 }
 0x6bc   :  { %v1623_v13 = vpop.f32.mrf.mxu1 }
 0x6c4   :  { %v1626_v24 = vpop.f32.mrf.mxu1 }
 0x6c5   :  { %v1644_v15 = vsub.f32 %v4881_v57, %v1626_v24  ;;  %v4929_v24 = vmul.f32 13.0, %v4764_v37 }
 0x6cc   :  { %v1629_v0 = vpop.f32.mrf.mxu1 }
 0x6cd   :  { %v1645_v47 = vsub.f32 %v4877_v11, %v1629_v0 }
 0x6d4   :  { %v1632_v27 = vpop.f32.mrf.mxu1 }
 0x6d5   :  { %v1646_v14 = vsub.f32 %v4873_v7, %v1632_v27 }
 0x6dc   :  { %v1635_v61 = vpop.f32.mrf.mxu1 }
 0x6dd   :  { %v1647_v55 = vsub.f32 %v4870_v45, %v1635_v61  ;;  %v4893_v61 = vmul.f32 15.0, %v4814_v28 }
 0x6e4   :  { %v1638_v42 = vpop.f32.mrf.mxu1 }
 0x6e5   :  { %v1648_v22 = vsub.f32 %v4867_v4, %v1638_v42  ;;  %v4889_v42 = vmul.f32 15.0, %v4804_v52 }
 0x6e7   :  { %1657 = vmatpush.msrb.mxu2 %v1648_v22  ;;  %v1643_v22 = vsub.f32 %v4885_v56, %v1623_v13  ;;  %v1642_v27 = vsub.f32 %v4889_v42, %v1620_v10 }
 0x6e9   :  { %1658 = vmatpush.msrb.mxu2 %v1647_v55  ;;  %v1641_v55 = vsub.f32 %v4893_v61, %v1617_v30 }
 0x6eb   :  { %1659 = vmatpush.msrb.mxu2 %v1646_v14  ;;  %v4914_v14 = vpop.f32.mrf.mxu2 }
 0x6ec   :  { %5896 = vst [vmem:[#allocation11_spill] sm:$0xff] %v4914_v14 }
 0x6ed   :  { %1660 = vmatpush.msrb.mxu2 %v1645_v47 }
 0x6ef   :  { %1661 = vmatpush.msrb.mxu2 %v1644_v15 }
 0x6f1   :  { %1662 = vmatpush.msrb.mxu2 %v1643_v22  ;;  %v4933_v22 = vmul.f32 13.0, %v4774_v41 }
 0x6f3   :  { %1663 = vmatpush.msrb.mxu2 %v1642_v27  ;;  %v4916_v15 = vpop.f32.mrf.mxu2 }
 0x6f4   :  { %5897 = vst [vmem:[#allocation12_spill] sm:$0xff] %v4916_v15 }
 0x6f5   :  { %1664 = vmatpush.msrb.mxu2 %v1641_v55  ;;  %v4937_v55 = vmul.f32 13.0, %v4784_v18 }
 0x6f6   :  { %3551 = vmatmul.msk.f32.vlgmr.msrb.gmra.mxu2 %vm536_vm14, %v4734_v31 }
 0x6fb   :  { %v4918_v47 = vpop.f32.mrf.mxu2 }
 0x6fc   :  { %5898 = vst [vmem:[#allocation13_spill] sm:$0xff] %v4918_v47 }
 0x6fe   :  { %3552 = vmatmul.msk.f32.gmra.mxu2 %vm536_vm14, %v4736_v23 }
 0x703   :  { %v4920_v31 = vpop.f32.mrf.mxu2 }
 0x704   :  { %5899 = vst [vmem:[#allocation14_spill] sm:$0xff] %v4920_v31 }
 0x706   :  { %3553 = vmatmul.msk.f32.gmra.mxu2 %vm536_vm14, %v4738_v32 }
 0x70e   :  { %3554 = vmatmul.msk.f32.gmra.mxu2 %vm536_vm14, %v4740_v33 }
 0x716   :  { %3555 = vmatmul.msk.f32.gmra.mxu2 %vm536_vm14, %v4742_v8 }
 0x71e   :  { %3556 = vmatmul.msk.f32.gmra.mxu2 %vm536_vm14, %v4744_v20 }
 0x726   :  { %3557 = vmatmul.msk.f32.gmra.mxu2 %vm536_vm14, %v4746_v49  ;;  %v4923_v49 = vmul.f32 13.0, %v4751_v9 }
 0x72e   :  { %3558 = vmatmul.msk.f32.gmra.mxu2 %vm536_vm14, %v4769_v39  ;;  %v4926_v39 = vmul.f32 13.0, %v4756_v25  ;;  %v4941_v25 = vmul.f32 13.0, %v4794_v6 }
 0x779   :  { %v1666_v23 = vpop.f32.mrf.mxu2 }
 0x781   :  { %v1669_v32 = vpop.f32.mrf.mxu2 }
 0x789   :  { %v1672_v33 = vpop.f32.mrf.mxu2 }
 0x78a   :  { %v1692_v18 = vsub.f32 %v4941_v25, %v1672_v33 }
 0x791   :  { %v1675_v8 = vpop.f32.mrf.mxu2 }
 0x792   :  { %v1693_v41 = vsub.f32 %v4937_v55, %v1675_v8 }
 0x799   :  { %v1678_v30 = vpop.f32.mrf.mxu2 }
 0x79a   :  { %v1694_v37 = vsub.f32 %v4933_v22, %v1678_v30 }
 0x7a1   :  { %v1681_v20 = vpop.f32.mrf.mxu2 }
 0x7a2   :  { %v1695_v9 = vsub.f32 %v4929_v24, %v1681_v20 }
 0x7a9   :  { %v1684_v10 = vpop.f32.mrf.mxu2 }
 0x7aa   :  { %v1696_v27 = vsub.f32 %v4926_v39, %v1684_v10  ;;  %v4949_v10 = vmul.f32 13.0, %v4814_v28 }
 0x7ac   :  { %v1690_v6 = vsub.f32 %v4949_v10, %v1666_v23 }
 0x7b1   :  { %v1687_v13 = vpop.f32.mrf.mxu2 }
 0x7b2   :  { %v1697_v0 = vsub.f32 %v4923_v49, %v1687_v13  ;;  %v4945_v13 = vmul.f32 13.0, %v4804_v52  ;;  %v4968_v52 = vpop.f32.mrf.mxu3 }
 0x7b3   :  { %5900 = vst [vmem:[#allocation15_spill] sm:$0xff] %v4968_v52 }
 0x7b4   :  { %1730 = vmatpush.msra.mxu3 %v1697_v0  ;;  %v1691_v20 = vsub.f32 %v4945_v13, %v1669_v32 }
 0x7b6   :  { %1731 = vmatpush.msra.mxu3 %v1696_v27 }
 0x7b8   :  { %1732 = vmatpush.msra.mxu3 %v1695_v9 }
 0x7ba   :  { %1733 = vmatpush.msra.mxu3 %v1694_v37 }
 0x7bc   :  { %1734 = vmatpush.msra.mxu3 %v1693_v41 }
 0x7be   :  { %1735 = vmatpush.msra.mxu3 %v1692_v18 }
 0x7c0   :  { %1736 = vmatpush.msra.mxu3 %v1691_v20 }
 0x7c2   :  { %1737 = vmatpush.msra.mxu3 %v1690_v6 }
 0x7c3   :  { %3559 = vmatmul.msk.f32.vlgmr.msra.gmra.mxu3 %vm536_vm14, %v4671_v58 }
 0x7cb   :  { %3560 = vmatmul.msk.f32.gmra.mxu3 %vm536_vm14, %v4668_v21  ;;  %v4972_v21 = vpop.f32.mrf.mxu3 }
 0x7cc   :  { %5901 = vst [vmem:[#allocation16_spill] sm:$0xff] %v4972_v21 }
 0x7d3   :  { %3561 = vmatmul.msk.f32.gmra.mxu3 %vm536_vm14, %v4665_v54  ;;  %v4974_v54 = vpop.f32.mrf.mxu3 }
 0x7d4   :  { %5902 = vst [vmem:[#allocation17_spill] sm:$0xff] %v4974_v54 }
 0x7db   :  { %3562 = vmatmul.msk.f32.gmra.mxu3 %vm536_vm14, %v4662_v17  ;;  %v4976_v58 = vpop.f32.mrf.mxu3 }
 0x7dc   :  { %5903 = vst [vmem:[#allocation18_spill] sm:$0xff] %v4976_v58 }
 0x7e3   :  { %3563 = vmatmul.msk.f32.gmra.mxu3 %vm536_vm14, %v4659_v51  ;;  %v4978_v17 = vpop.f32.mrf.mxu3 }
 0x7e4   :  { %5904 = vst [vmem:[#allocation19_spill] sm:$0xff] %v4978_v17 }
 0x7eb   :  { %3564 = vmatmul.msk.f32.gmra.mxu3 %vm536_vm14, %v4656_v26  ;;  %v4980_v51 = vpop.f32.mrf.mxu3 }
 0x7ec   :  { %5905 = vst [vmem:[#allocation20_spill] sm:$0xff] %v4980_v51 }
 0x7f3   :  { %3565 = vmatmul.msk.f32.gmra.mxu3 %vm536_vm14, %v4653_v44  ;;  %v4982_v28 = vpop.f32.mrf.mxu3 }
 0x7f4   :  { %5906 = vst [vmem:[#allocation21_spill] sm:$0xff] %v4982_v28 }
 0x7fb   :  { %3566 = vmatmul.msk.f32.gmra.mxu3 %vm536_vm14, %v4650_v43  ;;  %v4984_v26 = vpop.f32.mrf.mxu3 }
 0x846   :  { %v1739_v44 = vpop.f32.mrf.mxu3 }
 0x84e   :  { %v1742_v23 = vpop.f32.mrf.mxu3 }
 0x84f   :  { %v5003_v6 = vmul.f32 0.25, %v1742_v23 }
 0x856   :  { %v1745_v32 = vpop.f32.mrf.mxu3 }
 0x857   :  { %v5000_v20 = vmul.f32 0.25, %v1745_v32 }
 0x85e   :  { %v1748_v33 = vpop.f32.mrf.mxu3 }
 0x85f   :  { %v4997_v18 = vmul.f32 0.25, %v1748_v33 }
 0x866   :  { %v1751_v8 = vpop.f32.mrf.mxu3 }
 0x867   :  { %v4994_v41 = vmul.f32 0.25, %v1751_v8 }
 0x86e   :  { %v1754_v43 = vpop.f32.mrf.mxu3 }
 0x86f   :  { %v4991_v37 = vmul.f32 0.25, %v1754_v43  ;;  %v5006_v43 = vmul.f32 0.25, %v1739_v44 }
 0x876   :  { %v1757_v30 = vpop.f32.mrf.mxu3 }
 0x877   :  { %v4988_v9 = vmul.f32 0.25, %v1757_v30 }
 0x87e   :  { %v1760_v0 = vpop.f32.mrf.mxu3 }
 0x87f   :  { %v4986_v27 = vmul.f32 0.25, %v1760_v0 }
 0x881   :  { %1779 = vmatpush.msra.mxu0 %v4986_v27 }
 0x883   :  { %1780 = vmatpush.msra.mxu0 %v4988_v9 }
 0x885   :  { %1781 = vmatpush.msra.mxu0 %v4991_v37 }
 0x887   :  { %1782 = vmatpush.msra.mxu0 %v4994_v41 }
 0x889   :  { %1783 = vmatpush.msra.mxu0 %v4997_v18 }
 0x88b   :  { %1784 = vmatpush.msra.mxu0 %v5000_v20 }
 0x88d   :  { %1785 = vmatpush.msra.mxu0 %v5003_v6 }
 0x88f   :  { %1786 = vmatpush.msra.mxu0 %v5006_v43 }
 0x890   :  { %3567 = vmatmul.msk.f32.vlgmr.msra.gmra.mxu0 %vm536_vm14, %v4407_v50 }
 0x898   :  { %3568 = vmatmul.msk.f32.gmra.mxu0 %vm536_vm14, %v4415_v2 }
 0x8a0   :  { %3569 = vmatmul.msk.f32.gmra.mxu0 %vm536_vm14, %v4424_v16 }
 0x8a8   :  { %3570 = vmatmul.msk.f32.gmra.mxu0 %vm536_vm14, %v4433_v35 }
 0x8b0   :  { %3571 = vmatmul.msk.f32.gmra.mxu0 %vm536_vm14, %v4439_v46 }
 0x8b8   :  { %3572 = vmatmul.msk.f32.gmra.mxu0 %vm536_vm14, %v4452_v48 }
 0x8c0   :  { %3573 = vmatmul.msk.f32.gmra.mxu0 %vm536_vm14, %v4462_v34 }
 0x8c8   :  { %3574 = vmatmul.msk.f32.gmra.mxu0 %vm536_vm14, %v4467_v19 }
 0x90d   :  { %v1788_v44 = vpop.f32.mrf.mxu0 }
 0x915   :  { %v1791_v23 = vpop.f32.mrf.mxu0 }
 0x916   :  { %v1813_v29 = vsub.f32 %v4819_v5, %v1791_v23 }
 0x91d   :  { %v1794_v32 = vpop.f32.mrf.mxu0 }
 0x91e   :  { %v1814_v36 = vsub.f32 %v4809_v62, %v1794_v32 }
 0x925   :  { %v1797_v33 = vpop.f32.mrf.mxu0 }
 0x926   :  { %v1815_v63 = vsub.f32 %v4799_v1, %v1797_v33 }
 0x92d   :  { %v1800_v8 = vpop.f32.mrf.mxu0 }
 0x92e   :  { %v1816_v40 = vsub.f32 %v4789_v53, %v1800_v8 }
 0x935   :  { %v1803_v30 = vpop.f32.mrf.mxu0 }
 0x936   :  { %v1817_v14 = vsub.f32 %v4779_v59, %v1803_v30 }
 0x93d   :  { %v1806_v0 = vpop.f32.mrf.mxu0 }
 0x93e   :  { %v1818_v15 = vsub.f32 %v4767_v38, %v1806_v0 }
 0x945   :  { %v1809_v31 = vpop.f32.mrf.mxu0 }
 0x946   :  { %v1819_v47 = vsub.f32 %v4759_v3, %v1809_v31 }
 0x948   :  { %1852 = vmatpush.msra.mxu1 %v1819_v47  ;;  %v1812_v47 = vsub.f32 %v4824_v60, %v1788_v44 }
 0x94a   :  { %1853 = vmatpush.msra.mxu1 %v1818_v15 }
 0x94c   :  { %1854 = vmatpush.msra.mxu1 %v1817_v14 }
 0x94e   :  { %1855 = vmatpush.msra.mxu1 %v1816_v40 }
 0x950   :  { %1856 = vmatpush.msra.mxu1 %v1815_v63 }
 0x952   :  { %1857 = vmatpush.msra.mxu1 %v1814_v36 }
 0x954   :  { %1858 = vmatpush.msra.mxu1 %v1813_v29 }
 0x956   :  { %1859 = vmatpush.msra.mxu1 %v1812_v47 }
 0x957   :  { %3575 = vmatmul.msk.f32.vlgmr.msra.gmra.mxu1 %vm536_vm14, %v1788_v44 }
 0x95f   :  { %3576 = vmatmul.msk.f32.gmra.mxu1 %vm536_vm14, %v1791_v23 }
 0x967   :  { %3577 = vmatmul.msk.f32.gmra.mxu1 %vm536_vm14, %v1794_v32 }
 0x96f   :  { %3578 = vmatmul.msk.f32.gmra.mxu1 %vm536_vm14, %v1797_v33 }
 0x977   :  { %3579 = vmatmul.msk.f32.gmra.mxu1 %vm536_vm14, %v1800_v8 }
 0x97f   :  { %3580 = vmatmul.msk.f32.gmra.mxu1 %vm536_vm14, %v1803_v30 }
 0x987   :  { %3581 = vmatmul.msk.f32.gmra.mxu1 %vm536_vm14, %v1806_v0 }
 0x98f   :  { %3582 = vmatmul.msk.f32.gmra.mxu1 %vm536_vm14, %v1809_v31 }
 0x9d4   :  { %v1861_v40 = vpop.f32.mrf.mxu1 }
 0x9dc   :  { %v1864_v29 = vpop.f32.mrf.mxu1 }
 0x9dd   :  { %v1886_v28 = vsub.f32 %v4889_v42, %v1864_v29 }
 0x9e4   :  { %v1867_v36 = vpop.f32.mrf.mxu1 }
 0x9e5   :  { %v1887_v51 = vsub.f32 %v4885_v56, %v1867_v36 }
 0x9ec   :  { %v1870_v63 = vpop.f32.mrf.mxu1 }
 0x9ed   :  { %v1888_v17 = vsub.f32 %v4881_v57, %v1870_v63 }
 0x9f4   :  { %v1873_v14 = vpop.f32.mrf.mxu1 }
 0x9f5   :  { %v1889_v58 = vsub.f32 %v4877_v11, %v1873_v14 }
 0x9fc   :  { %v1876_v15 = vpop.f32.mrf.mxu1 }
 0x9fd   :  { %v1890_v54 = vsub.f32 %v4873_v7, %v1876_v15 }
 0xa04   :  { %v1879_v47 = vpop.f32.mrf.mxu1 }
 0xa05   :  { %v1891_v21 = vsub.f32 %v4870_v45, %v1879_v47 }
 0xa0c   :  { %v1882_v12 = vpop.f32.mrf.mxu1 }
 0xa0d   :  { %v1892_v52 = vsub.f32 %v4867_v4, %v1882_v12  ;;  %v1885_v12 = vsub.f32 %v4893_v61, %v1861_v40 }
 0xa0f   :  { %1901 = vmatpush.msra.mxu2 %v1892_v52 }
 0xa11   :  { %1902 = vmatpush.msra.mxu2 %v1891_v21 }
 0xa13   :  { %1903 = vmatpush.msra.mxu2 %v1890_v54 }
 0xa15   :  { %1904 = vmatpush.msra.mxu2 %v1889_v58 }
 0xa17   :  { %1905 = vmatpush.msra.mxu2 %v1888_v17 }
 0xa19   :  { %1906 = vmatpush.msra.mxu2 %v1887_v51 }
 0xa1b   :  { %1907 = vmatpush.msra.mxu2 %v1886_v28 }
 0xa1d   :  { %1908 = vmatpush.msra.mxu2 %v1885_v12 }
 0xa1e   :  { %3583 = vmatmul.msk.f32.vlgmr.msra.gmra.mxu2 %vm536_vm14, %v1788_v44 }
 0xa26   :  { %3584 = vmatmul.msk.f32.gmra.mxu2 %vm536_vm14, %v1791_v23 }
 0xa2e   :  { %3585 = vmatmul.msk.f32.gmra.mxu2 %vm536_vm14, %v1794_v32 }
 0xa36   :  { %3586 = vmatmul.msk.f32.gmra.mxu2 %vm536_vm14, %v1797_v33 }
 0xa3e   :  { %3587 = vmatmul.msk.f32.gmra.mxu2 %vm536_vm14, %v1800_v8 }
 0xa46   :  { %3588 = vmatmul.msk.f32.gmra.mxu2 %vm536_vm14, %v1803_v30 }
 0xa4e   :  { %3589 = vmatmul.msk.f32.gmra.mxu2 %vm536_vm14, %v1806_v0 }
 0xa56   :  { %3590 = vmatmul.msk.f32.gmra.mxu2 %vm536_vm14, %v1809_v31 }
 0xaa1   :  { %v1910_v52 = vpop.f32.mrf.mxu2 }
 0xaa2   :  { %v1934_v40 = vsub.f32 %v4949_v10, %v1910_v52 }
 0xaa9   :  { %v1913_v21 = vpop.f32.mrf.mxu2 }
 0xaaa   :  { %v1935_v0 = vsub.f32 %v4945_v13, %v1913_v21 }
 0xab1   :  { %v1916_v54 = vpop.f32.mrf.mxu2 }
 0xab2   :  { %v1936_v30 = vsub.f32 %v4941_v25, %v1916_v54 }
 0xab9   :  { %v1919_v58 = vpop.f32.mrf.mxu2 }
 0xaba   :  { %v1937_v31 = vsub.f32 %v4937_v55, %v1919_v58 }
 0xac1   :  { %v1922_v17 = vpop.f32.mrf.mxu2 }
 0xac2   :  { %v1938_v8 = vsub.f32 %v4933_v22, %v1922_v17 }
 0xac9   :  { %v1925_v51 = vpop.f32.mrf.mxu2 }
 0xaca   :  { %v1939_v33 = vsub.f32 %v4929_v24, %v1925_v51 }
 0xad1   :  { %v1928_v28 = vpop.f32.mrf.mxu2 }
 0xad2   :  { %v1940_v32 = vsub.f32 %v4926_v39, %v1928_v28 }
 0xad9   :  { %v1931_v44 = vpop.f32.mrf.mxu2 }
 0xada   :  { %v1941_v23 = vsub.f32 %v4923_v49, %v1931_v44 }
 0xadc   :  { %1974 = vmatpush.msrb.mxu3 %v1941_v23 }
 0xade   :  { %1975 = vmatpush.msrb.mxu3 %v1940_v32 }
 0xae0   :  { %1976 = vmatpush.msrb.mxu3 %v1939_v33 }
 0xae2   :  { %1977 = vmatpush.msrb.mxu3 %v1938_v8 }
 0xae4   :  { %1978 = vmatpush.msrb.mxu3 %v1937_v31 }
 0xae6   :  { %1979 = vmatpush.msrb.mxu3 %v1936_v30 }
 0xae8   :  { %1980 = vmatpush.msrb.mxu3 %v1935_v0 }
 0xaea   :  { %1981 = vmatpush.msrb.mxu3 %v1934_v40 }
 0xaeb   :  { %3591 = vmatmul.msk.f32.vlgmr.msrb.gmra.mxu3 %vm536_vm14, %v5006_v43 }
 0xaf3   :  { %3592 = vmatmul.msk.f32.gmra.mxu3 %vm536_vm14, %v5003_v6 }
 0xafb   :  { %3593 = vmatmul.msk.f32.gmra.mxu3 %vm536_vm14, %v5000_v20 }
 0xb03   :  { %3594 = vmatmul.msk.f32.gmra.mxu3 %vm536_vm14, %v4997_v18 }
 0xb0b   :  { %3595 = vmatmul.msk.f32.gmra.mxu3 %vm536_vm14, %v4994_v41 }
 0xb13   :  { %3596 = vmatmul.msk.f32.gmra.mxu3 %vm536_vm14, %v4991_v37 }
 0xb1b   :  { %3597 = vmatmul.msk.f32.gmra.mxu3 %vm536_vm14, %v4988_v9 }
 0xb23   :  { %3598 = vmatmul.msk.f32.gmra.mxu3 %vm536_vm14, %v4986_v27 }
 0xb6e   :  { %v1983_v43 = vpop.f32.mrf.mxu3 }
 0xb6f   :  { %v5102_v52 = vmul.f32 0.25, %v1983_v43 }
 0xb76   :  { %v1986_v6 = vpop.f32.mrf.mxu3 }
 0xb77   :  { %v5099_v12 = vmul.f32 0.25, %v1986_v6 }
 0xb7e   :  { %v1989_v29 = vpop.f32.mrf.mxu3 }
 0xb7f   :  { %v5096_v47 = vmul.f32 0.25, %v1989_v29 }
 0xb86   :  { %v1992_v36 = vpop.f32.mrf.mxu3 }
 0xb87   :  { %v5093_v27 = vmul.f32 0.25, %v1992_v36 }
 0xb8e   :  { %v1995_v20 = vpop.f32.mrf.mxu3 }
 0xb8f   :  { %v5090_v9 = vmul.f32 0.25, %v1995_v20 }
 0xb96   :  { %v1998_v63 = vpop.f32.mrf.mxu3 }
 0xb97   :  { %v5087_v37 = vmul.f32 0.25, %v1998_v63 }
 0xb9e   :  { %v2001_v14 = vpop.f32.mrf.mxu3 }
 0xb9f   :  { %v5084_v41 = vmul.f32 0.25, %v2001_v14 }
 0xba6   :  { %v2004_v18 = vpop.f32.mrf.mxu3 }
 0xba7   :  { %v5082_v15 = vmul.f32 0.25, %v2004_v18 }
 0xba9   :  { %2023 = vmatpush.msrb.mxu0 %v5082_v15 }
 0xbab   :  { %2024 = vmatpush.msrb.mxu0 %v5084_v41 }
 0xbad   :  { %2025 = vmatpush.msrb.mxu0 %v5087_v37 }
 0xbaf   :  { %2026 = vmatpush.msrb.mxu0 %v5090_v9 }
 0xbb1   :  { %2027 = vmatpush.msrb.mxu0 %v5093_v27 }
 0xbb3   :  { %2028 = vmatpush.msrb.mxu0 %v5096_v47 }
 0xbb5   :  { %2029 = vmatpush.msrb.mxu0 %v5099_v12 }
 0xbb7   :  { %2030 = vmatpush.msrb.mxu0 %v5102_v52 }
 0xbb8   :  { %3599 = vmatmul.msk.f32.vlgmr.msrb.gmra.mxu0 %vm536_vm14, %v4407_v50 }
 0xbc0   :  { %3600 = vmatmul.msk.f32.gmra.mxu0 %vm536_vm14, %v4415_v2 }
 0xbc8   :  { %3601 = vmatmul.msk.f32.gmra.mxu0 %vm536_vm14, %v4424_v16 }
 0xbd0   :  { %3602 = vmatmul.msk.f32.gmra.mxu0 %vm536_vm14, %v4433_v35 }
 0xbd8   :  { %3603 = vmatmul.msk.f32.gmra.mxu0 %vm536_vm14, %v4439_v46 }
 0xbe0   :  { %3604 = vmatmul.msk.f32.gmra.mxu0 %vm536_vm14, %v4452_v48 }
 0xbe8   :  { %3605 = vmatmul.msk.f32.gmra.mxu0 %vm536_vm14, %v4462_v34 }
 0xbf0   :  { %3606 = vmatmul.msk.f32.gmra.mxu0 %vm536_vm14, %v4467_v19 }
 0xc35   :  { %v2032_v21 = vpop.f32.mrf.mxu0 }
 0xc36   :  { %v2056_v43 = vsub.f32 %v4824_v60, %v2032_v21 }
 0xc3d   :  { %v2035_v54 = vpop.f32.mrf.mxu0 }
 0xc3e   :  { %v2057_v40 = vsub.f32 %v4819_v5, %v2035_v54 }
 0xc45   :  { %v2038_v58 = vpop.f32.mrf.mxu0 }
 0xc46   :  { %v2058_v0 = vsub.f32 %v4809_v62, %v2038_v58 }
 0xc4d   :  { %v2041_v17 = vpop.f32.mrf.mxu0 }
 0xc4e   :  { %v2059_v30 = vsub.f32 %v4799_v1, %v2041_v17 }
 0xc55   :  { %v2044_v51 = vpop.f32.mrf.mxu0 }
 0xc56   :  { %v2060_v31 = vsub.f32 %v4789_v53, %v2044_v51 }
 0xc5d   :  { %v2047_v28 = vpop.f32.mrf.mxu0 }
 0xc5e   :  { %v2061_v8 = vsub.f32 %v4779_v59, %v2047_v28 }
 0xc65   :  { %v2050_v44 = vpop.f32.mrf.mxu0 }
 0xc66   :  { %v2062_v33 = vsub.f32 %v4767_v38, %v2050_v44 }
 0xc6d   :  { %v2053_v23 = vpop.f32.mrf.mxu0 }
 0xc6e   :  { %v2063_v32 = vsub.f32 %v4759_v3, %v2053_v23 }
 0xc70   :  { %2096 = vmatpush.msrb.mxu1 %v2063_v32 }
 0xc72   :  { %2097 = vmatpush.msrb.mxu1 %v2062_v33 }
 0xc74   :  { %2098 = vmatpush.msrb.mxu1 %v2061_v8 }
 0xc76   :  { %2099 = vmatpush.msrb.mxu1 %v2060_v31 }
 0xc78   :  { %2100 = vmatpush.msrb.mxu1 %v2059_v30 }
 0xc7a   :  { %2101 = vmatpush.msrb.mxu1 %v2058_v0 }
 0xc7c   :  { %2102 = vmatpush.msrb.mxu1 %v2057_v40 }
 0xc7e   :  { %2103 = vmatpush.msrb.mxu1 %v2056_v43 }
 0xc7f   :  { %3607 = vmatmul.msk.f32.vlgmr.msrb.gmra.mxu1 %vm536_vm14, %v2032_v21 }
 0xc87   :  { %3608 = vmatmul.msk.f32.gmra.mxu1 %vm536_vm14, %v2035_v54 }
 0xc8f   :  { %3609 = vmatmul.msk.f32.gmra.mxu1 %vm536_vm14, %v2038_v58 }
 0xc97   :  { %3610 = vmatmul.msk.f32.gmra.mxu1 %vm536_vm14, %v2041_v17 }
 0xc9f   :  { %3611 = vmatmul.msk.f32.gmra.mxu1 %vm536_vm14, %v2044_v51 }
 0xca7   :  { %3612 = vmatmul.msk.f32.gmra.mxu1 %vm536_vm14, %v2047_v28 }
 0xcaf   :  { %3613 = vmatmul.msk.f32.gmra.mxu1 %vm536_vm14, %v2050_v44 }
 0xcb7   :  { %3614 = vmatmul.msk.f32.gmra.mxu1 %vm536_vm14, %v2053_v23 }
 0xcfc   :  { %v2105_v6 = vpop.f32.mrf.mxu1 }
 0xd04   :  { %v2108_v29 = vpop.f32.mrf.mxu1 }
 0xd05   :  { %v2130_v43 = vsub.f32 %v4889_v42, %v2108_v29 }
 0xd0c   :  { %v2111_v36 = vpop.f32.mrf.mxu1 }
 0xd0d   :  { %v2131_v40 = vsub.f32 %v4885_v56, %v2111_v36 }
 0xd14   :  { %v2114_v20 = vpop.f32.mrf.mxu1 }
 0xd15   :  { %v2132_v0 = vsub.f32 %v4881_v57, %v2114_v20 }
 0xd1c   :  { %v2117_v63 = vpop.f32.mrf.mxu1 }
 0xd1d   :  { %v2133_v30 = vsub.f32 %v4877_v11, %v2117_v63 }
 0xd24   :  { %v2120_v14 = vpop.f32.mrf.mxu1 }
 0xd25   :  { %v2134_v31 = vsub.f32 %v4873_v7, %v2120_v14 }
 0xd2c   :  { %v2123_v18 = vpop.f32.mrf.mxu1 }
 0xd2d   :  { %v2135_v8 = vsub.f32 %v4870_v45, %v2123_v18 }
 0xd34   :  { %v2126_v32 = vpop.f32.mrf.mxu1 }
 0xd35   :  { %v2136_v33 = vsub.f32 %v4867_v4, %v2126_v32  ;;  %v2129_v32 = vsub.f32 %v4893_v61, %v2105_v6 }
 0xd37   :  { %2145 = vmatpush.msrb.mxu2 %v2136_v33 }
 0xd39   :  { %2146 = vmatpush.msrb.mxu2 %v2135_v8 }
 0xd3b   :  { %2147 = vmatpush.msrb.mxu2 %v2134_v31 }
 0xd3d   :  { %2148 = vmatpush.msrb.mxu2 %v2133_v30 }
 0xd3f   :  { %2149 = vmatpush.msrb.mxu2 %v2132_v0 }
 0xd41   :  { %2150 = vmatpush.msrb.mxu2 %v2131_v40 }
 0xd43   :  { %2151 = vmatpush.msrb.mxu2 %v2130_v43 }
 0xd45   :  { %2152 = vmatpush.msrb.mxu2 %v2129_v32 }
 0xd46   :  { %3615 = vmatmul.msk.f32.vlgmr.msrb.gmra.mxu2 %vm536_vm14, %v2032_v21 }
 0xd4e   :  { %3616 = vmatmul.msk.f32.gmra.mxu2 %vm536_vm14, %v2035_v54 }
 0xd56   :  { %3617 = vmatmul.msk.f32.gmra.mxu2 %vm536_vm14, %v2038_v58 }
 0xd5e   :  { %3618 = vmatmul.msk.f32.gmra.mxu2 %vm536_vm14, %v2041_v17 }
 0xd66   :  { %3619 = vmatmul.msk.f32.gmra.mxu2 %vm536_vm14, %v2044_v51 }
 0xd6e   :  { %3620 = vmatmul.msk.f32.gmra.mxu2 %vm536_vm14, %v2047_v28 }
 0xd76   :  { %3621 = vmatmul.msk.f32.gmra.mxu2 %vm536_vm14, %v2050_v44 }
 0xd7e   :  { %3622 = vmatmul.msk.f32.gmra.mxu2 %vm536_vm14, %v2053_v23 }
 0xdc9   :  { %v2154_v29 = vpop.f32.mrf.mxu2 }
 0xdca   :  { %v2178_v33 = vsub.f32 %v4949_v10, %v2154_v29 }
 0xdd1   :  { %v2157_v6 = vpop.f32.mrf.mxu2 }
 0xdd2   :  { %v2179_v18 = vsub.f32 %v4945_v13, %v2157_v6 }
 0xdd9   :  { %v2160_v36 = vpop.f32.mrf.mxu2 }
 0xdda   :  { %v2180_v23 = vsub.f32 %v4941_v25, %v2160_v36 }
 0xde1   :  { %v2163_v20 = vpop.f32.mrf.mxu2 }
 0xde2   :  { %v2181_v44 = vsub.f32 %v4937_v55, %v2163_v20 }
 0xde9   :  { %v2166_v63 = vpop.f32.mrf.mxu2 }
 0xdea   :  { %v2182_v28 = vsub.f32 %v4933_v22, %v2166_v63 }
 0xdf1   :  { %v2169_v21 = vpop.f32.mrf.mxu2 }
 0xdf2   :  { %v2183_v51 = vsub.f32 %v4929_v24, %v2169_v21 }
 0xdf9   :  { %v2172_v14 = vpop.f32.mrf.mxu2 }
 0xdfa   :  { %v2184_v17 = vsub.f32 %v4926_v39, %v2172_v14 }
 0xe01   :  { %v2175_v54 = vpop.f32.mrf.mxu2 }
 0xe02   :  { %v2185_v58 = vsub.f32 %v4923_v49, %v2175_v54 }
 0xe04   :  { %2218 = vmatpush.msra.mxu3 %v2185_v58 }
 0xe06   :  { %2219 = vmatpush.msra.mxu3 %v2184_v17 }
 0xe08   :  { %2220 = vmatpush.msra.mxu3 %v2183_v51 }
 0xe0a   :  { %2221 = vmatpush.msra.mxu3 %v2182_v28 }
 0xe0c   :  { %2222 = vmatpush.msra.mxu3 %v2181_v44 }
 0xe0e   :  { %2223 = vmatpush.msra.mxu3 %v2180_v23 }
 0xe10   :  { %2224 = vmatpush.msra.mxu3 %v2179_v18 }
 0xe12   :  { %2225 = vmatpush.msra.mxu3 %v2178_v33 }
 0xe13   :  { %3623 = vmatmul.msk.f32.vlgmr.msra.gmra.mxu3 %vm536_vm14, %v5102_v52 }
 0xe1b   :  { %3624 = vmatmul.msk.f32.gmra.mxu3 %vm536_vm14, %v5099_v12 }
 0xe23   :  { %3625 = vmatmul.msk.f32.gmra.mxu3 %vm536_vm14, %v5096_v47 }
 0xe2b   :  { %3626 = vmatmul.msk.f32.gmra.mxu3 %vm536_vm14, %v5093_v27 }
 0xe33   :  { %3627 = vmatmul.msk.f32.gmra.mxu3 %vm536_vm14, %v5090_v9 }
 0xe3b   :  { %3628 = vmatmul.msk.f32.gmra.mxu3 %vm536_vm14, %v5087_v37 }
 0xe43   :  { %3629 = vmatmul.msk.f32.gmra.mxu3 %vm536_vm14, %v5084_v41 }
 0xe4b   :  { %3630 = vmatmul.msk.f32.gmra.mxu3 %vm536_vm14, %v5082_v15 }
 0xe96   :  { %v2227_v52 = vpop.f32.mrf.mxu3 }
 0xe97   :  { %v5198_v29 = vmul.f32 0.25, %v2227_v52 }
 0xe9e   :  { %v2230_v12 = vpop.f32.mrf.mxu3 }
 0xe9f   :  { %v5195_v32 = vmul.f32 0.25, %v2230_v12 }
 0xea6   :  { %v2233_v8 = vpop.f32.mrf.mxu3 }
 0xea7   :  { %v5192_v43 = vmul.f32 0.25, %v2233_v8 }
 0xeae   :  { %v2236_v31 = vpop.f32.mrf.mxu3 }
 0xeaf   :  { %v5189_v15 = vmul.f32 0.25, %v2236_v31 }
 0xeb6   :  { %v2239_v47 = vpop.f32.mrf.mxu3 }
 0xeb7   :  { %v5186_v41 = vmul.f32 0.25, %v2239_v47 }
 0xebe   :  { %v2242_v30 = vpop.f32.mrf.mxu3 }
 0xebf   :  { %v5183_v37 = vmul.f32 0.25, %v2242_v30 }
 0xec6   :  { %v2245_v0 = vpop.f32.mrf.mxu3 }
 0xec7   :  { %v5180_v9 = vmul.f32 0.25, %v2245_v0 }
 0xece   :  { %v2248_v27 = vpop.f32.mrf.mxu3 }
 0xecf   :  { %v5178_v40 = vmul.f32 0.25, %v2248_v27 }
 0xed1   :  { %2267 = vmatpush.msra.mxu0 %v5178_v40 }
 0xed3   :  { %2268 = vmatpush.msra.mxu0 %v5180_v9 }
 0xed5   :  { %2269 = vmatpush.msra.mxu0 %v5183_v37 }
 0xed7   :  { %2270 = vmatpush.msra.mxu0 %v5186_v41 }
 0xed9   :  { %2271 = vmatpush.msra.mxu0 %v5189_v15 }
 0xedb   :  { %2272 = vmatpush.msra.mxu0 %v5192_v43 }
 0xedd   :  { %2273 = vmatpush.msra.mxu0 %v5195_v32 }
 0xedf   :  { %2274 = vmatpush.msra.mxu0 %v5198_v29 }
 0xee0   :  { %3631 = vmatmul.msk.f32.vlgmr.msra.gmra.mxu0 %vm536_vm14, %v4407_v50 }
 0xee8   :  { %3632 = vmatmul.msk.f32.gmra.mxu0 %vm536_vm14, %v4415_v2 }
 0xef0   :  { %3633 = vmatmul.msk.f32.gmra.mxu0 %vm536_vm14, %v4424_v16 }
 0xef8   :  { %3634 = vmatmul.msk.f32.gmra.mxu0 %vm536_vm14, %v4433_v35 }
 0xf00   :  { %3635 = vmatmul.msk.f32.gmra.mxu0 %vm536_vm14, %v4439_v46 }
 0xf08   :  { %3636 = vmatmul.msk.f32.gmra.mxu0 %vm536_vm14, %v4452_v48 }
 0xf10   :  { %3637 = vmatmul.msk.f32.gmra.mxu0 %vm536_vm14, %v4462_v34 }
 0xf18   :  { %3638 = vmatmul.msk.f32.gmra.mxu0 %vm536_vm14, %v4467_v19 }
 0xf5d   :  { %v2276_v6 = vpop.f32.mrf.mxu0 }
 0xf5e   :  { %v2300_v52 = vsub.f32 %v4824_v60, %v2276_v6 }
 0xf65   :  { %v2279_v36 = vpop.f32.mrf.mxu0 }
 0xf66   :  { %v2301_v33 = vsub.f32 %v4819_v5, %v2279_v36 }
 0xf6d   :  { %v2282_v20 = vpop.f32.mrf.mxu0 }
 0xf6e   :  { %v2302_v18 = vsub.f32 %v4809_v62, %v2282_v20 }
 0xf75   :  { %v2285_v63 = vpop.f32.mrf.mxu0 }
 0xf76   :  { %v2303_v23 = vsub.f32 %v4799_v1, %v2285_v63 }
 0xf7d   :  { %v2288_v21 = vpop.f32.mrf.mxu0 }
 0xf7e   :  { %v2304_v44 = vsub.f32 %v4789_v53, %v2288_v21 }
 0xf85   :  { %v2291_v14 = vpop.f32.mrf.mxu0 }
 0xf86   :  { %v2305_v28 = vsub.f32 %v4779_v59, %v2291_v14 }
 0xf8d   :  { %v2294_v54 = vpop.f32.mrf.mxu0 }
 0xf8e   :  { %v2306_v51 = vsub.f32 %v4767_v38, %v2294_v54 }
 0xf95   :  { %v2297_v58 = vpop.f32.mrf.mxu0 }
 0xf96   :  { %v2307_v17 = vsub.f32 %v4759_v3, %v2297_v58 }
 0xf98   :  { %2340 = vmatpush.msra.mxu1 %v2307_v17 }
 0xf9a   :  { %2341 = vmatpush.msra.mxu1 %v2306_v51 }
 0xf9c   :  { %2342 = vmatpush.msra.mxu1 %v2305_v28 }
 0xf9e   :  { %2343 = vmatpush.msra.mxu1 %v2304_v44 }
 0xfa0   :  { %2344 = vmatpush.msra.mxu1 %v2303_v23 }
 0xfa2   :  { %2345 = vmatpush.msra.mxu1 %v2302_v18 }
 0xfa4   :  { %2346 = vmatpush.msra.mxu1 %v2301_v33 }
 0xfa6   :  { %2347 = vmatpush.msra.mxu1 %v2300_v52 }
 0xfa7   :  { %3639 = vmatmul.msk.f32.vlgmr.msra.gmra.mxu1 %vm536_vm14, %v2276_v6 }
 0xfaf   :  { %3640 = vmatmul.msk.f32.gmra.mxu1 %vm536_vm14, %v2279_v36 }
 0xfb7   :  { %3641 = vmatmul.msk.f32.gmra.mxu1 %vm536_vm14, %v2282_v20 }
 0xfbf   :  { %3642 = vmatmul.msk.f32.gmra.mxu1 %vm536_vm14, %v2285_v63 }
 0xfc7   :  { %3643 = vmatmul.msk.f32.gmra.mxu1 %vm536_vm14, %v2288_v21 }
 0xfcf   :  { %3644 = vmatmul.msk.f32.gmra.mxu1 %vm536_vm14, %v2291_v14 }
 0xfd7   :  { %3645 = vmatmul.msk.f32.gmra.mxu1 %vm536_vm14, %v2294_v54 }
 0xfdf   :  { %3646 = vmatmul.msk.f32.gmra.mxu1 %vm536_vm14, %v2297_v58 }
0x1024   :  { %v2349_v12 = vpop.f32.mrf.mxu1 }
0x102c   :  { %v2352_v8 = vpop.f32.mrf.mxu1 }
0x102d   :  { %v2374_v52 = vsub.f32 %v4889_v42, %v2352_v8 }
0x1034   :  { %v2355_v31 = vpop.f32.mrf.mxu1 }
0x1035   :  { %v2375_v33 = vsub.f32 %v4885_v56, %v2355_v31 }
0x103c   :  { %v2358_v47 = vpop.f32.mrf.mxu1 }
0x103d   :  { %v2376_v18 = vsub.f32 %v4881_v57, %v2358_v47 }
0x1044   :  { %v2361_v30 = vpop.f32.mrf.mxu1 }
0x1045   :  { %v2377_v23 = vsub.f32 %v4877_v11, %v2361_v30 }
0x104c   :  { %v2364_v0 = vpop.f32.mrf.mxu1 }
0x104d   :  { %v2378_v44 = vsub.f32 %v4873_v7, %v2364_v0 }
0x1054   :  { %v2367_v27 = vpop.f32.mrf.mxu1 }
0x1055   :  { %v2379_v28 = vsub.f32 %v4870_v45, %v2367_v27 }
0x105c   :  { %v2370_v17 = vpop.f32.mrf.mxu1 }
0x105d   :  { %v2380_v51 = vsub.f32 %v4867_v4, %v2370_v17  ;;  %v2373_v17 = vsub.f32 %v4893_v61, %v2349_v12 }
0x105f   :  { %2389 = vmatpush.msra.mxu2 %v2380_v51 }
0x1061   :  { %2390 = vmatpush.msra.mxu2 %v2379_v28 }
0x1063   :  { %2391 = vmatpush.msra.mxu2 %v2378_v44 }
0x1065   :  { %2392 = vmatpush.msra.mxu2 %v2377_v23 }
0x1067   :  { %2393 = vmatpush.msra.mxu2 %v2376_v18 }
0x1069   :  { %2394 = vmatpush.msra.mxu2 %v2375_v33 }
0x106b   :  { %2395 = vmatpush.msra.mxu2 %v2374_v52 }
0x106d   :  { %2396 = vmatpush.msra.mxu2 %v2373_v17 }
0x106e   :  { %3647 = vmatmul.msk.f32.vlgmr.msra.gmra.mxu2 %vm536_vm14, %v2276_v6 }
0x1076   :  { %3648 = vmatmul.msk.f32.gmra.mxu2 %vm536_vm14, %v2279_v36 }
0x107e   :  { %3649 = vmatmul.msk.f32.gmra.mxu2 %vm536_vm14, %v2282_v20 }
0x1086   :  { %3650 = vmatmul.msk.f32.gmra.mxu2 %vm536_vm14, %v2285_v63 }
0x108e   :  { %3651 = vmatmul.msk.f32.gmra.mxu2 %vm536_vm14, %v2288_v21 }
0x1096   :  { %3652 = vmatmul.msk.f32.gmra.mxu2 %vm536_vm14, %v2291_v14 }
0x109e   :  { %3653 = vmatmul.msk.f32.gmra.mxu2 %vm536_vm14, %v2294_v54 }
0x10a6   :  { %3654 = vmatmul.msk.f32.gmra.mxu2 %vm536_vm14, %v2297_v58 }
0x10f1   :  { %v2398_v8 = vpop.f32.mrf.mxu2 }
0x10f2   :  { %v2422_v51 = vsub.f32 %v4949_v10, %v2398_v8 }
0x10f9   :  { %v2401_v12 = vpop.f32.mrf.mxu2 }
0x10fa   :  { %v2423_v27 = vsub.f32 %v4945_v13, %v2401_v12 }
0x1101   :  { %v2404_v31 = vpop.f32.mrf.mxu2 }
0x1102   :  { %v2424_v58 = vsub.f32 %v4941_v25, %v2404_v31 }
0x1109   :  { %v2407_v47 = vpop.f32.mrf.mxu2 }
0x110a   :  { %v2425_v54 = vsub.f32 %v4937_v55, %v2407_v47 }
0x1111   :  { %v2410_v30 = vpop.f32.mrf.mxu2 }
0x1112   :  { %v2426_v14 = vsub.f32 %v4933_v22, %v2410_v30 }
0x1119   :  { %v2413_v6 = vpop.f32.mrf.mxu2 }
0x111a   :  { %v2427_v21 = vsub.f32 %v4929_v24, %v2413_v6 }
0x1121   :  { %v2416_v0 = vpop.f32.mrf.mxu2 }
0x1122   :  { %v2428_v63 = vsub.f32 %v4926_v39, %v2416_v0 }
0x1129   :  { %v2419_v36 = vpop.f32.mrf.mxu2 }
0x112a   :  { %v2429_v20 = vsub.f32 %v4923_v49, %v2419_v36 }
0x112c   :  { %2462 = vmatpush.msrb.mxu3 %v2429_v20 }
0x112e   :  { %2463 = vmatpush.msrb.mxu3 %v2428_v63 }
0x1130   :  { %2464 = vmatpush.msrb.mxu3 %v2427_v21 }
0x1132   :  { %2465 = vmatpush.msrb.mxu3 %v2426_v14 }
0x1134   :  { %2466 = vmatpush.msrb.mxu3 %v2425_v54 }
0x1136   :  { %2467 = vmatpush.msrb.mxu3 %v2424_v58 }
0x1138   :  { %2468 = vmatpush.msrb.mxu3 %v2423_v27 }
0x113a   :  { %2469 = vmatpush.msrb.mxu3 %v2422_v51 }
0x113b   :  { %3655 = vmatmul.msk.f32.vlgmr.msrb.gmra.mxu3 %vm536_vm14, %v5198_v29 }
0x1143   :  { %3656 = vmatmul.msk.f32.gmra.mxu3 %vm536_vm14, %v5195_v32 }
0x114b   :  { %3657 = vmatmul.msk.f32.gmra.mxu3 %vm536_vm14, %v5192_v43 }
0x1153   :  { %3658 = vmatmul.msk.f32.gmra.mxu3 %vm536_vm14, %v5189_v15 }
0x115b   :  { %3659 = vmatmul.msk.f32.gmra.mxu3 %vm536_vm14, %v5186_v41 }
0x1163   :  { %3660 = vmatmul.msk.f32.gmra.mxu3 %vm536_vm14, %v5183_v37 }
0x116b   :  { %3661 = vmatmul.msk.f32.gmra.mxu3 %vm536_vm14, %v5180_v9 }
0x1173   :  { %3662 = vmatmul.msk.f32.gmra.mxu3 %vm536_vm14, %v5178_v40 }
0x11be   :  { %v2471_v29 = vpop.f32.mrf.mxu3 }
0x11bf   :  { %v5294_v8 = vmul.f32 0.25, %v2471_v29 }
0x11c6   :  { %v2474_v32 = vpop.f32.mrf.mxu3 }
0x11c7   :  { %v5291_v17 = vmul.f32 0.25, %v2474_v32 }
0x11ce   :  { %v2477_v28 = vpop.f32.mrf.mxu3 }
0x11cf   :  { %v5288_v52 = vmul.f32 0.25, %v2477_v28 }
0x11d6   :  { %v2480_v44 = vpop.f32.mrf.mxu3 }
0x11d7   :  { %v5285_v40 = vmul.f32 0.25, %v2480_v44 }
0x11de   :  { %v2483_v43 = vpop.f32.mrf.mxu3 }
0x11df   :  { %v5282_v9 = vmul.f32 0.25, %v2483_v43 }
0x11e6   :  { %v2486_v23 = vpop.f32.mrf.mxu3 }
0x11e7   :  { %v5279_v37 = vmul.f32 0.25, %v2486_v23 }
0x11ee   :  { %v2489_v18 = vpop.f32.mrf.mxu3 }
0x11ef   :  { %v5276_v41 = vmul.f32 0.25, %v2489_v18 }
0x11f6   :  { %v2492_v15 = vpop.f32.mrf.mxu3 }
0x11f7   :  { %v5274_v33 = vmul.f32 0.25, %v2492_v15 }
0x11f9   :  { %2511 = vmatpush.msrb.mxu0 %v5274_v33 }
0x11fb   :  { %2512 = vmatpush.msrb.mxu0 %v5276_v41 }
0x11fd   :  { %2513 = vmatpush.msrb.mxu0 %v5279_v37 }
0x11ff   :  { %2514 = vmatpush.msrb.mxu0 %v5282_v9 }
0x1201   :  { %2515 = vmatpush.msrb.mxu0 %v5285_v40 }
0x1203   :  { %2516 = vmatpush.msrb.mxu0 %v5288_v52 }
0x1205   :  { %2517 = vmatpush.msrb.mxu0 %v5291_v17 }
0x1207   :  { %2518 = vmatpush.msrb.mxu0 %v5294_v8 }
0x1208   :  { %3663 = vmatmul.msk.f32.vlgmr.msrb.gmra.mxu0 %vm536_vm14, %v4407_v50 }
0x1210   :  { %3664 = vmatmul.msk.f32.gmra.mxu0 %vm536_vm14, %v4415_v2 }
0x1218   :  { %3665 = vmatmul.msk.f32.gmra.mxu0 %vm536_vm14, %v4424_v16 }
0x1220   :  { %3666 = vmatmul.msk.f32.gmra.mxu0 %vm536_vm14, %v4433_v35 }
0x1228   :  { %3667 = vmatmul.msk.f32.gmra.mxu0 %vm536_vm14, %v4439_v46 }
0x1230   :  { %3668 = vmatmul.msk.f32.gmra.mxu0 %vm536_vm14, %v4452_v48 }
0x1238   :  { %3669 = vmatmul.msk.f32.gmra.mxu0 %vm536_vm14, %v4462_v34 }
0x1240   :  { %3670 = vmatmul.msk.f32.gmra.mxu0 %vm536_vm14, %v4467_v19 }
0x1285   :  { %v2520_v12 = vpop.f32.mrf.mxu0 }
0x1286   :  { %v2544_v29 = vsub.f32 %v4824_v60, %v2520_v12 }
0x128d   :  { %v2523_v31 = vpop.f32.mrf.mxu0 }
0x128e   :  { %v2545_v51 = vsub.f32 %v4819_v5, %v2523_v31 }
0x1295   :  { %v2526_v47 = vpop.f32.mrf.mxu0 }
0x1296   :  { %v2546_v27 = vsub.f32 %v4809_v62, %v2526_v47 }
0x129d   :  { %v2529_v30 = vpop.f32.mrf.mxu0 }
0x129e   :  { %v2547_v58 = vsub.f32 %v4799_v1, %v2529_v30 }
0x12a5   :  { %v2532_v6 = vpop.f32.mrf.mxu0 }
0x12a6   :  { %v2548_v54 = vsub.f32 %v4789_v53, %v2532_v6 }
0x12ad   :  { %v2535_v0 = vpop.f32.mrf.mxu0 }
0x12ae   :  { %v2549_v14 = vsub.f32 %v4779_v59, %v2535_v0 }
0x12b5   :  { %v2538_v36 = vpop.f32.mrf.mxu0 }
0x12b6   :  { %v2550_v21 = vsub.f32 %v4767_v38, %v2538_v36 }
0x12bd   :  { %v2541_v20 = vpop.f32.mrf.mxu0 }
0x12be   :  { %v2551_v63 = vsub.f32 %v4759_v3, %v2541_v20 }
0x12c0   :  { %2584 = vmatpush.msrb.mxu1 %v2551_v63 }
0x12c2   :  { %2585 = vmatpush.msrb.mxu1 %v2550_v21 }
0x12c4   :  { %2586 = vmatpush.msrb.mxu1 %v2549_v14 }
0x12c6   :  { %2587 = vmatpush.msrb.mxu1 %v2548_v54 }
0x12c8   :  { %2588 = vmatpush.msrb.mxu1 %v2547_v58 }
0x12ca   :  { %2589 = vmatpush.msrb.mxu1 %v2546_v27 }
0x12cc   :  { %2590 = vmatpush.msrb.mxu1 %v2545_v51 }
0x12ce   :  { %2591 = vmatpush.msrb.mxu1 %v2544_v29 }
0x12cf   :  { %3671 = vmatmul.msk.f32.vlgmr.msrb.gmra.mxu1 %vm536_vm14, %v2520_v12 }
0x12d7   :  { %3672 = vmatmul.msk.f32.gmra.mxu1 %vm536_vm14, %v2523_v31 }
0x12df   :  { %3673 = vmatmul.msk.f32.gmra.mxu1 %vm536_vm14, %v2526_v47 }
0x12e7   :  { %3674 = vmatmul.msk.f32.gmra.mxu1 %vm536_vm14, %v2529_v30 }
0x12ef   :  { %3675 = vmatmul.msk.f32.gmra.mxu1 %vm536_vm14, %v2532_v6 }
0x12f7   :  { %3676 = vmatmul.msk.f32.gmra.mxu1 %vm536_vm14, %v2535_v0 }
0x12ff   :  { %3677 = vmatmul.msk.f32.gmra.mxu1 %vm536_vm14, %v2538_v36 }
0x1307   :  { %3678 = vmatmul.msk.f32.gmra.mxu1 %vm536_vm14, %v2541_v20 }
0x134c   :  { %v2593_v32 = vpop.f32.mrf.mxu1 }
0x1354   :  { %v2596_v28 = vpop.f32.mrf.mxu1 }
0x1355   :  { %v2618_v29 = vsub.f32 %v4889_v42, %v2596_v28 }
0x135c   :  { %v2599_v44 = vpop.f32.mrf.mxu1 }
0x135d   :  { %v2619_v51 = vsub.f32 %v4885_v56, %v2599_v44 }
0x1364   :  { %v2602_v43 = vpop.f32.mrf.mxu1 }
0x1365   :  { %v2620_v27 = vsub.f32 %v4881_v57, %v2602_v43 }
0x136c   :  { %v2605_v23 = vpop.f32.mrf.mxu1 }
0x136d   :  { %v2621_v58 = vsub.f32 %v4877_v11, %v2605_v23 }
0x1374   :  { %v2608_v18 = vpop.f32.mrf.mxu1 }
0x1375   :  { %v2622_v54 = vsub.f32 %v4873_v7, %v2608_v18 }
0x137c   :  { %v2611_v15 = vpop.f32.mrf.mxu1 }
0x137d   :  { %v2623_v14 = vsub.f32 %v4870_v45, %v2611_v15 }
0x1384   :  { %v2614_v63 = vpop.f32.mrf.mxu1 }
0x1385   :  { %v2624_v21 = vsub.f32 %v4867_v4, %v2614_v63  ;;  %v2617_v63 = vsub.f32 %v4893_v61, %v2593_v32 }
0x1387   :  { %2633 = vmatpush.msrb.mxu2 %v2624_v21 }
0x1389   :  { %2634 = vmatpush.msrb.mxu2 %v2623_v14 }
0x138b   :  { %2635 = vmatpush.msrb.mxu2 %v2622_v54 }
0x138d   :  { %2636 = vmatpush.msrb.mxu2 %v2621_v58 }
0x138f   :  { %2637 = vmatpush.msrb.mxu2 %v2620_v27 }
0x1391   :  { %2638 = vmatpush.msrb.mxu2 %v2619_v51 }
0x1393   :  { %2639 = vmatpush.msrb.mxu2 %v2618_v29 }
0x1395   :  { %2640 = vmatpush.msrb.mxu2 %v2617_v63 }
0x1396   :  { %3679 = vmatmul.msk.f32.vlgmr.msrb.gmra.mxu2 %vm536_vm14, %v2520_v12 }
0x139e   :  { %3680 = vmatmul.msk.f32.gmra.mxu2 %vm536_vm14, %v2523_v31 }
0x13a6   :  { %3681 = vmatmul.msk.f32.gmra.mxu2 %vm536_vm14, %v2526_v47 }
0x13ae   :  { %3682 = vmatmul.msk.f32.gmra.mxu2 %vm536_vm14, %v2529_v30 }
0x13b6   :  { %3683 = vmatmul.msk.f32.gmra.mxu2 %vm536_vm14, %v2532_v6 }
0x13be   :  { %3684 = vmatmul.msk.f32.gmra.mxu2 %vm536_vm14, %v2535_v0 }
0x13c6   :  { %3685 = vmatmul.msk.f32.gmra.mxu2 %vm536_vm14, %v2538_v36 }
0x13ce   :  { %3686 = vmatmul.msk.f32.gmra.mxu2 %vm536_vm14, %v2541_v20 }
0x1419   :  { %v2642_v28 = vpop.f32.mrf.mxu2 }
0x141a   :  { %v2666_v21 = vsub.f32 %v4949_v10, %v2642_v28 }
0x1421   :  { %v2645_v32 = vpop.f32.mrf.mxu2 }
0x1422   :  { %v2667_v15 = vsub.f32 %v4945_v13, %v2645_v32 }
0x1429   :  { %v2648_v44 = vpop.f32.mrf.mxu2 }
0x142a   :  { %v2668_v20 = vsub.f32 %v4941_v25, %v2648_v44 }
0x1431   :  { %v2651_v43 = vpop.f32.mrf.mxu2 }
0x1432   :  { %v2669_v36 = vsub.f32 %v4937_v55, %v2651_v43 }
0x1439   :  { %v2654_v23 = vpop.f32.mrf.mxu2 }
0x143a   :  { %v2670_v0 = vsub.f32 %v4933_v22, %v2654_v23 }
0x1441   :  { %v2657_v12 = vpop.f32.mrf.mxu2 }
0x1442   :  { %v2671_v6 = vsub.f32 %v4929_v24, %v2657_v12 }
0x1449   :  { %v2660_v18 = vpop.f32.mrf.mxu2 }
0x144a   :  { %v2672_v30 = vsub.f32 %v4926_v39, %v2660_v18 }
0x1451   :  { %v2663_v31 = vpop.f32.mrf.mxu2 }
0x1452   :  { %v2673_v47 = vsub.f32 %v4923_v49, %v2663_v31  ;;  %v5908_v31 = vld [vmem:[#allocation20_spill] sm:$0xff] }
0x1454   :  { %2706 = vmatpush.msra.mxu3 %v2673_v47 }
0x1456   :  { %2707 = vmatpush.msra.mxu3 %v2672_v30  ;;  %v5909_v30 = vld [vmem:[#allocation19_spill] sm:$0xff] }
0x1458   :  { %2708 = vmatpush.msra.mxu3 %v2671_v6 }
0x145a   :  { %2709 = vmatpush.msra.mxu3 %v2670_v0  ;;  %v3878_v0 = vld [vmem:[%s5839_s7 + $0x18] sm:$0xff] }
0x145c   :  { %2710 = vmatpush.msra.mxu3 %v2669_v36  ;;  %v5910_v36 = vld [vmem:[#allocation18_spill] sm:$0xff] }
0x145e   :  { %2711 = vmatpush.msra.mxu3 %v2668_v20  ;;  %v1178_v20 = vmul.f32 %v3878_v0, %v5910_v36 }
0x1460   :  { %2712 = vmatpush.msra.mxu3 %v2667_v15  ;;  %v3879_v15 = vld [vmem:[%s5839_s7 + $0x10] sm:$0xff] }
0x1462   :  { %2713 = vmatpush.msra.mxu3 %v2666_v21  ;;  %v5911_v21 = vld [vmem:[#allocation17_spill] sm:$0xff] }
0x1463   :  { %3687 = vmatmul.msk.f32.vlgmr.msra.gmra.mxu3 %vm536_vm14, %v5294_v8 }
0x146b   :  { %3688 = vmatmul.msk.f32.gmra.mxu3 %vm536_vm14, %v5291_v17 }
0x1473   :  { %3689 = vmatmul.msk.f32.gmra.mxu3 %vm536_vm14, %v5288_v52 }
0x147b   :  { %3690 = vmatmul.msk.f32.gmra.mxu3 %vm536_vm14, %v5285_v40 }
0x1483   :  { %3691 = vmatmul.msk.f32.gmra.mxu3 %vm536_vm14, %v5282_v9 }
0x148b   :  { %3692 = vmatmul.msk.f32.gmra.mxu3 %vm536_vm14, %v5279_v37 }
0x1493   :  { %3693 = vmatmul.msk.f32.gmra.mxu3 %vm536_vm14, %v5276_v41 }
0x149b   :  { %3694 = vmatmul.msk.f32.gmra.mxu3 %vm536_vm14, %v5274_v33 }
0x14e6   :  { %v2715_v8 = vpop.f32.mrf.mxu3 }
0x14e7   :  { %v5390_v28 = vmul.f32 0.25, %v2715_v8  ;;  %v1177_v8 = vmul.f32 %v3879_v15, %v5911_v21  ;;  %v1263_v21 = vld [vmem:[%s5847_s14 + $0x18] sm:$0xff] }
0x14ee   :  { %v2718_v17 = vpop.f32.mrf.mxu3 }
0x14ef   :  { %v5387_v63 = vmul.f32 0.25, %v2718_v17  ;;  %v3880_v17 = vld [vmem:[%s5839_s7 + $0x8] sm:$0xff] }
0x14f6   :  { %v2721_v14 = vpop.f32.mrf.mxu3 }
0x14f7   :  { %v5384_v29 = vmul.f32 0.25, %v2721_v14  ;;  %v5912_v14 = vld [vmem:[#allocation16_spill] sm:$0xff] }
0x14fe   :  { %v2724_v54 = vpop.f32.mrf.mxu3 }
0x14ff   :  { %v5381_v33 = vmul.f32 0.25, %v2724_v54  ;;  %v1176_v54 = vmul.f32 %v3880_v17, %v5912_v14  ;;  %v5917_v17 = vld [vmem:[#allocation10_spill] sm:$0xff] }
0x1500   :  { %v5557_v14 = vadd.f32 %v5917_v17, %v1263_v21 }
0x1502   :  { %vm1355_vm11 = vweird.f32 %v5557_v14 }
0x1506   :  { %v2727_v52 = vpop.f32.mrf.mxu3 }
0x1507   :  { %v5378_v41 = vmul.f32 0.25, %v2727_v52  ;;  %v3881_v52 = vld [vmem:[%s5839_s7] sm:$0xff] }
0x150e   :  { %v2730_v58 = vpop.f32.mrf.mxu3 }
0x150f   :  { %v5375_v37 = vmul.f32 0.25, %v2730_v58  ;;  %v5913_v58 = vld [vmem:[#allocation15_spill] sm:$0xff] }
0x1516   :  { %v2733_v27 = vpop.f32.mrf.mxu3 }
0x1517   :  { %v5372_v9 = vmul.f32 0.25, %v2733_v27  ;;  %v1175_v27 = vmul.f32 %v3881_v52, %v5913_v58 }
0x151e   :  { %v2736_v40 = vpop.f32.mrf.mxu3 }
0x151f   :  { %v5370_v51 = vmul.f32 0.25, %v2736_v40 }
0x1521   :  { %2755 = vmatpush.msra.mxu0 %v5370_v51 }
0x1523   :  { %2756 = vmatpush.msra.mxu0 %v5372_v9 }
0x1525   :  { %2757 = vmatpush.msra.mxu0 %v5375_v37 }
0x1527   :  { %2758 = vmatpush.msra.mxu0 %v5378_v41 }
0x1529   :  { %2759 = vmatpush.msra.mxu0 %v5381_v33 }
0x152b   :  { %2760 = vmatpush.msra.mxu0 %v5384_v29 }
0x152d   :  { %2761 = vmatpush.msra.mxu0 %v5387_v63 }
0x152f   :  { %2762 = vmatpush.msra.mxu0 %v5390_v28 }
0x1530   :  { %3695 = vmatmul.msk.f32.vlgmr.msra.gmra.mxu0 %vm536_vm14, %v4407_v50 }
0x1538   :  { %3696 = vmatmul.msk.f32.gmra.mxu0 %vm536_vm14, %v4415_v2 }
0x1540   :  { %3697 = vmatmul.msk.f32.gmra.mxu0 %vm536_vm14, %v4424_v16 }
0x1548   :  { %3698 = vmatmul.msk.f32.gmra.mxu0 %vm536_vm14, %v4433_v35 }
0x1550   :  { %3699 = vmatmul.msk.f32.gmra.mxu0 %vm536_vm14, %v4439_v46 }
0x1558   :  { %3700 = vmatmul.msk.f32.gmra.mxu0 %vm536_vm14, %v4452_v48 }
0x1560   :  { %3701 = vmatmul.msk.f32.gmra.mxu0 %vm536_vm14, %v4462_v34 }
0x1568   :  { %3702 = vmatmul.msk.f32.gmra.mxu0 %vm536_vm14, %v4467_v19 }
0x15ad   :  { %v5410_v50 = vpop.f32.mrf.mxu0 }
0x15b5   :  { %v5412_v2 = vpop.f32.mrf.mxu0 }
0x15bd   :  { %v5414_v16 = vpop.f32.mrf.mxu0 }
0x15be   :  { %v2790_v18 = vsub.f32 %v4809_v62, %v5414_v16  ;;  %v5907_v62 = vld [vmem:[#allocation21_spill] sm:$0xff] }
0x15c5   :  { %v5416_v32 = vpop.f32.mrf.mxu0 }
0x15c6   :  { %v2791_v12 = vsub.f32 %v4799_v1, %v5416_v32  ;;  %v3875_v1 = vld [vmem:[%s5839_s7 + $0x30] sm:$0xff] }
0x15cd   :  { %v5418_v35 = vpop.f32.mrf.mxu0 }
0x15ce   :  { %v2792_v23 = vsub.f32 %v4789_v53, %v5418_v35 }
0x15d5   :  { %v5420_v46 = vpop.f32.mrf.mxu0 }
0x15d6   :  { %v2793_v43 = vsub.f32 %v4779_v59, %v5420_v46  ;;  %v3874_v59 = vld [vmem:[%s5839_s7 + $0x38] sm:$0xff] }
0x15d7   :  { %v1182_v53 = vmul.f32 %v3874_v59, %v4984_v26  ;;  %v3877_v26 = vld [vmem:[%s5839_s7 + $0x20] sm:$0xff] }
0x15d8   :  { %v1179_v6 = vmul.f32 %v3877_v26, %v5909_v30 }
0x15dd   :  { %v5422_v44 = vpop.f32.mrf.mxu0 }
0x15de   :  { %v2794_v19 = vsub.f32 %v4767_v38, %v5422_v44  ;;  %v2788_v38 = vsub.f32 %v4824_v60, %v5410_v50  ;;  %v3876_v60 = vld [vmem:[%s5839_s7 + $0x28] sm:$0xff] }
0x15df   :  { %v1180_v47 = vmul.f32 %v3876_v60, %v5908_v31  ;;  %v1262_v31 = vld [vmem:[%s5847_s14 + $0x10] sm:$0xff] }
0x15e5   :  { %v5424_v48 = vpop.f32.mrf.mxu0 }
0x15e6   :  { %v2795_v34 = vsub.f32 %v4759_v3, %v5424_v48  ;;  %v2789_v3 = vsub.f32 %v4819_v5, %v5412_v2  ;;  %v1181_v5 = vmul.f32 %v3875_v1, %v5907_v62 }
0x15e8   :  { %2828 = vmatpush.msra.mxu1 %v2795_v34 }
0x15ea   :  { %2829 = vmatpush.msra.mxu1 %v2794_v19 }
0x15ec   :  { %2830 = vmatpush.msra.mxu1 %v2793_v43 }
0x15ee   :  { %2831 = vmatpush.msra.mxu1 %v2792_v23 }
0x15f0   :  { %2832 = vmatpush.msra.mxu1 %v2791_v12 }
0x15f2   :  { %2833 = vmatpush.msra.mxu1 %v2790_v18 }
0x15f4   :  { %2834 = vmatpush.msra.mxu1 %v2789_v3 }
0x15f6   :  { %2835 = vmatpush.msra.mxu1 %v2788_v38 }
0x15f7   :  { %3703 = vmatmul.msk.f32.vlgmr.msra.gmra.mxu1 %vm536_vm14, %v5410_v50 }
0x15f8   :  { %3052 = vmatpush.msrb.mxu1 %v1182_v53 }
0x15fa   :  { %3053 = vmatpush.msrb.mxu1 %v1181_v5 }
0x15fc   :  { %3054 = vmatpush.msrb.mxu1 %v1180_v47  ;;  %v5916_v47 = vld [vmem:[#allocation9_spill] sm:$0xff] }
0x15fd   :  { %v5550_v26 = vadd.f32 %v5916_v47, %v1262_v31 }
0x15fe   :  { %3055 = vmatpush.msrb.mxu1 %v1179_v6 }
0x15ff   :  { %3704 = vmatmul.msk.f32.gmra.mxu1 %vm536_vm14, %v5412_v2  ;;  %vm1340_vm7 = vweird.f32 %v5550_v26 }
0x1600   :  { %3056 = vmatpush.msrb.mxu1 %v1178_v20 }
0x1602   :  { %3057 = vmatpush.msrb.mxu1 %v1177_v8 }
0x1604   :  { %3058 = vmatpush.msrb.mxu1 %v1176_v54 }
0x1606   :  { %3059 = vmatpush.msrb.mxu1 %v1175_v27 }
0x1607   :  { %3705 = vmatmul.msk.f32.gmra.mxu1 %vm536_vm14, %v5414_v16 }
0x160f   :  { %3706 = vmatmul.msk.f32.gmra.mxu1 %vm536_vm14, %v5416_v32 }
0x1617   :  { %3707 = vmatmul.msk.f32.gmra.mxu1 %vm536_vm14, %v5418_v35 }
0x161f   :  { %3708 = vmatmul.msk.f32.gmra.mxu1 %vm536_vm14, %v5420_v46 }
0x1627   :  { %3709 = vmatmul.msk.f32.gmra.mxu1 %vm536_vm14, %v5422_v44 }
0x162f   :  { %3710 = vmatmul.msk.f32.gmra.mxu1 %vm536_vm14, %v5424_v48 }
0x1674   :  { %v2837_v40 = vpop.f32.mrf.mxu1 }
0x167c   :  { %v2840_v34 = vpop.f32.mrf.mxu1 }
0x167d   :  { %v2862_v60 = vsub.f32 %v4889_v42, %v2840_v34 }
0x1684   :  { %v2843_v19 = vpop.f32.mrf.mxu1 }
0x1685   :  { %v2863_v5 = vsub.f32 %v4885_v56, %v2843_v19 }
0x168c   :  { %v2846_v43 = vpop.f32.mrf.mxu1 }
0x168d   :  { %v2864_v62 = vsub.f32 %v4881_v57, %v2846_v43 }
0x1694   :  { %v2849_v23 = vpop.f32.mrf.mxu1 }
0x1695   :  { %v2865_v1 = vsub.f32 %v4877_v11, %v2849_v23 }
0x169c   :  { %v2852_v12 = vpop.f32.mrf.mxu1 }
0x169d   :  { %v2866_v53 = vsub.f32 %v4873_v7, %v2852_v12 }
0x16a4   :  { %v2855_v18 = vpop.f32.mrf.mxu1 }
0x16a5   :  { %v2867_v59 = vsub.f32 %v4870_v45, %v2855_v18 }
0x16ac   :  { %v2858_v3 = vpop.f32.mrf.mxu1 }
0x16ad   :  { %v2868_v38 = vsub.f32 %v4867_v4, %v2858_v3  ;;  %v2861_v4 = vsub.f32 %v4893_v61, %v2837_v40 }
0x16af   :  { %2877 = vmatpush.msra.mxu2 %v2868_v38 }
0x16b1   :  { %2878 = vmatpush.msra.mxu2 %v2867_v59 }
0x16b3   :  { %2879 = vmatpush.msra.mxu2 %v2866_v53 }
0x16b5   :  { %2880 = vmatpush.msra.mxu2 %v2865_v1 }
0x16b7   :  { %2881 = vmatpush.msra.mxu2 %v2864_v62 }
0x16b9   :  { %2882 = vmatpush.msra.mxu2 %v2863_v5 }
0x16bb   :  { %2883 = vmatpush.msra.mxu2 %v2862_v60 }
0x16bd   :  { %2884 = vmatpush.msra.mxu2 %v2861_v4 }
0x16be   :  { %3711 = vmatmul.msk.f32.vlgmr.msra.gmra.mxu2 %vm536_vm14, %v5410_v50 }
0x16c6   :  { %3712 = vmatmul.msk.f32.gmra.mxu2 %vm536_vm14, %v5412_v2 }
0x16ce   :  { %3713 = vmatmul.msk.f32.gmra.mxu2 %vm536_vm14, %v5414_v16 }
0x16d6   :  { %3714 = vmatmul.msk.f32.gmra.mxu2 %vm536_vm14, %v5416_v32 }
0x16de   :  { %3715 = vmatmul.msk.f32.gmra.mxu2 %vm536_vm14, %v5418_v35 }
0x16e6   :  { %3716 = vmatmul.msk.f32.gmra.mxu2 %vm536_vm14, %v5420_v46 }
0x16ee   :  { %3717 = vmatmul.msk.f32.gmra.mxu2 %vm536_vm14, %v5422_v44 }
0x16f6   :  { %3718 = vmatmul.msk.f32.gmra.mxu2 %vm536_vm14, %v5424_v48 }
0x1741   :  { %v2886_v56 = vpop.f32.mrf.mxu2 }
0x1749   :  { %v2889_v45 = vpop.f32.mrf.mxu2 }
0x174a   :  { %v2911_v48 = vsub.f32 %v4945_v13, %v2889_v45  ;;  %v1260_v13 = vld [vmem:[%s5847_s14] sm:$0xff] }
0x1751   :  { %v2892_v7 = vpop.f32.mrf.mxu2 }
0x1752   :  { %v2912_v44 = vsub.f32 %v4941_v25, %v2892_v7 }
0x1759   :  { %v2895_v11 = vpop.f32.mrf.mxu2 }
0x175a   :  { %v2913_v46 = vsub.f32 %v4937_v55, %v2895_v11 }
0x1761   :  { %v2898_v57 = vpop.f32.mrf.mxu2 }
0x1762   :  { %v2914_v35 = vsub.f32 %v4933_v22, %v2898_v57 }
0x1769   :  { %v2901_v42 = vpop.f32.mrf.mxu2 }
0x176a   :  { %v2915_v32 = vsub.f32 %v4929_v24, %v2901_v42 }
0x1771   :  { %v2904_v61 = vpop.f32.mrf.mxu2 }
0x1772   :  { %v2916_v16 = vsub.f32 %v4926_v39, %v2904_v61 }
0x1779   :  { %v2907_v50 = vpop.f32.mrf.mxu2 }
0x177a   :  { %v2917_v2 = vsub.f32 %v4923_v49, %v2907_v50  ;;  %v2910_v49 = vsub.f32 %v4949_v10, %v2886_v56  ;;  %v5914_v10 = vld [vmem:[#allocation7_spill] sm:$0xff] }
0x177b   :  { %v5918_v56 = vld [vmem:[#allocation3_spill] sm:$0xff] }
0x177c   :  { %2950 = vmatpush.msrb.mxu3 %v2917_v2 }
0x177e   :  { %2951 = vmatpush.msrb.mxu3 %v2916_v16 }
0x1780   :  { %2952 = vmatpush.msrb.mxu3 %v2915_v32  ;;  %v1346_v32 = vand.u32 2147483648, %v5550_v26 }
0x1782   :  { %2953 = vmatpush.msrb.mxu3 %v2914_v35  ;;  %v5919_v35 = vld [vmem:[#allocation4_spill] sm:$0xff] }
0x1784   :  { %2954 = vmatpush.msrb.mxu3 %v2913_v46 }
0x1786   :  { %2955 = vmatpush.msrb.mxu3 %v2912_v44  ;;  %v1344_v44 = vand.u32 2147483647, %v5550_v26 }
0x1788   :  { %2956 = vmatpush.msrb.mxu3 %v2911_v48  ;;  %vm1345_vm9 = vcmp.eq.f32.partialorder %v1344_v44, 8.507059e+37  ;;  %v3184_v44 = vld [vmem:[%s5851_s19 + $0x18] sm:$0xff] }
0x1789   :  { %3213 = vmatpush.msrb.mxu2 %v3184_v44 }
0x178a   :  { %2957 = vmatpush.msrb.mxu3 %v2910_v49 }
0x178b   :  { %3719 = vmatmul.msk.f32.vlgmr.msrb.gmra.mxu3 %vm536_vm14, %v5390_v28 }
0x1793   :  { %3720 = vmatmul.msk.f32.gmra.mxu3 %vm536_vm14, %v5387_v63 }
0x179b   :  { %3721 = vmatmul.msk.f32.gmra.mxu3 %vm536_vm14, %v5384_v29 }
0x17a3   :  { %3722 = vmatmul.msk.f32.gmra.mxu3 %vm536_vm14, %v5381_v33 }
0x17ab   :  { %3723 = vmatmul.msk.f32.gmra.mxu3 %vm536_vm14, %v5378_v41  ;;  %v1294_v41 = vadd.f32 %v5914_v10, %v1260_v13  ;;  %v1359_v10 = vand.u32 2147483647, %v5557_v14 }
0x17ad   :  { %3842 = vrcp.f32 %v1294_v41  ;;  %v1316_v40 = vand.u32 2147483648, %v1294_v41  ;;  %vm1310_vm13 = vweird.f32 %v1294_v41  ;;  %v1314_v19 = vand.u32 2147483647, %v1294_v41 }
0x17af   :  { %v1317_v3 = vor.u32 1.1754944e-38, %v1316_v40  ;;  %vm1315_vm1 = vcmp.eq.f32.partialorder %v1314_v19, 8.507059e+37 }
0x17b3   :  { %3724 = vmatmul.msk.f32.gmra.mxu3 %vm536_vm14, %v5375_v37  ;;  %v5915_v37 = vld [vmem:[#allocation8_spill] sm:$0xff] }
0x17bb   :  { %3725 = vmatmul.msk.f32.gmra.mxu3 %vm536_vm14, %v5372_v9  ;;  %v1261_v9 = vld [vmem:[%s5847_s14 + $0x8] sm:$0xff] }
0x17bc   :  { %v1297_v29 = vadd.f32 %v5915_v37, %v1261_v9  ;;  %v5921_v37 = vld [vmem:[#allocation6_spill] sm:$0xff] }
0x17be   :  { %3844 = vrcp.f32 %v1297_v29  ;;  %v1331_v4 = vand.u32 2147483648, %v1297_v29  ;;  %vm1325_vm3 = vweird.f32 %v1297_v29  ;;  %v1329_v7 = vand.u32 2147483647, %v1297_v29 }
0x17bf   :  { %3846 = vrcp.f32 %v5550_v26 }
0x17c0   :  { %3848 = vrcp.f32 %v5557_v14  ;;  %v1332_v61 = vor.u32 1.1754944e-38, %v1331_v4  ;;  %vm1330_vm5 = vcmp.eq.f32.partialorder %v1329_v7, 8.507059e+37 }
0x17c3   :  { %3726 = vmatmul.msk.f32.gmra.mxu3 %vm536_vm14, %v5370_v51  ;;  %v3843_v51 = vpop.eup %3842 }
0x17c4   :  { %v1306_v28 = vmul.f32 %v3843_v51, %v1294_v41  ;;  %v3845_v6 = vpop.eup %3844  ;;  %vm1311_vm12 = vweird.f32 %v3843_v51 }
0x17c5   :  { %v1321_v15 = vmul.f32 %v3845_v6, %v1297_v29  ;;  %v3847_v27 = vpop.eup %3846  ;;  %vm1312_vm15 = vmor %vm1310_vm13, %vm1311_vm12  ;;  %vm1326_vm2 = vweird.f32 %v3845_v6  ;;  %vm1360_vm13 = vcmp.eq.f32.partialorder %v1359_v10, 8.507059e+37  ;;  %v3182_v10 = vld [vmem:[%s5851_s19 + $0x8] sm:$0xff] }
0x17c6   :  { %v1307_v30 = vsub.f32 1.0, %v1306_v28  ;;  %v1336_v18 = vmul.f32 %v3847_v27, %v5550_v26  ;;  %v3849_v5 = vpop.eup %3848  ;;  %vm1327_vm4 = vmor %vm1325_vm3, %vm1326_vm2  ;;  %vm1341_vm6 = vweird.f32 %v3847_v27  ;;  %v5922_v26 = vld [vmem:[#allocation11_spill] sm:$0xff] }
0x17c7   :  { %v1322_v58 = vsub.f32 1.0, %v1321_v15  ;;  %v1351_v57 = vmul.f32 %v3849_v5, %v5557_v14  ;;  %vm1342_vm8 = vmor %vm1340_vm7, %vm1341_vm6  ;;  %vm1356_vm10 = vweird.f32 %v3849_v5  ;;  %v5923_v15 = vld [vmem:[#allocation12_spill] sm:$0xff] }
0x17c8   :  { %v1308_v20 = vmul.f32 %v3843_v51, %v1307_v30  ;;  %v1337_v1 = vsub.f32 1.0, %v1336_v18  ;;  %vm1357_vm12 = vmor %vm1355_vm11, %vm1356_vm10 }
0x17c9   :  { %v1323_v12 = vmul.f32 %v3845_v6, %v1322_v58  ;;  %v1352_v2 = vsub.f32 1.0, %v1351_v57 }
0x17ca   :  { %v1309_v52 = vadd.f32 %v3843_v51, %v1308_v20  ;;  %v1338_v11 = vmul.f32 %v3847_v27, %v1337_v1 }
0x17cb   :  { %v1324_v62 = vadd.f32 %v3845_v6, %v1323_v12  ;;  %v1353_v48 = vmul.f32 %v3849_v5, %v1352_v2  ;;  %v3885_v12 = vld [vmem:[%s5875_s24 + $0x18] sm:$0xff] }
0x17cc   :  { %v1313_v23 = vsel %vm1312_vm15, %v3843_v51, %v1309_v52  ;;  %v1339_v16 = vadd.f32 %v3847_v27, %v1338_v11  ;;  %v5924_v52 = vld [vmem:[#allocation13_spill] sm:$0xff] }
0x17cd   :  { %v1318_v59 = vsel %vm1315_vm1, %v1317_v3, %v1313_v23  ;;  %v1328_v42 = vsel %vm1327_vm4, %v3845_v6, %v1324_v62  ;;  %v3882_v6 = vld [vmem:[%s5875_s24] sm:$0xff] }
0x17ce   :  { %v1319_v45 = vmul.f32 %v5918_v56, %v1318_v59  ;;  %v1333_v50 = vsel %vm1330_vm5, %v1332_v61, %v1328_v42  ;;  %v1343_v49 = vsel %vm1342_vm8, %v3847_v27, %v1339_v16  ;;  %v3884_v27 = vld [vmem:[%s5875_s24 + $0x10] sm:$0xff]  ;;  %v5926_v59 = vld [vmem:[#allocation2_spill] sm:$0xff] }
0x17cf   :  { %v1334_v46 = vmul.f32 %v5919_v35, %v1333_v50 }
0x180e   :  { %v2959_v39 = vpop.f32.mrf.mxu3 }
0x180f   :  { %v2983_v60 = vmul.f32 0.25, %v2959_v39  ;;  %v1347_v39 = vor.u32 1.1754944e-38, %v1346_v32 }
0x1816   :  { %v2962_v24 = vpop.f32.mrf.mxu3 }
0x1817   :  { %v2984_v53 = vmul.f32 0.25, %v2962_v24  ;;  %v1348_v24 = vsel %vm1345_vm9, %v1347_v39, %v1343_v49 }
0x181e   :  { %v2965_v22 = vpop.f32.mrf.mxu3 }
0x181f   :  { %v2985_v38 = vmul.f32 0.25, %v2965_v22  ;;  %v1354_v22 = vadd.f32 %v3849_v5, %v1353_v48 }
0x1821   :  { %v1358_v41 = vsel %vm1357_vm12, %v3849_v5, %v1354_v22 }
0x1826   :  { %v2968_v55 = vpop.f32.mrf.mxu3 }
0x1827   :  { %v2986_v43 = vmul.f32 0.25, %v2968_v55  ;;  %v1361_v55 = vand.u32 2147483648, %v5557_v14 }
0x182e   :  { %v2971_v25 = vpop.f32.mrf.mxu3 }
0x182f   :  { %v2987_v34 = vmul.f32 0.25, %v2971_v25  ;;  %v5920_v25 = vld [vmem:[#allocation5_spill] sm:$0xff] }
0x1830   :  { %v1349_v13 = vmul.f32 %v5920_v25, %v1348_v24  ;;  %v3183_v24 = vld [vmem:[%s5851_s19 + $0x10] sm:$0xff] }
0x1831   :  { %3214 = vmatpush.msrb.mxu2 %v3183_v24 }
0x1833   :  { %3215 = vmatpush.msrb.mxu2 %v3182_v10  ;;  %v3404_v10 = vld [vmem:[%s5853_s21 + $0x70] sm:$0xff] }
0x1836   :  { %v2974_v33 = vpop.f32.mrf.mxu3 }
0x1837   :  { %v2988_v54 = vmul.f32 0.25, %v2974_v33  ;;  %v1362_v33 = vor.u32 1.1754944e-38, %v1361_v55 }
0x1839   :  { %v1363_v9 = vsel %vm1360_vm13, %v1362_v33, %v1358_v41  ;;  %v3181_v33 = vld [vmem:[%s5851_s19] sm:$0xff] }
0x183a   :  { %v1364_v29 = vmul.f32 %v5921_v37, %v1363_v9  ;;  %3216 = vmatpush.msrb.mxu2 %v3181_v33  ;;  %v3403_v33 = vld [vmem:[%s5853_s21 + $0x68] sm:$0xff] }
0x183e   :  { %v2977_v63 = vpop.f32.mrf.mxu3 }
0x183f   :  { %v2989_v8 = vmul.f32 0.25, %v2977_v63 }
0x1846   :  { %v2980_v0 = vpop.f32.mrf.mxu3 }
0x1847   :  { %v2990_v36 = vmul.f32 0.25, %v2980_v0 }
0x1849   :  { %3011 = vmatpush.msrb.mxu0 %v2990_v36 }
0x184b   :  { %3012 = vmatpush.msrb.mxu0 %v2989_v8  ;;  %v3883_v8 = vld [vmem:[%s5875_s24 + $0x8] sm:$0xff] }
0x184d   :  { %3013 = vmatpush.msrb.mxu0 %v2988_v54 }
0x184f   :  { %3014 = vmatpush.msrb.mxu0 %v2987_v34 }
0x1851   :  { %3015 = vmatpush.msrb.mxu0 %v2986_v43  ;;  %v5925_v43 = vld [vmem:[#allocation14_spill] sm:$0xff] }
0x1853   :  { %3016 = vmatpush.msrb.mxu0 %v2985_v38 }
0x1855   :  { %3017 = vmatpush.msrb.mxu0 %v2984_v53 }
0x1857   :  { %3018 = vmatpush.msrb.mxu0 %v2983_v60 }
0x1858   :  { %3727 = vmatmul.msk.f32.vlgmr.msrb.gmra.mxu0 %vm536_vm14, %v1319_v45 }
0x1860   :  { %3728 = vmatmul.msk.f32.gmra.mxu0 %vm536_vm14, %v1334_v46 }
0x1868   :  { %3729 = vmatmul.msk.f32.gmra.mxu0 %vm536_vm14, %v1349_v13 }
0x1870   :  { %3730 = vmatmul.msk.f32.gmra.mxu0 %vm536_vm14, %v1364_v29 }
0x18d5   :  { %v3020_v51 = vpop.f32.mrf.mxu0 }
0x18d6   :  { %3731 = vmatmul.msk.f32.vlgmr.msrb.gmra.mxu1 %vm536_vm14, %v3020_v51 }
0x18dd   :  { %v3023_v63 = vpop.f32.mrf.mxu0 }
0x18de   :  { %3732 = vmatmul.msk.f32.gmra.mxu1 %vm536_vm14, %v3023_v63 }
0x18e5   :  { %v3026_v28 = vpop.f32.mrf.mxu0 }
0x18e6   :  { %3733 = vmatmul.msk.f32.gmra.mxu1 %vm536_vm14, %v3026_v28 }
0x18ed   :  { %v3029_v31 = vpop.f32.mrf.mxu0 }
0x18ee   :  { %3734 = vmatmul.msk.f32.gmra.mxu1 %vm536_vm14, %v3029_v31 }
0x1953   :  { %v3061_v47 = vpop.f32.mrf.mxu1 }
0x1954   :  { %v3062_v30 = vadd.f32 %v3061_v47, %v5922_v26 }
0x1956   :  { %v5584_v0 = vadd.f32 %v3882_v6, %v3062_v30  ;;  %v3754_v30 = vld [vmem:[%s5848_s17] ss:$0 sm:$0xff] }
0x1958   :  { %v3079_v36 = vsel %vm80_vm0, %v5584_v0, 0.0 }
0x1959   :  { %3080 = vadd.xlane.f32.xlu1 %v3079_v36 }
0x195b   :  { %v3064_v20 = vpop.f32.mrf.mxu1 }
0x195c   :  { %v3065_v21 = vadd.f32 %v3064_v20, %v5923_v15  ;;  %v3755_v20 = vld [vmem:[%s5849_s18] ss:$0 sm:$0xff] }
0x195e   :  { %v5592_v17 = vadd.f32 %v3883_v8, %v3065_v21 }
0x1960   :  { %v3082_v14 = vsel %vm80_vm0, %v5592_v17, 0.0 }
0x1961   :  { %3083 = vadd.xlane.f32.xlu2 %v3082_v14 }
0x1963   :  { %v3067_v54 = vpop.f32.mrf.mxu1 }
0x1964   :  { %v3068_v58 = vadd.f32 %v3067_v54, %v5924_v52 }
0x1966   :  { %v5600_v40 = vadd.f32 %v3884_v27, %v3068_v58 }
0x1968   :  { %v3085_v34 = vsel %vm80_vm0, %v5600_v40, 0.0 }
0x1969   :  { %3086 = vadd.xlane.f32.xlu1 %v3085_v34 }
0x196b   :  { %v3070_v19 = vpop.f32.mrf.mxu1 }
0x196c   :  { %v3071_v23 = vadd.f32 %v3070_v19, %v5925_v43 }
0x196e   :  { %v5608_v18 = vadd.f32 %v3885_v12, %v3071_v23 }
0x1970   :  { %v3088_v3 = vsel %vm80_vm0, %v5608_v18, 0.0 }
0x1971   :  { %3089 = vadd.xlane.f32.xlu2 %v3088_v3 }
0x19cc   :  { %v3081_v38 = vpop.xlane.xlu1 %3080 }
0x19cd   :  { %v3091_v53 = vmul.f32 %v3081_v38, %v5926_v59 }
0x19cf   :  { %v3095_v1 = vsub.f32 %v5584_v0, %v3091_v53 }
0x19d1   :  { %v3099_v62 = vmul.f32 %v3095_v1, %v3095_v1 }
0x19d3   :  { %v3103_v5 = vsel %vm80_vm0, %v3099_v62, 0.0 }
0x19d4   :  { %3104 = vadd.xlane.f32.xlu0 %v3103_v5  ;;  %v3084_v60 = vpop.xlane.xlu2 %3083 }
0x19d5   :  { %v3092_v4 = vmul.f32 %v3084_v60, %v5926_v59 }
0x19d7   :  { %v5617_v56 = vsub.f32 %v5592_v17, %v3092_v4 }
0x19d9   :  { %v3100_v45 = vmul.f32 %v5617_v56, %v5617_v56 }
0x19db   :  { %v3106_v7 = vsel %vm80_vm0, %v3100_v45, 0.0 }
0x19dc   :  { %3107 = vadd.xlane.f32.xlu1 %v3106_v7  ;;  %v3087_v11 = vpop.xlane.xlu1 %3086 }
0x19dd   :  { %v3093_v57 = vmul.f32 %v3087_v11, %v5926_v59 }
0x19df   :  { %v5624_v42 = vsub.f32 %v5600_v40, %v3093_v57 }
0x19e1   :  { %v3101_v61 = vmul.f32 %v5624_v42, %v5624_v42 }
0x19e3   :  { %v3109_v50 = vsel %vm80_vm0, %v3101_v61, 0.0 }
0x19e4   :  { %3110 = vadd.xlane.f32.xlu2 %v3109_v50  ;;  %v3090_v2 = vpop.xlane.xlu2 %3089 }
0x19e5   :  { %v3094_v16 = vmul.f32 %v3090_v2, %v5926_v59 }
0x19e7   :  { %v5631_v32 = vsub.f32 %v5608_v18, %v3094_v16 }
0x19e9   :  { %v3102_v35 = vmul.f32 %v5631_v32, %v5631_v32 }
0x19eb   :  { %v3112_v46 = vsel %vm80_vm0, %v3102_v35, 0.0 }
0x19ec   :  { %3113 = vadd.xlane.f32.xlu1 %v3112_v46 }
0x1a47   :  { %v3105_v48 = vpop.xlane.xlu0 %3104 }
0x1a48   :  { %v3115_v49 = vmul.f32 %v3105_v48, %v5926_v59 }
0x1a4a   :  { %v3119_v39 = vadd.f32 1e-05, %v3115_v49 }
0x1a4c   :  { %3850 = vrsqrt.f32 %v3119_v39  ;;  %vm3129_vm15 = vweird.f32 %v3119_v39 }
0x1a4f   :  { %v3108_v22 = vpop.xlane.xlu1 %3107 }
0x1a50   :  { %v3116_v55 = vmul.f32 %v3108_v22, %v5926_v59 }
0x1a52   :  { %v3851_v25 = vpop.eup %3850  ;;  %v3120_v13 = vadd.f32 1e-05, %v3116_v55 }
0x1a53   :  { %v3124_v41 = vmul.f32 %v3851_v25, %v3119_v39  ;;  %vm3130_vm14 = vweird.f32 %v3851_v25 }
0x1a54   :  { %3852 = vrsqrt.f32 %v3120_v13  ;;  %vm3131_vm1 = vmor %vm3129_vm15, %vm3130_vm14  ;;  %vm3139_vm3 = vweird.f32 %v3120_v13 }
0x1a55   :  { %v3125_v9 = vmul.f32 %v3851_v25, %v3124_v41 }
0x1a57   :  { %v3126_v37 = vmul.f32 0.5, %v3125_v9  ;;  %v3111_v29 = vpop.xlane.xlu2 %3110 }
0x1a58   :  { %v3117_v51 = vmul.f32 %v3111_v29, %v5926_v59  ;;  %v3402_v29 = vld [vmem:[%s5853_s21 + $0x60] sm:$0xff] }
0x1a59   :  { %v3127_v63 = vsub.f32 1.5, %v3126_v37 }
0x1a5a   :  { %v3853_v28 = vpop.eup %3852  ;;  %v3121_v31 = vadd.f32 1e-05, %v3117_v51 }
0x1a5b   :  { %v3128_v47 = vmul.f32 %v3851_v25, %v3127_v63  ;;  %v3134_v26 = vmul.f32 %v3853_v28, %v3120_v13  ;;  %vm3140_vm2 = vweird.f32 %v3853_v28 }
0x1a5c   :  { %3854 = vrsqrt.f32 %v3121_v31  ;;  %vm3141_vm4 = vmor %vm3139_vm3, %vm3140_vm2  ;;  %vm3149_vm6 = vweird.f32 %v3121_v31 }
0x1a5d   :  { %v3132_v6 = vsel %vm3131_vm1, %v3851_v25, %v3128_v47  ;;  %v3135_v36 = vmul.f32 %v3853_v28, %v3134_v26  ;;  %v3405_v25 = vld [vmem:[%s5853_s21 + $0x78] sm:$0xff] }
0x1a5e   :  { %v3163_v15 = vmul.f32 %v3132_v6, %v3095_v1  ;;  %3406 = vmatpush.msra.mxu3 %v3405_v25  ;;  %v3401_v47 = vld [vmem:[%s5853_s21 + $0x58] sm:$0xff]  ;;  %v3400_v6 = vld [vmem:[%s5853_s21 + $0x50] sm:$0xff] }
0x1a5f   :  { %v3136_v21 = vmul.f32 0.5, %v3135_v36  ;;  %v3114_v8 = vpop.xlane.xlu1 %3113 }
0x1a60   :  { %v3170_v14 = vmul.f32 %v3754_v30, %v3163_v15  ;;  %v3118_v54 = vmul.f32 %v3114_v8, %v5926_v59  ;;  %3407 = vmatpush.msra.mxu3 %v3404_v10  ;;  %v3399_v8 = vld [vmem:[%s5853_s21 + $0x48] sm:$0xff] }
0x1a61   :  { %v3137_v52 = vsub.f32 1.5, %v3136_v21 }
0x1a62   :  { %v3855_v58 = vpop.eup %3854  ;;  %v3177_v27 = vadd.f32 %v3755_v20, %v3170_v14  ;;  %v3122_v34 = vadd.f32 1e-05, %v3118_v54  ;;  %3408 = vmatpush.msra.mxu3 %v3403_v33  ;;  %v3398_v14 = vld [vmem:[%s5853_s21 + $0x40] sm:$0xff] }
0x1a63   :  { %v3138_v19 = vmul.f32 %v3853_v28, %v3137_v52  ;;  %v3144_v43 = vmul.f32 %v3855_v58, %v3121_v31  ;;  %vm3150_vm5 = vweird.f32 %v3855_v58 }
0x1a64   :  { %3856 = vrsqrt.f32 %v3122_v34  ;;  %3735 = vmatmul.msk.f32.vlgmr.msrb.gmra.mxu2 %vm80_vm0, %v3177_v27  ;;  %vm3151_vm7 = vmor %vm3149_vm6, %vm3150_vm5  ;;  %vm3159_vm9 = vweird.f32 %v3122_v34  ;;  %3409 = vmatpush.msra.mxu3 %v3402_v29  ;;  %v3397_v27 = vld [vmem:[%s5853_s21 + $0x38] sm:$0xff] }
0x1a65   :  { %v3142_v23 = vsel %vm3141_vm4, %v3853_v28, %v3138_v19  ;;  %v3145_v12 = vmul.f32 %v3855_v58, %v3144_v43 }
0x1a66   :  { %v3164_v3 = vmul.f32 %v3142_v23, %v5617_v56  ;;  %3410 = vmatpush.msra.mxu3 %v3401_v47 }
0x1a67   :  { %v3146_v38 = vmul.f32 0.5, %v3145_v12 }
0x1a68   :  { %v3171_v53 = vmul.f32 %v3754_v30, %v3164_v3  ;;  %3411 = vmatpush.msra.mxu3 %v3400_v6 }
0x1a69   :  { %v3147_v1 = vsub.f32 1.5, %v3146_v38  ;;  %v3396_v38 = vld [vmem:[%s5853_s21 + $0x30] sm:$0xff] }
0x1a6a   :  { %v3857_v59 = vpop.eup %3856  ;;  %v3178_v62 = vadd.f32 %v3755_v20, %v3171_v53  ;;  %3412 = vmatpush.msra.mxu3 %v3399_v8 }
0x1a6b   :  { %v3148_v5 = vmul.f32 %v3855_v58, %v3147_v1  ;;  %v3154_v60 = vmul.f32 %v3857_v59, %v3122_v34  ;;  %vm3160_vm8 = vweird.f32 %v3857_v59 }
0x1a6c   :  { %3736 = vmatmul.msk.f32.gmra.mxu2 %vm80_vm0, %v3178_v62  ;;  %vm3161_vm10 = vmor %vm3159_vm9, %vm3160_vm8  ;;  %3413 = vmatpush.msra.mxu3 %v3398_v14  ;;  %v3395_v62 = vld [vmem:[%s5853_s21 + $0x28] sm:$0xff] }
0x1a6d   :  { %v3152_v4 = vsel %vm3151_vm7, %v3855_v58, %v3148_v5  ;;  %v3155_v45 = vmul.f32 %v3857_v59, %v3154_v60 }
0x1a6e   :  { %v3165_v7 = vmul.f32 %v3152_v4, %v5624_v42  ;;  %v3756_v42 = vld [vmem:[%s5850_s20] ss:$0 sm:$0xff]  ;;  %3414 = vmatpush.msra.mxu3 %v3397_v27 }
0x1a6f   :  { %v3156_v11 = vmul.f32 0.5, %v3155_v45 }
0x1a70   :  { %v3172_v57 = vmul.f32 %v3754_v30, %v3165_v7  ;;  %3415 = vmatpush.msra.mxu3 %v3396_v38 }
0x1a71   :  { %v3157_v61 = vsub.f32 1.5, %v3156_v11  ;;  %v3394_v11 = vld [vmem:[%s5853_s21 + $0x20] sm:$0xff] }
0x1a72   :  { %v3179_v56 = vadd.f32 %v3755_v20, %v3172_v57  ;;  %3416 = vmatpush.msra.mxu3 %v3395_v62 }
0x1a73   :  { %v3158_v50 = vmul.f32 %v3857_v59, %v3157_v61 }
0x1a74   :  { %3737 = vmatmul.msk.f32.gmra.mxu2 %vm80_vm0, %v3179_v56  ;;  %3417 = vmatpush.msra.mxu3 %v3394_v11 }
0x1a75   :  { %v3162_v2 = vsel %vm3161_vm10, %v3857_v59, %v3158_v50 }
0x1a76   :  { %v3166_v16 = vmul.f32 %v3162_v2, %v5631_v32  ;;  %v3393_v2 = vld [vmem:[%s5853_s21 + $0x18] sm:$0xff] }
0x1a77   :  { %3418 = vmatpush.msra.mxu3 %v3393_v2  ;;  %v3888_v2 = vmov -1.0  }
0x1a78   :  { %v3173_v35 = vmul.f32 %v3754_v30, %v3166_v16 }
0x1a7a   :  { %v3180_v46 = vadd.f32 %v3755_v20, %v3173_v35 }
0x1a7c   :  { %3738 = vmatmul.msk.f32.gmra.mxu2 %vm80_vm0, %v3180_v46 }
0x1ae7   :  { %v3218_v44 = vpop.f32.mrf.mxu2 }
0x1ae8   :  { %v5668_v48 = vadd.f32 %v3756_v42, %v3218_v44 }
0x1aea   :  { %v5671_v49 = vmul.f32 0.70710677, %v5668_v48 }
0x1aec   :  { %v5674_v39 = vand.u32 2147483647, %v5671_v49  ;;  %vm3238_vm8 = vcmp.ge.f32.partialorder %v5671_v49, 0.0 }
0x1aed   :  { %v3242_v49 = vsel %vm3238_vm8, 1.0, %v3888_v2 }
0x1aee   :  { %v3250_v24 = vmul.f32 0.3275911, %v5674_v39  ;;  %v3354_v3 = vsub.f32 0.0, %v5674_v39 }
0x1aef   :  { %v3221_v32 = vpop.f32.mrf.mxu2 }
0x1af0   :  { %v3254_v22 = vadd.f32 1.0, %v3250_v24  ;;  %v5677_v55 = vadd.f32 %v3756_v42, %v3221_v32  ;;  %v3358_v45 = vmul.f32 %v3354_v3, %v5674_v39  ;;  %v3392_v39 = vld [vmem:[%s5853_s21 + $0x10] sm:$0xff] }
0x1af1   :  { %3419 = vmatpush.msra.mxu3 %v3392_v39 }
0x1af2   :  { %3858 = vrcp.f32 %v3254_v22  ;;  %v5683_v13 = vmul.f32 0.70710677, %v5677_v55  ;;  %v3269_v36 = vand.u32 2147483648, %v3254_v22  ;;  %v3267_v21 = vand.u32 2147483647, %v3254_v22 }
0x1af3   :  { %vm3263_vm12 = vweird.f32 %v3254_v22  ;;  %v3362_v32 = vmul.f32 1.442695, %v3358_v45 }
0x1af4   :  { %v5689_v41 = vand.u32 2147483647, %v5683_v13  ;;  %v3270_v34 = vor.u32 1.1754944e-38, %v3269_v36  ;;  %vm3268_vm14 = vcmp.eq.f32.partialorder %v3267_v21, 8.507059e+37 }
0x1af6   :  { %v3251_v9 = vmul.f32 0.3275911, %v5689_v41  ;;  %v3355_v29 = vsub.f32 0.0, %v5689_v41 }
0x1af7   :  { %v3224_v37 = vpop.f32.mrf.mxu2 }
0x1af8   :  { %v3859_v51 = vpop.eup %3858  ;;  %v5698_v63 = vadd.f32 %v3756_v42, %v3224_v37  ;;  %v5700_v31 = vadd.f32 1.0, %v3251_v9  ;;  %v3391_v9 = vld [vmem:[%s5853_s21 + $0x8] sm:$0xff]  ;;  %v3359_v8 = vmul.f32 %v3355_v29, %v5689_v41 }
0x1af9   :  { %v3259_v28 = vmul.f32 %v3859_v51, %v3254_v22  ;;  %vm3264_vm11 = vweird.f32 %v3859_v51  ;;  %3420 = vmatpush.msra.mxu3 %v3391_v9 }
0x1afa   :  { %v5706_v26 = vmul.f32 0.70710677, %v5698_v63  ;;  %3860 = vrcp.f32 %v5700_v31  ;;  %vm3265_vm13 = vmor %vm3263_vm12, %vm3264_vm11  ;;  %v3284_v7 = vand.u32 2147483648, %v5700_v31  ;;  %v3282_v56 = vand.u32 2147483647, %v5700_v31 }
0x1afb   :  { %v3260_v30 = vsub.f32 1.0, %v3259_v28  ;;  %vm3278_vm1 = vweird.f32 %v5700_v31  ;;  %v3364_v41 = vmul.f32 1.442695, %v3359_v8 }
0x1afc   :  { %v5713_v20 = vand.u32 2147483647, %v5706_v26  ;;  %v3285_v24 = vor.u32 1.1754944e-38, %v3284_v7  ;;  %vm3283_vm3 = vcmp.eq.f32.partialorder %v3282_v56, 8.507059e+37 }
0x1afd   :  { %v3261_v15 = vmul.f32 %v3859_v51, %v3260_v30  ;;  %v3390_v30 = vld [vmem:[%s5853_s21] sm:$0xff] }
0x1afe   :  { %v3252_v54 = vmul.f32 0.3275911, %v5713_v20  ;;  %3421 = vmatpush.msra.mxu3 %v3390_v30 }
0x1aff   :  { %v3262_v52 = vadd.f32 %v3859_v51, %v3261_v15  ;;  %v3227_v58 = vpop.f32.mrf.mxu2 }
0x1b00   :  { %v5725_v19 = vadd.f32 1.0, %v3252_v54  ;;  %v5727_v43 = vadd.f32 %v3756_v42, %v3227_v58  ;;  %v3861_v23 = vpop.eup %3860 }
0x1b01   :  { %v3266_v12 = vsel %vm3265_vm13, %v3859_v51, %v3262_v52  ;;  %v3274_v1 = vmul.f32 %v3861_v23, %v5700_v31  ;;  %vm3279_vm15 = vweird.f32 %v3861_v23  ;;  %vm3239_vm13 = vcmp.ge.f32.partialorder %v5683_v13, 0.0 }
0x1b02   :  { %v5733_v53 = vsel %vm3268_vm14, %v3270_v34, %v3266_v12  ;;  %3862 = vrcp.f32 %v5725_v19  ;;  %v5742_v60 = vmul.f32 0.70710677, %v5727_v43  ;;  %vm3280_vm2 = vmor %vm3278_vm1, %vm3279_vm15  ;;  %v3299_v51 = vand.u32 2147483648, %v5725_v19 }
0x1b03   :  { %v3318_v59 = vmul.f32 1.0614054, %v5733_v53  ;;  %v3275_v5 = vsub.f32 1.0, %v3274_v1  ;;  %v3297_v28 = vand.u32 2147483647, %v5725_v19  ;;  %vm3293_vm5 = vweird.f32 %v5725_v19 }
0x1b04   :  { %v5750_v61 = vand.u32 2147483647, %v5742_v60  ;;  %v3300_v14 = vor.u32 1.1754944e-38, %v3299_v51  ;;  %v3356_v34 = vsub.f32 0.0, %v5713_v20  ;;  %v3243_v8 = vsel %vm3239_vm13, 1.0, %v3888_v2 }
0x1b05   :  { %v3322_v4 = vadd.f32 -1.4531521, %v3318_v59  ;;  %v3276_v57 = vmul.f32 %v3861_v23, %v3275_v5  ;;  %vm3298_vm7 = vcmp.eq.f32.partialorder %v3297_v28, 8.507059e+37  ;;  %vm3240_vm14 = vcmp.ge.f32.partialorder %v5706_v26, 0.0 }
0x1b06   :  { %v3253_v35 = vmul.f32 0.3275911, %v5750_v61  ;;  %v3360_v45 = vmul.f32 %v3356_v34, %v5713_v20  ;;  %vm3241_vm15 = vcmp.ge.f32.partialorder %v5742_v60, 0.0 }
0x1b07   :  { %v3326_v50 = vmul.f32 %v3322_v4, %v5733_v53  ;;  %v3277_v46 = vadd.f32 %v3861_v23, %v3276_v57 }
0x1b08   :  { %v3863_v16 = vpop.eup %3862  ;;  %v5763_v22 = vadd.f32 1.0, %v3253_v35 }
0x1b09   :  { %v3330_v42 = vadd.f32 1.4214138, %v3326_v50  ;;  %v3289_v44 = vmul.f32 %v3863_v16, %v5725_v19  ;;  %v3281_v25 = vsel %vm3280_vm2, %v3861_v23, %v3277_v46  ;;  %vm3294_vm4 = vweird.f32 %v3863_v16 }
0x1b0a   :  { %v5769_v37 = vsel %vm3283_vm3, %v3285_v24, %v3281_v25  ;;  %3864 = vrcp.f32 %v5763_v22  ;;  %vm3295_vm6 = vmor %vm3293_vm5, %vm3294_vm4  ;;  %v3314_v7 = vand.u32 2147483648, %v5763_v22  ;;  %vm3308_vm10 = vweird.f32 %v5763_v22 }
0x1b0b   :  { %v3334_v10 = vmul.f32 %v3330_v42, %v5733_v53  ;;  %v3290_v33 = vsub.f32 1.0, %v3289_v44  ;;  %v3319_v6 = vmul.f32 1.0614054, %v5769_v37  ;;  %3866 = vpow2.f32 %v3362_v32 }
0x1b0c   :  { %3868 = vpow2.f32 %v3364_v41  ;;  %v3230_v42 = vmul.f32 0.5, %v5668_v48  ;;  %v3366_v44 = vmul.f32 1.442695, %v3360_v45  ;;  %v3315_v39 = vor.u32 1.1754944e-38, %v3314_v7 }
0x1b0d   :  { %v3338_v31 = vadd.f32 -0.28449672, %v3334_v10  ;;  %v3291_v47 = vmul.f32 %v3863_v16, %v3290_v33  ;;  %v3323_v15 = vadd.f32 -1.4531521, %v3319_v6  ;;  %v3357_v33 = vsub.f32 0.0, %v5750_v61 }
0x1b0e   :  { %3870 = vpow2.f32 %v3366_v44  ;;  %v3245_v7 = vsel %vm3241_vm15, 1.0, %v3888_v2 }
0x1b0f   :  { %v3342_v36 = vmul.f32 %v3338_v31, %v5733_v53  ;;  %v3292_v21 = vadd.f32 %v3863_v16, %v3291_v47  ;;  %v3327_v52 = vmul.f32 %v3323_v15, %v5769_v37  ;;  %v3361_v6 = vmul.f32 %v3357_v33, %v5750_v61 }
0x1b10   :  { %v3865_v27 = vpop.eup %3864 }
0x1b11   :  { %v3346_v54 = vadd.f32 0.2548296, %v3342_v36  ;;  %v3296_v58 = vsel %vm3295_vm6, %v3863_v16, %v3292_v21  ;;  %v3304_v19 = vmul.f32 %v3865_v27, %v5763_v22  ;;  %v3331_v3 = vadd.f32 1.4214138, %v3327_v52  ;;  %v3867_v1 = vpop.eup %3866 }
0x1b12   :  { %v3301_v23 = vsel %vm3298_vm7, %v3300_v14, %v3296_v58  ;;  %vm3309_vm9 = vweird.f32 %v3865_v27  ;;  %v3869_v31 = vpop.eup %3868  ;;  %v3231_v58 = vmul.f32 0.5, %v5677_v55 }
0x1b13   :  { %v3350_v12 = vmul.f32 %v3346_v54, %v5733_v53  ;;  %v3320_v38 = vmul.f32 1.0614054, %v3301_v23  ;;  %v3305_v62 = vsub.f32 1.0, %v3304_v19  ;;  %v3335_v5 = vmul.f32 %v3331_v3, %v5769_v37  ;;  %vm3310_vm11 = vmor %vm3308_vm10, %vm3309_vm9 }
0x1b14   :  { %v3312_v53 = vand.u32 2147483647, %v5763_v22  ;;  %v3871_v52 = vpop.eup %3870 }
0x1b15   :  { %v3370_v59 = vmul.f32 %v3867_v1, %v3350_v12  ;;  %v3324_v4 = vadd.f32 -1.4531521, %v3320_v38  ;;  %v3306_v57 = vmul.f32 %v3865_v27, %v3305_v62  ;;  %v3339_v56 = vadd.f32 -0.28449672, %v3335_v5 }
0x1b16   :  { %vm3313_vm12 = vcmp.eq.f32.partialorder %v3312_v53, 8.507059e+37  ;;  %v3244_v38 = vsel %vm3240_vm14, 1.0, %v3888_v2 }
0x1b17   :  { %v3374_v11 = vsub.f32 1.0, %v3370_v59  ;;  %v3328_v50 = vmul.f32 %v3324_v4, %v3301_v23  ;;  %v3343_v35 = vmul.f32 %v3339_v56, %v5769_v37  ;;  %v3307_v20 = vadd.f32 %v3865_v27, %v3306_v57 }
0x1b19   :  { %v3378_v16 = vmul.f32 %v3374_v11, %v3242_v49  ;;  %v3332_v46 = vadd.f32 1.4214138, %v3328_v50  ;;  %v3347_v32 = vadd.f32 0.2548296, %v3343_v35  ;;  %v3311_v10 = vsel %vm3310_vm11, %v3865_v27, %v3307_v20 }
0x1b1a   :  { %v3316_v9 = vsel %vm3313_vm12, %v3315_v39, %v3311_v10  ;;  %v3368_v27 = vmul.f32 1.442695, %v3361_v6  ;;  %v3233_v11 = vmul.f32 0.5, %v5727_v43 }
0x1b1b   :  { %v3382_v24 = vadd.f32 1.0, %v3378_v16  ;;  %v3336_v25 = vmul.f32 %v3332_v46, %v3301_v23  ;;  %v3351_v29 = vmul.f32 %v3347_v32, %v5769_v37  ;;  %v3321_v28 = vmul.f32 1.0614054, %v3316_v9 }
0x1b1c   :  { %3872 = vpow2.f32 %v3368_v27 }
0x1b1d   :  { %v3386_v22 = vmul.f32 %v3382_v24, %v3230_v42  ;;  %v3340_v51 = vadd.f32 -0.28449672, %v3336_v25  ;;  %v3371_v48 = vmul.f32 %v3869_v31, %v3351_v29  ;;  %v3325_v30 = vadd.f32 -1.4531521, %v3321_v28 }
0x1b1f   :  { %3422 = vmatmul.f32.vlgmr.msra.gmra.mxu3 %v3386_v22  ;;  %v3344_v47 = vmul.f32 %v3340_v51, %v3301_v23  ;;  %v3375_v36 = vsub.f32 1.0, %v3371_v48  ;;  %v3329_v21 = vmul.f32 %v3325_v30, %v3316_v9 }
0x1b21   :  { %v3348_v15 = vadd.f32 0.2548296, %v3344_v47  ;;  %v3379_v14 = vmul.f32 %v3375_v36, %v3243_v8  ;;  %v3333_v37 = vadd.f32 1.4214138, %v3329_v21 }
0x1b22   :  { %v3873_v4 = vpop.eup %3872 }
0x1b23   :  { %v3352_v54 = vmul.f32 %v3348_v15, %v3301_v23  ;;  %v3383_v13 = vadd.f32 1.0, %v3379_v14  ;;  %v3337_v12 = vmul.f32 %v3333_v37, %v3316_v9  ;;  %v3232_v23 = vmul.f32 0.5, %v5698_v63  ;;  %v3757_v63 = vld [vmem:[%s5852_s22] ss:$0 sm:$0xff] }
0x1b25   :  { %v3372_v34 = vmul.f32 %v3871_v52, %v3352_v54  ;;  %v3387_v19 = vmul.f32 %v3383_v13, %v3231_v58  ;;  %v3341_v61 = vadd.f32 -0.28449672, %v3337_v12 }
0x1b27   :  { %v3376_v3 = vsub.f32 1.0, %v3372_v34  ;;  %3425 = vmatmul.f32.gmra.mxu3 %v3387_v19  ;;  %v3345_v41 = vmul.f32 %v3341_v61, %v3316_v9 }
0x1b29   :  { %v3380_v1 = vmul.f32 %v3376_v3, %v3244_v38  ;;  %v3349_v62 = vadd.f32 0.2548296, %v3345_v41 }
0x1b2b   :  { %v3384_v59 = vadd.f32 1.0, %v3380_v1  ;;  %v3353_v5 = vmul.f32 %v3349_v62, %v3316_v9 }
0x1b2d   :  { %v3388_v55 = vmul.f32 %v3384_v59, %v3232_v23  ;;  %v3373_v26 = vmul.f32 %v3873_v4, %v3353_v5 }
0x1b2f   :  { %3428 = vmatmul.f32.gmra.mxu3 %v3388_v55  ;;  %v3377_v45 = vsub.f32 1.0, %v3373_v26 }
0x1b31   :  { %v3381_v53 = vmul.f32 %v3377_v45, %v3245_v7 }
0x1b33   :  { %v3385_v57 = vadd.f32 1.0, %v3381_v53 }
0x1b35   :  { %v3389_v56 = vmul.f32 %v3385_v57, %v3233_v11 }
0x1b37   :  { %3431 = vmatmul.f32.gmra.mxu3 %v3389_v56 }
0x1ba2   :  { %v3423_v50 = vpop.f32.mrf.mxu3 }
0x1ba3   :  { %v3435_v49 = vadd.f32 %v3423_v50, %v5584_v0 }
0x1ba5   :  { %v3443_v16 = vadd.f32 %v3757_v63, %v3435_v49 }
0x1ba7   :  { %3447 = vst.msk [vmem:[%s5854_s23] sm:$0xff] %vm80_vm0, %v3443_v16 }
0x1baa   :  { %v3426_v60 = vpop.f32.mrf.mxu3 }
0x1bab   :  { %v3436_v2 = vadd.f32 %v3426_v60, %v5592_v17 }
0x1bad   :  { %v3444_v43 = vadd.f32 %v3757_v63, %v3436_v2 }
0x1baf   :  { %3448 = vst.msk [vmem:[%s5854_s23 + $0x8] sm:$0xff] %vm80_vm0, %v3444_v43 }
0x1bb2   :  { %v3429_v35 = vpop.f32.mrf.mxu3 }
0x1bb3   :  { %v3437_v46 = vadd.f32 %v3429_v35, %v5600_v40 }
0x1bb5   :  { %v3445_v20 = vadd.f32 %v3757_v63, %v3437_v46 }
0x1bb7   :  { %3449 = vst.msk [vmem:[%s5854_s23 + $0x10] sm:$0xff] %vm80_vm0, %v3445_v20 }
0x1bba   :  { %v3432_v0 = vpop.f32.mrf.mxu3 }
0x1bbb   :  { %v3438_v42 = vadd.f32 %v3432_v0, %v5608_v18 }
0x1bbd   :  { %v3446_v44 = vadd.f32 %v3757_v63, %v3438_v42 }
0x1bbf   :  { %3450 = vst.msk [vmem:[%s5854_s23 + $0x18] sm:$0xff] %vm80_vm0, %v3446_v44 }

</bundles_post_ra>
